<compile_context>
chip_gen: v7x
topology: tpu7x:2x2x1
jax: 0.10.0
libtpu: 0.0.40
codegen_flags: <defaults>
</compile_context>

<pallas_src>
import jax
import jax.numpy as jnp
from jax import lax
from jax.experimental import pallas as pl
from jax.experimental.pallas import tpu as pltpu


def basic_block_kernel(x_ref, w_ref, scale_ref, shift_ref, alpha_ref,
                       out_ref, pad_scr, col_scr):
    # x_ref     : (NB, H, W, Cp)        input block (f32, unpadded)
    # w_ref     : (9*Cp, Cp)            im2col conv weights (bf16),
    #                                   row block k = 3*dy + dx holds w[dy, dx]
    # scale_ref : (1, Cp)               folded BN scale (f32)
    # shift_ref : (1, Cp)               folded BN shift (+conv bias) (f32)
    # alpha_ref : (1, Cp)               PReLU slope (f32)
    # out_ref   : (NB, H, W, Cp)        f32
    # pad_scr   : (NB, H+2, Wp, Cp)     bf16 zero-padded activation scratch
    # col_scr   : (NB*H*W, 9*Cp)        bf16 im2col scratch
    NB, H, W, Cp = x_ref.shape
    M = NB * H * W
    Wp = pad_scr.shape[2]

    scale = scale_ref[...]   # (1, Cp)
    shift = shift_ref[...]   # (1, Cp)
    alpha = alpha_ref[...]   # (1, Cp)

    # Zero only the halo border / padding columns; the (H, W) interior is
    # always fully overwritten below.  Re-done every grid step so it stays
    # correct if the batch axis is sharded across TensorCores.
    zrow = jnp.zeros((NB, 1, Wp, Cp), pad_scr.dtype)
    pad_scr[:, 0:1, :, :] = zrow
    pad_scr[:, H + 1:H + 2, :, :] = zrow
    pad_scr[:, :, 0:1, :] = jnp.zeros((NB, H + 2, 1, Cp), pad_scr.dtype)
    pad_scr[:, :, W + 1:Wp, :] = jnp.zeros((NB, H + 2, Wp - W - 1, Cp),
                                           pad_scr.dtype)

    # Interior <- input activation (single f32 -> bf16 cast).
    pad_scr[:, 1:H + 1, 1:W + 1, :] = x_ref[...].astype(pad_scr.dtype)

    def conv():
        # im2col: tap k writes its (M, Cp) patch into the lane-aligned column
        # block [k*Cp, (k+1)*Cp), then one big MXU matmul with K = 9*Cp.
        for k in range(9):
            dy, dx = k // 3, k % 3
            patch = pad_scr[:, dy:dy + H, dx:dx + W, :]        # bf16
            col_scr[:, k * Cp:(k + 1) * Cp] = patch.reshape(M, Cp)
        return jnp.dot(col_scr[...], w_ref[...],
                       preferred_element_type=jnp.float32)

    # ---------- conv1 + BN(+bias) + PReLU ----------
    y = conv() * scale + shift
    y = jnp.where(y > 0, y, alpha * y)
    pad_scr[:, 1:H + 1, 1:W + 1, :] = y.reshape(NB, H, W, Cp).astype(pad_scr.dtype)

    # ---------- conv2 + BN(+bias) + residual ----------
    z = conv() * scale + shift
    # Residual re-reads x_ref here (instead of holding it live across both
    # convs); the load hides under the second matmul.
    out_ref[...] = z.reshape(NB, H, W, Cp) + x_ref[...]


def basic_block_forward(x_nchw, w_oihw, bias, gamma, beta, run_mean, run_var,
                        eps=1e-5, prelu_alpha=0.25):
    """Runs the BasicBlock forward. x_nchw: (N, C, H, W) float32."""
    N, C, H, W = x_nchw.shape
    Cp = ((C + 127) // 128) * 128            # lane-dense channel count
    Wp = ((W + 2 + 7) // 8) * 8              # tile-exact padded width (sublane dim)
    vmem_budget = 48 << 20                   # <= v7x 64 MiB physical, > v5e/v6e scoped defaults

    # Images per grid step: target M = NB*H*W ~ 1024, bounded by the batch,
    # the VMEM budget, and keeping the "parallel" grid axis length >= 2 so
    # both v7x TensorCores get work when the batch allows.
    NB = max(1, min(N, 1024 // (H * W)))
    if N >= 2 and pl.cdiv(N, NB) < 2:
        NB = pl.cdiv(N, 2)

    def step_vmem_bytes(nb):
        m = nb * H * W
        return (2 * 2 * m * Cp * 4              # x + out blocks, double-buffered f32
                + nb * (H + 2) * Wp * Cp * 2    # padded-activation scratch (bf16)
                + m * 9 * Cp * 2                # im2col scratch (bf16)
                + 2 * 9 * Cp * Cp * 2)          # weights, double-buffered bf16

    while NB > 1 and step_vmem_bytes(NB) > vmem_budget:
        NB -= 1
    # TODO(synk): if even NB=1 overflows the budget (large H*W), strip-tile H
    # with a 1-row halo (manual DMA) instead of blocking whole images.

    Np = pl.cdiv(N, NB) * NB                 # pad batch to a multiple of NB

    # ---- glue: layout change + parameter folding (plain JAX) ----
    x = jnp.transpose(x_nchw, (0, 2, 3, 1)).astype(jnp.float32)     # N, H, W, C
    x = jnp.pad(x, ((0, Np - N), (0, 0), (0, 0), (0, Cp - C)))

    # PyTorch conv weight (Cout, Cin, 3, 3) -> (3, 3, Cin, Cout) -> (9*Cp, Cp)
    w_k = jnp.transpose(w_oihw, (2, 3, 1, 0))
    w_k = jnp.pad(w_k, ((0, 0), (0, 0), (0, Cp - C), (0, Cp - C)))
    w_k = w_k.reshape(9 * Cp, Cp).astype(jnp.bfloat16)

    pad1 = (0, Cp - C)
    gamma_p = jnp.pad(gamma, pad1)
    beta_p = jnp.pad(beta, pad1)
    mean_p = jnp.pad(run_mean, pad1)
    var_p = jnp.pad(run_var, pad1, constant_values=1.0)
    bias_p = jnp.pad(bias, pad1)

    scale = gamma_p / jnp.sqrt(var_p + eps)
    shift = beta_p - mean_p * scale + bias_p * scale   # conv bias folded into BN shift
    alpha_vec = jnp.full((Cp,), prelu_alpha, jnp.float32)

    # Note: the constant-index operands (weights / scale / shift / alpha) get
    # the default double-buffering; at Cp=128 the duplicated VMEM is ~0.3 MiB
    # and not worth a pipeline_mode override.
    out = pl.pallas_call(
        basic_block_kernel,
        out_shape=jax.ShapeDtypeStruct((Np, H, W, Cp), jnp.float32),
        grid=(Np // NB,),
        in_specs=[
            pl.BlockSpec((NB, H, W, Cp), lambda n: (n, 0, 0, 0)),   # x
            pl.BlockSpec((9 * Cp, Cp), lambda n: (0, 0)),           # im2col weights
            pl.BlockSpec((1, Cp), lambda n: (0, 0)),                # bn scale
            pl.BlockSpec((1, Cp), lambda n: (0, 0)),                # bn shift (+bias)
            pl.BlockSpec((1, Cp), lambda n: (0, 0)),                # prelu alpha
        ],
        out_specs=pl.BlockSpec((NB, H, W, Cp), lambda n: (n, 0, 0, 0)),
        scratch_shapes=[
            pltpu.VMEM((NB, H + 2, Wp, Cp), jnp.bfloat16),          # padded activation
            pltpu.VMEM((NB * H * W, 9 * Cp), jnp.bfloat16),         # im2col buffer
        ],
        compiler_params=pltpu.CompilerParams(
            dimension_semantics=("parallel",),
            vmem_limit_bytes=vmem_budget),
    )(x, w_k, scale[None, :], shift[None, :], alpha_vec[None, :])

    out = out[:N, :, :, :C]
    return jnp.transpose(out, (0, 3, 1, 2))                          # back to NCHW


def basic_block_reference(x_nchw, w_oihw, bias, gamma, beta, run_mean, run_var,
                          eps=1e-5, prelu_alpha=0.25):
    """Pure-JAX reference of the same (repaired) forward semantics (bf16 matmul inputs)."""
    scale = gamma / jnp.sqrt(run_var + eps)
    shift = beta - run_mean * scale

    def conv_bn(t):
        y = lax.conv_general_dilated(
            t.astype(jnp.bfloat16), w_oihw.astype(jnp.bfloat16),
            window_strides=(1, 1), padding="SAME",
            dimension_numbers=("NCHW", "OIHW", "NCHW"),
            preferred_element_type=jnp.float32)
        y = y + bias[None, :, None, None]
        return y * scale[None, :, None, None] + shift[None, :, None, None]

    y = conv_bn(x_nchw)
    y = jnp.where(y > 0, y, prelu_alpha * y)
    z = conv_bn(y)
    return z + x_nchw


if __name__ == "__main__":
    N, C, H, W = 2, 64, 8, 8   # planes=64 (module default), small spatial

    key = jax.random.PRNGKey(0)
    k1, k2, k3, k4, k5, k6 = jax.random.split(key, 6)
    x = jax.random.normal(k1, (N, C, H, W), jnp.float32)
    conv_w = jax.random.normal(k2, (C, C, 3, 3), jnp.float32) * 0.05
    conv_b = jax.random.normal(k3, (C,), jnp.float32) * 0.1
    bn_gamma = 1.0 + 0.1 * jax.random.normal(k4, (C,), jnp.float32)
    bn_beta = 0.1 * jax.random.normal(k5, (C,), jnp.float32)
    bn_mean = 0.1 * jax.random.normal(k6, (C,), jnp.float32)
    bn_var = jnp.linspace(0.5, 1.5, C).astype(jnp.float32)

    out = basic_block_forward(x, conv_w, conv_b, bn_gamma, bn_beta,
                              bn_mean, bn_var)
    out = jax.block_until_ready(out)

    ref = basic_block_reference(x, conv_w, conv_b, bn_gamma, bn_beta,
                                bn_mean, bn_var)
    ref = jax.block_until_ready(ref)

    assert out.shape == (N, C, H, W) and out.dtype == jnp.float32
    err = jnp.max(jnp.abs(out - ref))
    if not bool(err < 5e-3):
        raise AssertionError(f"mismatch vs reference, max abs err = {err}")

    print("KERNEL_OK")
</pallas_src>

<mosaic_0001>
module attributes {stable_mosaic.version = 11 : i64} {
  func.func @basic_block_kernel(%arg0: i32, %arg1: memref<1x8x8x128xf32, #tpu.memory_space<vmem>>, %arg2: memref<1152x128xbf16, #tpu.memory_space<vmem>>, %arg3: memref<1x128xf32, #tpu.memory_space<vmem>>, %arg4: memref<1x128xf32, #tpu.memory_space<vmem>>, %arg5: memref<1x128xf32, #tpu.memory_space<vmem>>, %arg6: memref<1x8x8x128xf32, #tpu.memory_space<vmem>>, %arg7: memref<1x10x16x128xbf16, #tpu.memory_space<vmem>>, %arg8: memref<64x1152xbf16, #tpu.memory_space<vmem>>) attributes {dimension_semantics = [#tpu.dimension_semantics<parallel>], iteration_bounds = array<i64: 2>, scalar_prefetch = 0 : i64, scratch_operands = 2 : i64, tpu.core_type = #tpu.core_type<tc>, window_params = [{transform_indices = @transform_0, window_bounds = array<i64: 1, 8, 8, 128>}, {pipeline_mode = #tpu.pipeline_mode<synchronous>, transform_indices = @transform_1, window_bounds = array<i64: 1152, 128>}, {pipeline_mode = #tpu.pipeline_mode<synchronous>, transform_indices = @transform_2, window_bounds = array<i64: 1, 128>}, {pipeline_mode = #tpu.pipeline_mode<synchronous>, transform_indices = @transform_3, window_bounds = array<i64: 1, 128>}, {pipeline_mode = #tpu.pipeline_mode<synchronous>, transform_indices = @transform_4, window_bounds = array<i64: 1, 128>}, {transform_indices = @transform_5, window_bounds = array<i64: 1, 8, 8, 128>}]} {
    %c0 = arith.constant 0 : index
    %c0_0 = arith.constant 0 : index
    %0 = vector.load %arg3[%c0, %c0_0] : memref<1x128xf32, #tpu.memory_space<vmem>>, vector<1x128xf32>
    %c0_1 = arith.constant 0 : index
    %c0_2 = arith.constant 0 : index
    %1 = vector.load %arg4[%c0_1, %c0_2] : memref<1x128xf32, #tpu.memory_space<vmem>>, vector<1x128xf32>
    %c0_3 = arith.constant 0 : index
    %c0_4 = arith.constant 0 : index
    %2 = vector.load %arg5[%c0_3, %c0_4] : memref<1x128xf32, #tpu.memory_space<vmem>>, vector<1x128xf32>
    %cst = arith.constant 0.000000e+00 : bf16
    %3 = vector.broadcast %cst : bf16 to vector<1x1x16x128xbf16>
    %c0_5 = arith.constant 0 : index
    %c0_6 = arith.constant 0 : index
    %c0_7 = arith.constant 0 : index
    %c0_8 = arith.constant 0 : index
    %4 = vector.load %arg7[%c0_5, %c0_6, %c0_7, %c0_8] : memref<1x10x16x128xbf16, #tpu.memory_space<vmem>>, vector<1x1x16x128xbf16>
    tpu.vector_store %arg7[%c0_5, %c0_6, %c0_7, %c0_8], %3 {strides = array<i32>} : memref<1x10x16x128xbf16, #tpu.memory_space<vmem>>, vector<1x1x16x128xbf16>,
    %c0_9 = arith.constant 0 : index
    %c9 = arith.constant 9 : index
    %c0_10 = arith.constant 0 : index
    %c0_11 = arith.constant 0 : index
    %5 = vector.load %arg7[%c0_9, %c9, %c0_10, %c0_11] : memref<1x10x16x128xbf16, #tpu.memory_space<vmem>>, vector<1x1x16x128xbf16>
    tpu.vector_store %arg7[%c0_9, %c9, %c0_10, %c0_11], %3 {strides = array<i32>} : memref<1x10x16x128xbf16, #tpu.memory_space<vmem>>, vector<1x1x16x128xbf16>,
    %cst_12 = arith.constant 0.000000e+00 : bf16
    %6 = vector.broadcast %cst_12 : bf16 to vector<1x10x1x128xbf16>
    %c0_13 = arith.constant 0 : index
    %c0_14 = arith.constant 0 : index
    %c0_15 = arith.constant 0 : index
    %c0_16 = arith.constant 0 : index
    %7 = vector.load %arg7[%c0_13, %c0_14, %c0_15, %c0_16] : memref<1x10x16x128xbf16, #tpu.memory_space<vmem>>, vector<1x10x1x128xbf16>
    tpu.vector_store %arg7[%c0_13, %c0_14, %c0_15, %c0_16], %6 {strides = array<i32>} : memref<1x10x16x128xbf16, #tpu.memory_space<vmem>>, vector<1x10x1x128xbf16>,
    %cst_17 = arith.constant 0.000000e+00 : bf16
    %8 = vector.broadcast %cst_17 : bf16 to vector<1x10x7x128xbf16>
    %c0_18 = arith.constant 0 : index
    %c0_19 = arith.constant 0 : index
    %c9_20 = arith.constant 9 : index
    %c0_21 = arith.constant 0 : index
    %9 = vector.load %arg7[%c0_18, %c0_19, %c9_20, %c0_21] : memref<1x10x16x128xbf16, #tpu.memory_space<vmem>>, vector<1x10x7x128xbf16>
    tpu.vector_store %arg7[%c0_18, %c0_19, %c9_20, %c0_21], %8 {strides = array<i32>} : memref<1x10x16x128xbf16, #tpu.memory_space<vmem>>, vector<1x10x7x128xbf16>,
    %c0_22 = arith.constant 0 : index
    %c0_23 = arith.constant 0 : index
    %c0_24 = arith.constant 0 : index
    %c0_25 = arith.constant 0 : index
    %10 = vector.load %arg1[%c0_22, %c0_23, %c0_24, %c0_25] : memref<1x8x8x128xf32, #tpu.memory_space<vmem>>, vector<1x8x8x128xf32>
    %11 = arith.truncf %10 : vector<1x8x8x128xf32> to vector<1x8x8x128xbf16>
    %c0_26 = arith.constant 0 : index
    %c1 = arith.constant 1 : index
    %c1_27 = arith.constant 1 : index
    %c0_28 = arith.constant 0 : index
    %12 = vector.load %arg7[%c0_26, %c1, %c1_27, %c0_28] : memref<1x10x16x128xbf16, #tpu.memory_space<vmem>>, vector<1x8x8x128xbf16>
    tpu.vector_store %arg7[%c0_26, %c1, %c1_27, %c0_28], %11 {strides = array<i32>} : memref<1x10x16x128xbf16, #tpu.memory_space<vmem>>, vector<1x8x8x128xbf16>,
    %c0_29 = arith.constant 0 : index
    %c0_30 = arith.constant 0 : index
    %c0_31 = arith.constant 0 : index
    %c0_32 = arith.constant 0 : index
    %13 = vector.load %arg7[%c0_29, %c0_30, %c0_31, %c0_32] : memref<1x10x16x128xbf16, #tpu.memory_space<vmem>>, vector<1x8x8x128xbf16>
    %14 = vector.shape_cast %13 : vector<1x8x8x128xbf16> to vector<64x128xbf16>
    %c0_33 = arith.constant 0 : index
    %c0_34 = arith.constant 0 : index
    %15 = vector.load %arg8[%c0_33, %c0_34] : memref<64x1152xbf16, #tpu.memory_space<vmem>>, vector<64x128xbf16>
    tpu.vector_store %arg8[%c0_33, %c0_34], %14 {strides = array<i32>} : memref<64x1152xbf16, #tpu.memory_space<vmem>>, vector<64x128xbf16>,
    %c0_35 = arith.constant 0 : index
    %c0_36 = arith.constant 0 : index
    %c1_37 = arith.constant 1 : index
    %c0_38 = arith.constant 0 : index
    %16 = vector.load %arg7[%c0_35, %c0_36, %c1_37, %c0_38] : memref<1x10x16x128xbf16, #tpu.memory_space<vmem>>, vector<1x8x8x128xbf16>
    %17 = vector.shape_cast %16 : vector<1x8x8x128xbf16> to vector<64x128xbf16>
    %c0_39 = arith.constant 0 : index
    %c128 = arith.constant 128 : index
    %18 = vector.load %arg8[%c0_39, %c128] : memref<64x1152xbf16, #tpu.memory_space<vmem>>, vector<64x128xbf16>
    tpu.vector_store %arg8[%c0_39, %c128], %17 {strides = array<i32>} : memref<64x1152xbf16, #tpu.memory_space<vmem>>, vector<64x128xbf16>,
    %c0_40 = arith.constant 0 : index
    %c0_41 = arith.constant 0 : index
    %c2 = arith.constant 2 : index
    %c0_42 = arith.constant 0 : index
    %19 = vector.load %arg7[%c0_40, %c0_41, %c2, %c0_42] : memref<1x10x16x128xbf16, #tpu.memory_space<vmem>>, vector<1x8x8x128xbf16>
    %20 = vector.shape_cast %19 : vector<1x8x8x128xbf16> to vector<64x128xbf16>
    %c0_43 = arith.constant 0 : index
    %c256 = arith.constant 256 : index
    %21 = vector.load %arg8[%c0_43, %c256] : memref<64x1152xbf16, #tpu.memory_space<vmem>>, vector<64x128xbf16>
    tpu.vector_store %arg8[%c0_43, %c256], %20 {strides = array<i32>} : memref<64x1152xbf16, #tpu.memory_space<vmem>>, vector<64x128xbf16>,
    %c0_44 = arith.constant 0 : index
    %c1_45 = arith.constant 1 : index
    %c0_46 = arith.constant 0 : index
    %c0_47 = arith.constant 0 : index
    %22 = vector.load %arg7[%c0_44, %c1_45, %c0_46, %c0_47] : memref<1x10x16x128xbf16, #tpu.memory_space<vmem>>, vector<1x8x8x128xbf16>
    %23 = vector.shape_cast %22 : vector<1x8x8x128xbf16> to vector<64x128xbf16>
    %c0_48 = arith.constant 0 : index
    %c384 = arith.constant 384 : index
    %24 = vector.load %arg8[%c0_48, %c384] : memref<64x1152xbf16, #tpu.memory_space<vmem>>, vector<64x128xbf16>
    tpu.vector_store %arg8[%c0_48, %c384], %23 {strides = array<i32>} : memref<64x1152xbf16, #tpu.memory_space<vmem>>, vector<64x128xbf16>,
    %c0_49 = arith.constant 0 : index
    %c1_50 = arith.constant 1 : index
    %c1_51 = arith.constant 1 : index
    %c0_52 = arith.constant 0 : index
    %25 = vector.load %arg7[%c0_49, %c1_50, %c1_51, %c0_52] : memref<1x10x16x128xbf16, #tpu.memory_space<vmem>>, vector<1x8x8x128xbf16>
    %26 = vector.shape_cast %25 : vector<1x8x8x128xbf16> to vector<64x128xbf16>
    %c0_53 = arith.constant 0 : index
    %c512 = arith.constant 512 : index
    %27 = vector.load %arg8[%c0_53, %c512] : memref<64x1152xbf16, #tpu.memory_space<vmem>>, vector<64x128xbf16>
    tpu.vector_store %arg8[%c0_53, %c512], %26 {strides = array<i32>} : memref<64x1152xbf16, #tpu.memory_space<vmem>>, vector<64x128xbf16>,
    %c0_54 = arith.constant 0 : index
    %c1_55 = arith.constant 1 : index
    %c2_56 = arith.constant 2 : index
    %c0_57 = arith.constant 0 : index
    %28 = vector.load %arg7[%c0_54, %c1_55, %c2_56, %c0_57] : memref<1x10x16x128xbf16, #tpu.memory_space<vmem>>, vector<1x8x8x128xbf16>
    %29 = vector.shape_cast %28 : vector<1x8x8x128xbf16> to vector<64x128xbf16>
    %c0_58 = arith.constant 0 : index
    %c640 = arith.constant 640 : index
    %30 = vector.load %arg8[%c0_58, %c640] : memref<64x1152xbf16, #tpu.memory_space<vmem>>, vector<64x128xbf16>
    tpu.vector_store %arg8[%c0_58, %c640], %29 {strides = array<i32>} : memref<64x1152xbf16, #tpu.memory_space<vmem>>, vector<64x128xbf16>,
    %c0_59 = arith.constant 0 : index
    %c2_60 = arith.constant 2 : index
    %c0_61 = arith.constant 0 : index
    %c0_62 = arith.constant 0 : index
    %31 = vector.load %arg7[%c0_59, %c2_60, %c0_61, %c0_62] : memref<1x10x16x128xbf16, #tpu.memory_space<vmem>>, vector<1x8x8x128xbf16>
    %32 = vector.shape_cast %31 : vector<1x8x8x128xbf16> to vector<64x128xbf16>
    %c0_63 = arith.constant 0 : index
    %c768 = arith.constant 768 : index
    %33 = vector.load %arg8[%c0_63, %c768] : memref<64x1152xbf16, #tpu.memory_space<vmem>>, vector<64x128xbf16>
    tpu.vector_store %arg8[%c0_63, %c768], %32 {strides = array<i32>} : memref<64x1152xbf16, #tpu.memory_space<vmem>>, vector<64x128xbf16>,
    %c0_64 = arith.constant 0 : index
    %c2_65 = arith.constant 2 : index
    %c1_66 = arith.constant 1 : index
    %c0_67 = arith.constant 0 : index
    %34 = vector.load %arg7[%c0_64, %c2_65, %c1_66, %c0_67] : memref<1x10x16x128xbf16, #tpu.memory_space<vmem>>, vector<1x8x8x128xbf16>
    %35 = vector.shape_cast %34 : vector<1x8x8x128xbf16> to vector<64x128xbf16>
    %c0_68 = arith.constant 0 : index
    %c896 = arith.constant 896 : index
    %36 = vector.load %arg8[%c0_68, %c896] : memref<64x1152xbf16, #tpu.memory_space<vmem>>, vector<64x128xbf16>
    tpu.vector_store %arg8[%c0_68, %c896], %35 {strides = array<i32>} : memref<64x1152xbf16, #tpu.memory_space<vmem>>, vector<64x128xbf16>,
    %c0_69 = arith.constant 0 : index
    %c2_70 = arith.constant 2 : index
    %c2_71 = arith.constant 2 : index
    %c0_72 = arith.constant 0 : index
    %37 = vector.load %arg7[%c0_69, %c2_70, %c2_71, %c0_72] : memref<1x10x16x128xbf16, #tpu.memory_space<vmem>>, vector<1x8x8x128xbf16>
    %38 = vector.shape_cast %37 : vector<1x8x8x128xbf16> to vector<64x128xbf16>
    %c0_73 = arith.constant 0 : index
    %c1024 = arith.constant 1024 : index
    %39 = vector.load %arg8[%c0_73, %c1024] : memref<64x1152xbf16, #tpu.memory_space<vmem>>, vector<64x128xbf16>
    tpu.vector_store %arg8[%c0_73, %c1024], %38 {strides = array<i32>} : memref<64x1152xbf16, #tpu.memory_space<vmem>>, vector<64x128xbf16>,
    %c0_74 = arith.constant 0 : index
    %c0_75 = arith.constant 0 : index
    %40 = vector.load %arg8[%c0_74, %c0_75] : memref<64x1152xbf16, #tpu.memory_space<vmem>>, vector<64x1152xbf16>
    %c0_76 = arith.constant 0 : index
    %c0_77 = arith.constant 0 : index
    %41 = vector.load %arg2[%c0_76, %c0_77] : memref<1152x128xbf16, #tpu.memory_space<vmem>>, vector<1152x128xbf16>
    %cst_78 = arith.constant dense<0.000000e+00> : vector<64x128xf32>
    %42 = tpu.matmul %40, %41, %cst_78 {dimension_numbers = #tpu.dot_dimension_numbers<[1], [0], [0], [1], [0, 0, 1, 1], [], []>} : vector<64x1152xbf16>, vector<1152x128xbf16>, vector<64x128xf32> -> vector<64x128xf32>
    %43 = vector.broadcast %0 : vector<1x128xf32> to vector<64x128xf32>
    %44 = arith.mulf %42, %43 : vector<64x128xf32>
    %45 = vector.broadcast %1 : vector<1x128xf32> to vector<64x128xf32>
    %46 = arith.addf %44, %45 : vector<64x128xf32>
    %cst_79 = arith.constant 0.000000e+00 : f32
    %47 = vector.broadcast %cst_79 : f32 to vector<64x128xf32>
    %48 = arith.cmpf ogt, %46, %47 : vector<64x128xf32>
    %49 = vector.broadcast %2 : vector<1x128xf32> to vector<64x128xf32>
    %50 = arith.mulf %49, %46 : vector<64x128xf32>
    %51 = arith.select %48, %46, %50 : vector<64x128xi1>, vector<64x128xf32>
    %52 = vector.shape_cast %51 : vector<64x128xf32> to vector<1x8x8x128xf32>
    %53 = arith.truncf %52 : vector<1x8x8x128xf32> to vector<1x8x8x128xbf16>
    %c0_80 = arith.constant 0 : index
    %c1_81 = arith.constant 1 : index
    %c1_82 = arith.constant 1 : index
    %c0_83 = arith.constant 0 : index
    %54 = vector.load %arg7[%c0_80, %c1_81, %c1_82, %c0_83] : memref<1x10x16x128xbf16, #tpu.memory_space<vmem>>, vector<1x8x8x128xbf16>
    tpu.vector_store %arg7[%c0_80, %c1_81, %c1_82, %c0_83], %53 {strides = array<i32>} : memref<1x10x16x128xbf16, #tpu.memory_space<vmem>>, vector<1x8x8x128xbf16>,
    %c0_84 = arith.constant 0 : index
    %c0_85 = arith.constant 0 : index
    %c0_86 = arith.constant 0 : index
    %c0_87 = arith.constant 0 : index
    %55 = vector.load %arg7[%c0_84, %c0_85, %c0_86, %c0_87] : memref<1x10x16x128xbf16, #tpu.memory_space<vmem>>, vector<1x8x8x128xbf16>
    %56 = vector.shape_cast %55 : vector<1x8x8x128xbf16> to vector<64x128xbf16>
    %c0_88 = arith.constant 0 : index
    %c0_89 = arith.constant 0 : index
    %57 = vector.load %arg8[%c0_88, %c0_89] : memref<64x1152xbf16, #tpu.memory_space<vmem>>, vector<64x128xbf16>
    tpu.vector_store %arg8[%c0_88, %c0_89], %56 {strides = array<i32>} : memref<64x1152xbf16, #tpu.memory_space<vmem>>, vector<64x128xbf16>,
    %c0_90 = arith.constant 0 : index
    %c0_91 = arith.constant 0 : index
    %c1_92 = arith.constant 1 : index
    %c0_93 = arith.constant 0 : index
    %58 = vector.load %arg7[%c0_90, %c0_91, %c1_92, %c0_93] : memref<1x10x16x128xbf16, #tpu.memory_space<vmem>>, vector<1x8x8x128xbf16>
    %59 = vector.shape_cast %58 : vector<1x8x8x128xbf16> to vector<64x128xbf16>
    %c0_94 = arith.constant 0 : index
    %c128_95 = arith.constant 128 : index
    %60 = vector.load %arg8[%c0_94, %c128_95] : memref<64x1152xbf16, #tpu.memory_space<vmem>>, vector<64x128xbf16>
    tpu.vector_store %arg8[%c0_94, %c128_95], %59 {strides = array<i32>} : memref<64x1152xbf16, #tpu.memory_space<vmem>>, vector<64x128xbf16>,
    %c0_96 = arith.constant 0 : index
    %c0_97 = arith.constant 0 : index
    %c2_98 = arith.constant 2 : index
    %c0_99 = arith.constant 0 : index
    %61 = vector.load %arg7[%c0_96, %c0_97, %c2_98, %c0_99] : memref<1x10x16x128xbf16, #tpu.memory_space<vmem>>, vector<1x8x8x128xbf16>
    %62 = vector.shape_cast %61 : vector<1x8x8x128xbf16> to vector<64x128xbf16>
    %c0_100 = arith.constant 0 : index
    %c256_101 = arith.constant 256 : index
    %63 = vector.load %arg8[%c0_100, %c256_101] : memref<64x1152xbf16, #tpu.memory_space<vmem>>, vector<64x128xbf16>
    tpu.vector_store %arg8[%c0_100, %c256_101], %62 {strides = array<i32>} : memref<64x1152xbf16, #tpu.memory_space<vmem>>, vector<64x128xbf16>,
    %c0_102 = arith.constant 0 : index
    %c1_103 = arith.constant 1 : index
    %c0_104 = arith.constant 0 : index
    %c0_105 = arith.constant 0 : index
    %64 = vector.load %arg7[%c0_102, %c1_103, %c0_104, %c0_105] : memref<1x10x16x128xbf16, #tpu.memory_space<vmem>>, vector<1x8x8x128xbf16>
    %65 = vector.shape_cast %64 : vector<1x8x8x128xbf16> to vector<64x128xbf16>
    %c0_106 = arith.constant 0 : index
    %c384_107 = arith.constant 384 : index
    %66 = vector.load %arg8[%c0_106, %c384_107] : memref<64x1152xbf16, #tpu.memory_space<vmem>>, vector<64x128xbf16>
    tpu.vector_store %arg8[%c0_106, %c384_107], %65 {strides = array<i32>} : memref<64x1152xbf16, #tpu.memory_space<vmem>>, vector<64x128xbf16>,
    %c0_108 = arith.constant 0 : index
    %c1_109 = arith.constant 1 : index
    %c1_110 = arith.constant 1 : index
    %c0_111 = arith.constant 0 : index
    %67 = vector.load %arg7[%c0_108, %c1_109, %c1_110, %c0_111] : memref<1x10x16x128xbf16, #tpu.memory_space<vmem>>, vector<1x8x8x128xbf16>
    %68 = vector.shape_cast %67 : vector<1x8x8x128xbf16> to vector<64x128xbf16>
    %c0_112 = arith.constant 0 : index
    %c512_113 = arith.constant 512 : index
    %69 = vector.load %arg8[%c0_112, %c512_113] : memref<64x1152xbf16, #tpu.memory_space<vmem>>, vector<64x128xbf16>
    tpu.vector_store %arg8[%c0_112, %c512_113], %68 {strides = array<i32>} : memref<64x1152xbf16, #tpu.memory_space<vmem>>, vector<64x128xbf16>,
    %c0_114 = arith.constant 0 : index
    %c1_115 = arith.constant 1 : index
    %c2_116 = arith.constant 2 : index
    %c0_117 = arith.constant 0 : index
    %70 = vector.load %arg7[%c0_114, %c1_115, %c2_116, %c0_117] : memref<1x10x16x128xbf16, #tpu.memory_space<vmem>>, vector<1x8x8x128xbf16>
    %71 = vector.shape_cast %70 : vector<1x8x8x128xbf16> to vector<64x128xbf16>
    %c0_118 = arith.constant 0 : index
    %c640_119 = arith.constant 640 : index
    %72 = vector.load %arg8[%c0_118, %c640_119] : memref<64x1152xbf16, #tpu.memory_space<vmem>>, vector<64x128xbf16>
    tpu.vector_store %arg8[%c0_118, %c640_119], %71 {strides = array<i32>} : memref<64x1152xbf16, #tpu.memory_space<vmem>>, vector<64x128xbf16>,
    %c0_120 = arith.constant 0 : index
    %c2_121 = arith.constant 2 : index
    %c0_122 = arith.constant 0 : index
    %c0_123 = arith.constant 0 : index
    %73 = vector.load %arg7[%c0_120, %c2_121, %c0_122, %c0_123] : memref<1x10x16x128xbf16, #tpu.memory_space<vmem>>, vector<1x8x8x128xbf16>
    %74 = vector.shape_cast %73 : vector<1x8x8x128xbf16> to vector<64x128xbf16>
    %c0_124 = arith.constant 0 : index
    %c768_125 = arith.constant 768 : index
    %75 = vector.load %arg8[%c0_124, %c768_125] : memref<64x1152xbf16, #tpu.memory_space<vmem>>, vector<64x128xbf16>
    tpu.vector_store %arg8[%c0_124, %c768_125], %74 {strides = array<i32>} : memref<64x1152xbf16, #tpu.memory_space<vmem>>, vector<64x128xbf16>,
    %c0_126 = arith.constant 0 : index
    %c2_127 = arith.constant 2 : index
    %c1_128 = arith.constant 1 : index
    %c0_129 = arith.constant 0 : index
    %76 = vector.load %arg7[%c0_126, %c2_127, %c1_128, %c0_129] : memref<1x10x16x128xbf16, #tpu.memory_space<vmem>>, vector<1x8x8x128xbf16>
    %77 = vector.shape_cast %76 : vector<1x8x8x128xbf16> to vector<64x128xbf16>
    %c0_130 = arith.constant 0 : index
    %c896_131 = arith.constant 896 : index
    %78 = vector.load %arg8[%c0_130, %c896_131] : memref<64x1152xbf16, #tpu.memory_space<vmem>>, vector<64x128xbf16>
    tpu.vector_store %arg8[%c0_130, %c896_131], %77 {strides = array<i32>} : memref<64x1152xbf16, #tpu.memory_space<vmem>>, vector<64x128xbf16>,
    %c0_132 = arith.constant 0 : index
    %c2_133 = arith.constant 2 : index
    %c2_134 = arith.constant 2 : index
    %c0_135 = arith.constant 0 : index
    %79 = vector.load %arg7[%c0_132, %c2_133, %c2_134, %c0_135] : memref<1x10x16x128xbf16, #tpu.memory_space<vmem>>, vector<1x8x8x128xbf16>
    %80 = vector.shape_cast %79 : vector<1x8x8x128xbf16> to vector<64x128xbf16>
    %c0_136 = arith.constant 0 : index
    %c1024_137 = arith.constant 1024 : index
    %81 = vector.load %arg8[%c0_136, %c1024_137] : memref<64x1152xbf16, #tpu.memory_space<vmem>>, vector<64x128xbf16>
    tpu.vector_store %arg8[%c0_136, %c1024_137], %80 {strides = array<i32>} : memref<64x1152xbf16, #tpu.memory_space<vmem>>, vector<64x128xbf16>,
    %c0_138 = arith.constant 0 : index
    %c0_139 = arith.constant 0 : index
    %82 = vector.load %arg8[%c0_138, %c0_139] : memref<64x1152xbf16, #tpu.memory_space<vmem>>, vector<64x1152xbf16>
    %c0_140 = arith.constant 0 : index
    %c0_141 = arith.constant 0 : index
    %83 = vector.load %arg2[%c0_140, %c0_141] : memref<1152x128xbf16, #tpu.memory_space<vmem>>, vector<1152x128xbf16>
    %cst_142 = arith.constant dense<0.000000e+00> : vector<64x128xf32>
    %84 = tpu.matmul %82, %83, %cst_142 {dimension_numbers = #tpu.dot_dimension_numbers<[1], [0], [0], [1], [0, 0, 1, 1], [], []>} : vector<64x1152xbf16>, vector<1152x128xbf16>, vector<64x128xf32> -> vector<64x128xf32>
    %85 = vector.broadcast %0 : vector<1x128xf32> to vector<64x128xf32>
    %86 = arith.mulf %84, %85 : vector<64x128xf32>
    %87 = vector.broadcast %1 : vector<1x128xf32> to vector<64x128xf32>
    %88 = arith.addf %86, %87 : vector<64x128xf32>
    %89 = vector.shape_cast %88 : vector<64x128xf32> to vector<1x8x8x128xf32>
    %c0_143 = arith.constant 0 : index
    %c0_144 = arith.constant 0 : index
    %c0_145 = arith.constant 0 : index
    %c0_146 = arith.constant 0 : index
    %90 = vector.load %arg1[%c0_143, %c0_144, %c0_145, %c0_146] : memref<1x8x8x128xf32, #tpu.memory_space<vmem>>, vector<1x8x8x128xf32>
    %91 = arith.addf %89, %90 : vector<1x8x8x128xf32>
    %c0_147 = arith.constant 0 : index
    %c0_148 = arith.constant 0 : index
    %c0_149 = arith.constant 0 : index
    %c0_150 = arith.constant 0 : index
    %92 = vector.load %arg6[%c0_147, %c0_148, %c0_149, %c0_150] : memref<1x8x8x128xf32, #tpu.memory_space<vmem>>, vector<1x8x8x128xf32>
    tpu.vector_store %arg6[%c0_147, %c0_148, %c0_149, %c0_150], %91 {strides = array<i32>} : memref<1x8x8x128xf32, #tpu.memory_space<vmem>>, vector<1x8x8x128xf32>,
    return
  }
  func.func @transform_0(%arg0: i32) -> (i32, i32, i32, i32) {
    %c0_i32 = arith.constant 0 : i32
    %c0_i32_0 = arith.constant 0 : i32
    %c0_i32_1 = arith.constant 0 : i32
    %c0_i32_2 = arith.constant 0 : i32
    return %arg0, %c0_i32, %c0_i32_0, %c0_i32_1 : i32, i32, i32, i32
  }
  func.func @transform_1(%arg0: i32) -> (i32, i32) {
    %c0_i32 = arith.constant 0 : i32
    %c0_i32_0 = arith.constant 0 : i32
    %c0_i32_1 = arith.constant 0 : i32
    return %c0_i32, %c0_i32_0 : i32, i32
  }
  func.func @transform_2(%arg0: i32) -> (i32, i32) {
    %c0_i32 = arith.constant 0 : i32
    %c0_i32_0 = arith.constant 0 : i32
    %c0_i32_1 = arith.constant 0 : i32
    return %c0_i32, %c0_i32_0 : i32, i32
  }
  func.func @transform_3(%arg0: i32) -> (i32, i32) {
    %c0_i32 = arith.constant 0 : i32
    %c0_i32_0 = arith.constant 0 : i32
    %c0_i32_1 = arith.constant 0 : i32
    return %c0_i32, %c0_i32_0 : i32, i32
  }
  func.func @transform_4(%arg0: i32) -> (i32, i32) {
    %c0_i32 = arith.constant 0 : i32
    %c0_i32_0 = arith.constant 0 : i32
    %c0_i32_1 = arith.constant 0 : i32
    return %c0_i32, %c0_i32_0 : i32, i32
  }
  func.func @transform_5(%arg0: i32) -> (i32, i32, i32, i32) {
    %c0_i32 = arith.constant 0 : i32
    %c0_i32_0 = arith.constant 0 : i32
    %c0_i32_1 = arith.constant 0 : i32
    %c0_i32_2 = arith.constant 0 : i32
    return %arg0, %c0_i32, %c0_i32_0, %c0_i32_1 : i32, i32, i32, i32
  }
}

</mosaic_0001>

<bundles_post_ra>
// kernel: tpu_custom_call.1
= control target key start
LH: loop header
LB: loop body
LE: loop exit
PB: predicated region body
PF: predicated region fallthrough
CT: control target
= control target key end

     0   :  { %10 = vsyncpa [#allocation5], 0  ;;  %s6678_s0 = inlined_call_operand.hbm [shape: f32[2,8,8,128], index: 0, kind: input, shape index: {}]   ;;  %s6679_s1 = inlined_call_operand.hbm [shape: bf16[1152,128], index: 1, kind: input, shape index: {}]   ;;  %s6680_s2 = inlined_call_operand.vmem [shape: f32[1,128], index: 2, kind: input, shape index: {}]   ;;  %s6681_s3 = inlined_call_operand.vmem [shape: f32[1,128], index: 3, kind: input, shape index: {}]   ;;  %s6682_s4 = inlined_call_operand.vmem [shape: f32[1,128], index: 4, kind: input, shape index: {}]   ;;  %s6683_s5 = inlined_call_operand.hbm [shape: f32[2,8,8,128], index: 5, kind: output, shape index: {}]  }
   0x1   :  { %12 = vsyncpa [#allocation5 + $0x1], 0 }
   0x2   :  { %13 = vsyncpa [#allocation8], 0 }
   0x3   :  { %14 = vsyncpa [#allocation6], 0 }
   0x4   :  { %16 = vsyncpa [#allocation6 + $0x1], 0  ;;  %s5972_s18 = smov 0   ;;  %s5974_s19 = smov 0  }
   0x5   :  { %s5976_s20 = smov 0   ;;  %s5978_s21 = smov 0  }
   0x6 LB: > { %s5993_s22 = sadd.s32 4294967295, %s5930_s21   ;;  %s4507_s23 = sadd.s32 4294967294, %s5930_s21   ;;  %s5930_s21 = sphi %s5978_s21, %s6713_s21   ;;  %s5926_s20 = sphi %s5976_s20, %s6712_s20   ;;  %s5922_s19 = sphi %s5974_s19, %s6711_s19   ;;  %s5918_s18 = sphi %s5972_s18, %s6710_s18  }
   0x7   : > { %p42_p0 = scmp.ne.s32.totalorder %s5922_s19, %s5918_s18  ;;  %p6684_p1 = scmp.eq.s32.totalorder %s5993_s22, 0 }
   0x8   : > { %p156_p3 = scmp.eq.s32.totalorder %s4507_s23, 1  ;;  %p4508_p5 = scmp.ge.s32.totalorder %s5930_s21, 1 }
   0x9   : > { %p6002_p4 = por %p6684_p1, %p42_p0  ;;  %p163_p7 = scmp.lt.s32.totalorder %s5930_s21, 3 }
   0xa   : > { %p6007_p6 = por %p156_p3, %p42_p0  ;;  %s5932_s27 = smov [#allocation7]  }
   0xb   : > { %s6687_s24 = scalar_select %p6002_p4, 1, 0 }
   0xc   : > { %s6688_s25 = scalar_select %p6007_p6, 1, 0 }
   0xd   : > { %p6012_p8 = pnand %p4508_p5, %p163_p7  ;;  %s175_s28 = sshll.u32 %s5932_s27, 4  ;;  %s6016_s28 = int_to_ptr.vmem [resolvable:$true] %s175_s28 }
   0xe   : > { %s6028_s30 = sadd.s32 1, %s5930_s21   ;;  %s29_s6 = sadd.s32 1, %s5926_s20 }
   0xf   : > { %s6689_s26 = scalar_select %p6012_p8, 1, 0 }
  0x10   : > { %p5384_p9 = pneg %p6012_p8  ;;  %s26_s7 = ssub.s32 %s5930_s21, %s6028_s30 }
  0x11   : > { %s5802_s10 = scalar_lea.hbm %s6679_s1, 9216 }
  0x12   : > { %p6023_p11 = pnand %p5384_p9, %p6684_p1  ;;  %p5803_p12 = scmp.ne.s32.totalorder %s6679_s1, %s5802_s10 }
  0x13   : > { %p5809_p5 = scmp.lt.u32.totalorder %s5802_s10, %s6679_s1 }
  0x14   : > { %p5804_p13 = pneg %p6023_p11 }
  0x16   : > { %p5805_p0 = pnand %p5804_p13, %p5803_p12 }
  0x18   : > { %p5806_p3 = pneg %p5805_p0 }
  0x1a   : > { %p5811_p7 = pnand %p5809_p5, %p5806_p3 }
  0x1c   : > { %5814 = shalt.err (!%p5811_p7)
}
  0x1d   : > { %s5815_s15 = scalar_lea.vmem %s6016_s28, 9216  ;;  %p5823_p2 = scmp.lt.s32.totalorder %s6016_s28, %s6016_s28 }
  0x1e   : > { %p5816_p9 = scmp.ne.s32.totalorder %s6016_s28, %s5815_s15  ;;  %p5824_p6 = scmp.lt.s32.totalorder %s5815_s15, %s5815_s15 }
  0x20   : > { %p5818_p10 = pnand %p5816_p9, %p5804_p13  ;;  %p5825_p4 = por %p5824_p6, %p5823_p2 }
  0x22   : > { %p5819_p1 = pneg %p5818_p10 }
  0x24   : > { %p5826_p8 = pnand %p5825_p4, %p5819_p1 }
  0x26   : > { %5829 = shalt.err (!%p5826_p8)
}
  0x27   : > { %s5933_s16 = smov 64   ;;  %s5934_s17 = smov 4  }
  0x28   : > { %5387 = dma.hbm_to_vmem [thread:$0]  (!%p6023_p11), %s6679_s1, 9216, %s6016_s28, [#allocation8], %s5933_s16, %s5933_s16, %s5934_s17  }
  0x29   : > { %p27_p2 = scmp.eq.s32.totalorder %s26_s7, 0  ;;  %p36_p1 = scmp.ne.s32.totalorder %s5926_s20, %s5922_s19 }
  0x2a   : > { %p37_p4 = scmp.eq.s32.totalorder %s5930_s21, 0  ;;  %p5397_p6 = scmp.lt.s32.totalorder %s5930_s21, 2 }
  0x2b   : > { %s6059_s8 = scalar_select %p27_p2, %s5926_s20, %s29_s6  }
  0x2c   : > { %p38_p8 = por %p37_p4, %p36_p1  ;;  %p6691_p10 = scmp.eq.s32.totalorder %s5993_s22, 1 }
  0x2d   : > { %s198_s10 = sand.u32 1, %s5926_s20   ;;  %s4982_s11 = sshll.u32 %s5930_s21, 10 }
  0x2e   : > { %p6063_p12 = por %p6691_p10, %p36_p1  ;;  %s4511_s12 = sshll.u32 %s198_s10, 6 }
  0x2f   : > { %s6072_s14 = scalar_lea.hbm %s6678_s0, %s4982_s11  ;;  %s202_s28 = scalar_lea.vmem [#allocation4], %s4511_s12 }
  0x30   : > { %s209_s6 = sshll.u32 %s202_s28, 4  ;;  %p6074_p11 = pnand %p5397_p6, %p38_p8  ;;  %s6078_s6 = int_to_ptr.vmem [resolvable:$true] %s209_s6 }
  0x31   : > { %s6080_s15 = scalar_lea.sflag [#allocation5], %s198_s10  ;;  %s5830_s16 = scalar_lea.hbm %s6072_s14, 1024 }
  0x32   : > { %p5831_p13 = scmp.ne.s32.totalorder %s6072_s14, %s5830_s16  ;;  %p5832_p0 = pneg %p6074_p11 }
  0x33   : > { %s5835_s27 = scalar_lea.hbm %s6678_s0, 2048  ;;  %p5836_p7 = scmp.lt.u32.totalorder %s6072_s14, %s6678_s0 }
  0x34   : > { %p5833_p3 = pnand %p5832_p0, %p5831_p13  ;;  %p5837_p9 = scmp.lt.u32.totalorder %s5835_s27, %s5830_s16 }
  0x35   : > { %p5839_p1 = scmp.lt.u32.totalorder %s5830_s16, %s6072_s14 }
  0x36   : > { %p5834_p5 = pneg %p5833_p3  ;;  %p5838_p2 = por %p5837_p9, %p5836_p7 }
  0x38   : > { %p5840_p4 = por %p5839_p1, %p5838_p2 }
  0x3a   : > { %p5841_p6 = pnand %p5840_p4, %p5834_p5 }
  0x3c   : > { %5844 = shalt.err (!%p5841_p6)
}
  0x3d   : > { %s5845_s10 = scalar_lea.vmem %s6078_s6, 1024  ;;  %s5935_s29 = smov [#allocation4]  }
  0x3e   : > { %p5846_p8 = scmp.ne.s32.totalorder %s6078_s6, %s5845_s10  ;;  %s5850_s13 = sshll.u32 %s5935_s29, 4  ;;  %s5851_s13 = int_to_ptr.vmem [resolvable:$false] %s5850_s13 }
  0x3f   : > { %s5852_s28 = scalar_lea.vmem %s5851_s13, 2048  ;;  %p5853_p3 = scmp.lt.s32.totalorder %s6078_s6, %s5851_s13 }
  0x40   : > { %p5848_p10 = pnand %p5846_p8, %p5832_p0  ;;  %p5854_p7 = scmp.lt.s32.totalorder %s5852_s28, %s5845_s10 }
  0x42   : > { %p5849_p13 = pneg %p5848_p10  ;;  %p5855_p9 = por %p5854_p7, %p5853_p3 }
  0x44   : > { %p5856_p2 = pnand %p5855_p9, %p5849_p13 }
  0x46   : > { %5859 = shalt.err (!%p5856_p2)
}
  0x47   : > { %s5936_s16 = smov 128   ;;  %s5937_s17 = smov 8  }
  0x48   : > { %5391 = dma.hbm_to_vmem [thread:$0]  (!%p6074_p11), %s6072_s14, 1024, %s6078_s6, %s6080_s15, %s5936_s16, %s5936_s16, %s5937_s17  }
  0x49   : > { %p6694_p0 = scmp.ne.s32.totalorder %s6689_s26, 0 }
  0x4a   : > { %s6111_s23 = sand.u32 (!%p6694_p0), 1, %s5922_s19   ;;  %p6695_p5 = scmp.ne.s32.totalorder (!%p6694_p0), %s6687_s24, 0 }
  0x4b   : > { %221 = sbr.rel (%p6694_p0) target bundleno = 816 (0x330), region = 40  ;;  %s4515_s27 = sshll.u32 (!%p6694_p0), %s6111_s23, 6 }
  0x4c   : > { %s224_s11 = scalar_lea.sflag (!%p6694_p0), [#allocation5], %s6111_s23  ;;  %s6117_s12 = scalar_lea.vmem (!%p6694_p0), [#allocation4], %s4515_s27 }
  0x52   : > { %5905 = dma.done.wait (%p6695_p5), %s224_s11, 1024  }
  0x53   : > { %5907 = vsyncadd (%p6695_p5), %s224_s11, 4294966272  ;;  %p6696_p11 = scmp.eq.s32.totalorder %s5993_s22, 0 }
  0x55   : > { %5909 = dma.done.wait (%p6696_p11), [#allocation8], 9216   ;;  %p6697_p1 = pmov %p6696_p11 }
  0x56   : > { %v5938_v0 = vmov 0   ;;  %v5440_v1 = vld [vmem:[#allocation7 + $0x40] sm:$0xff]   ;;  %v5444_v5 = vld [vmem:[#allocation7 + $0x48] sm:$0xff]   ;;  %v5448_v9 = vld [vmem:[#allocation7 + $0x50] sm:$0xff]   ;;  %vm266_vm0 = vsmask.f32 256 }
  0x57   : > { %5911 = vsyncadd (%p6697_p1), [#allocation8], 4294958080  ;;  %262 = vst [vmem:[#allocation2] sm:$0xff] %v5938_v0  ;;  %v5441_v2 = vld [vmem:[#allocation7 + $0xc0] sm:$0xff]   ;;  %4984 = vmatprep.subr.bf16.mxu0 %v5440_v1  ;;  %v5445_v6 = vld [vmem:[#allocation7 + $0xc8] sm:$0xff]   ;;  %vm265_vm2 = vcmask 1040384  }
  0x58   : > { %264 = vst [vmem:[#allocation2 + $0x48] sm:$0xff] %v5938_v0  ;;  %v5442_v3 = vld [vmem:[#allocation7] sm:$0xff]   ;;  %5024 = vmatprep.subr.bf16.mxu1 %v5441_v2  ;;  %v5446_v7 = vld [vmem:[#allocation7 + $0x8] sm:$0xff]   ;;  %v5449_v10 = vld [vmem:[#allocation7 + $0xd0] sm:$0xff]   ;;  %vm299_vm1 = vsmask.f32 7954 }
  0x59   : > { %v5443_v4 = vld [vmem:[#allocation7 + $0x80] sm:$0xff]   ;;  %4985 = vmatpush3.bf16.msra.mxu0 %v5442_v3  ;;  %v5447_v8 = vld [vmem:[#allocation7 + $0x88] sm:$0xff]   ;;  %v5450_v11 = vld [vmem:[#allocation7 + $0x10] sm:$0xff]   ;;  %vm298_vm3 = vcmask 1047556   ;;  %vm413_vm6 = vsmask.f32 4354 }
  0x5a   : > { %5025 = vmatpush3.bf16.msra.mxu1 %v5443_v4  ;;  %4986 = vmatprep.subr.bf16.mxu0 %v5444_v5  ;;  %v5451_v12 = vld [vmem:[#allocation7 + $0x90] sm:$0xff]   ;;  %v5452_v13 = vld [vmem:[#allocation7 + $0x58] sm:$0xff]   ;;  %v5456_v17 = vld [vmem:[#allocation7 + $0x60] sm:$0xff]   ;;  %vm412_vm7 = vcmask 1044480   ;;  %vm706_vm9 = vcmask 1042432   ;;  %vm707_vm10 = vcmask 1046532  }
  0x5b   : > { %5026 = vmatprep.subr.bf16.mxu1 %v5445_v6  ;;  %v5453_v14 = vld [vmem:[#allocation7 + $0xd8] sm:$0xff]   ;;  %v5457_v18 = vld [vmem:[#allocation7 + $0xe0] sm:$0xff]   ;;  %v5460_v21 = vld [vmem:[#allocation7 + $0x68] sm:$0xff]   ;;  %vm523_vm11 = vsmask.f32 3328  ;;  %s6613_s16 = scalar_lea.vmem [#allocation9], %s4515_s27 }
  0x5c   : > { %v5454_v15 = vld [vmem:[#allocation7 + $0x18] sm:$0xff]   ;;  %v5458_v19 = vld [vmem:[#allocation7 + $0x20] sm:$0xff]   ;;  %v5461_v22 = vld [vmem:[#allocation7 + $0xe8] sm:$0xff]   ;;  %vm524_vm12 = vsmask.f32 7440  ;;  %s4983_s17 = sshll.u32 %s5993_s22, 10 }
  0x5d   : > { %4987 = vmatpush3.bf16.msra.mxu0 %v5446_v7  ;;  %v5455_v16 = vld [vmem:[#allocation7 + $0x98] sm:$0xff]   ;;  %v5459_v20 = vld [vmem:[#allocation7 + $0xa0] sm:$0xff]   ;;  %v5462_v23 = vld [vmem:[#allocation7 + $0x28] sm:$0xff]   ;;  %s4424_s27 = sshll.u32 %s6613_s16, 4  ;;  %s6629_s26 = scalar_lea.hbm %s6683_s5, %s4983_s17  ;;  %s6631_s27 = int_to_ptr.vmem [resolvable:$true] %s4424_s27 }
  0x5e   : > { %5027 = vmatpush3.bf16.msra.mxu1 %v5447_v8  ;;  %4988 = vmatprep.subr.bf16.mxu0 %v5448_v9  ;;  %vm6128_vm4 = vmand %vm265_vm2, %vm266_vm0  ;;  %v5463_v25 = vld [vmem:[#allocation7 + $0xa8] sm:$0xff]   ;;  %v5464_v27 = vld [vmem:[#allocation7 + $0x70] sm:$0xff]   ;;  %s4411_s22 = scalar_lea.sflag [#allocation6], %s6111_s23  ;;  %s5939_s14 = smov [#allocation9]  }
  0x5f   : > { %5028 = vmatprep.subr.bf16.mxu1 %v5449_v10  ;;  %vm6133_vm5 = vmand %vm298_vm3, %vm299_vm1  ;;  %v5465_v28 = vld [vmem:[#allocation7 + $0xf0] sm:$0xff]   ;;  %v5468_v31 = vld [vmem:[#allocation7 + $0x78] sm:$0xff]   ;;  %s5864_s6 = sshll.u32 %s5939_s14, 4  ;;  %s5865_s6 = int_to_ptr.vmem [resolvable:$false] %s5864_s6 }
  0x60   : > { %v5466_v29 = vld [vmem:[#allocation7 + $0x30] sm:$0xff]   ;;  %v5469_v32 = vld [vmem:[#allocation7 + $0xf8] sm:$0xff]   ;;  %v331_v42 = vld [vmem:[%s6117_s12] sm:$0xff]  ;;  %s5866_s7 = scalar_lea.vmem %s5865_s6, 2048  ;;  %p5867_p10 = scmp.lt.s32.totalorder %s6631_s27, %s5865_s6 }
  0x61   : > { %4989 = vmatpush3.bf16.msra.mxu0 %v5450_v11  ;;  %v5467_v30 = vld [vmem:[#allocation7 + $0xb0] sm:$0xff]   ;;  %v5470_v33 = vld [vmem:[#allocation7 + $0x38] sm:$0xff]   ;;  %v339_v44 = vpack.c.bf16 %v331_v42, %v331_v42  ;;  %v274_v45 = vld [vmem:[#allocation2 + $0x10] sm:$0x1] }
  0x62   : > { %5029 = vmatpush3.bf16.msra.mxu1 %v5451_v12  ;;  %4990 = vmatprep.subr.bf16.mxu0 %v5452_v13  ;;  %v5471_v34 = vld [vmem:[#allocation7 + $0xb8] sm:$0xff]   ;;  %v268_v35 = vld [vmem:[#allocation2] sm:$0x1]  ;;  %v301_v37 = vld [vmem:[#allocation2] sm:$0xf0]  ;;  %v275_v48 = vsel %vm6128_vm4, 0, %v274_v45 }
  0x63   : > { %5030 = vmatprep.subr.bf16.mxu1 %v5453_v14  ;;  %v271_v36 = vld [vmem:[#allocation2 + $0x8] sm:$0x1]  ;;  %v269_v38 = vsel %vm6128_vm4, 0, %v268_v35  ;;  %v302_v40 = vsel %vm6133_vm5, 0, %v301_v37  ;;  %v304_v41 = vld [vmem:[#allocation2 + $0x8] sm:$0xf0]  ;;  %vm6152_vm8 = vmand %vm412_vm7, %vm413_vm6 }
  0x64   : > { %v272_v39 = vsel %vm6128_vm4, 0, %v271_v36  ;;  %270 = vst [vmem:[#allocation2] sm:$0x1] %v269_v38  ;;  %303 = vst [vmem:[#allocation2] sm:$0xf0] %v302_v40  ;;  %v305_v43 = vsel %vm6133_vm5, 0, %v304_v41 }
  0x65   : > { %4991 = vmatpush3.bf16.msra.mxu0 %v5454_v15  ;;  %273 = vst [vmem:[#allocation2 + $0x8] sm:$0x1] %v272_v39  ;;  %v307_v46 = vld [vmem:[#allocation2 + $0x10] sm:$0xf0]  ;;  %v332_v47 = vld [vmem:[%s6117_s12 + $0x8] sm:$0xff]  ;;  %v348_v51 = vshrl.u32 %v339_v44, 16  ;;  %vm6175_vm13 = vmor %vm706_vm9, %vm707_vm10 }
  0x66   : > { %5031 = vmatpush3.bf16.msra.mxu1 %v5455_v16  ;;  %4992 = vmatprep.subr.bf16.mxu0 %v5456_v17  ;;  %306 = vst [vmem:[#allocation2 + $0x8] sm:$0xf0] %v305_v43  ;;  %v308_v49 = vsel %vm6133_vm5, 0, %v307_v46  ;;  %v340_v50 = vpack.c.bf16 %v332_v47, %v332_v47  ;;  %v351_v52 = vshll.u32 %v339_v44, 16  ;;  %276 = vst [vmem:[#allocation2 + $0x10] sm:$0x1] %v275_v48 }
  0x67   : > { %5032 = vmatprep.subr.bf16.mxu1 %v5457_v18  ;;  %309 = vst [vmem:[#allocation2 + $0x10] sm:$0xf0] %v308_v49  ;;  %v5482_v53 = vld [vmem:[#allocation7 + $0x140] sm:$0xff]   ;;  %v350_v56 = vrot.slane %v348_v51, 7  ;;  %v277_v8 = vld [vmem:[#allocation2 + $0x18] sm:$0x1]  ;;  %vm6183_vm14 = vmor %vm523_vm11, %vm524_vm12 }
  0x68   : > { %v355_v54 = vshrl.u32 %v340_v50, 16  ;;  %v358_v55 = vshll.u32 %v340_v50, 16  ;;  %v5484_v57 = vld [vmem:[#allocation7 + $0x1c0] sm:$0xff]   ;;  %v278_v11 = vsel %vm6128_vm4, 0, %v277_v8  ;;  %v310_v12 = vld [vmem:[#allocation2 + $0x18] sm:$0xf0] }
  0x69   : > { %4993 = vmatpush3.bf16.msra.mxu0 %v5458_v19  ;;  %v353_v59 = vor.u32 %v351_v52, %v350_v56  ;;  %v333_v13 = vld [vmem:[%s6117_s12 + $0x10] sm:$0xff]  ;;  %279 = vst [vmem:[#allocation2 + $0x18] sm:$0x1] %v278_v11  ;;  %v311_v17 = vsel %vm6133_vm5, 0, %v310_v12 }
  0x6a   : > { %5033 = vmatpush3.bf16.msra.mxu1 %v5459_v20  ;;  %4994 = vmatprep.subr.bf16.mxu0 %v5460_v21  ;;  %v357_v58 = vrot.slane %v355_v54, 7  ;;  %v280_v18 = vld [vmem:[#allocation2 + $0x20] sm:$0x1]  ;;  %312 = vst [vmem:[#allocation2 + $0x18] sm:$0xf0] %v311_v17  ;;  %v341_v19 = vpack.c.bf16 %v333_v13, %v333_v13 }
  0x6b   : > { %5034 = vmatprep.subr.bf16.mxu1 %v5461_v22  ;;  %v475_v61 = vld [vmem:[#allocation2] sm:$0x1f]  ;;  %v281_v20 = vsel %vm6128_vm4, 0, %v280_v18  ;;  %v334_v22 = vld [vmem:[%s6117_s12 + $0x18] sm:$0xff]  ;;  %v5483_v18 = vld [vmem:[#allocation7 + $0x100] sm:$0xff]  }
  0x6c   : > { %v360_v62 = vor.u32 %v358_v55, %v357_v58  ;;  %v4522_v0 = vcombine.low %v475_v61, %v475_v61  ;;  %v4523_v1 = vcombine.high %v475_v61, %v475_v61  ;;  %v658_v2 = vld [vmem:[#allocation2] sm:$0x1e]  ;;  %282 = vst [vmem:[#allocation2 + $0x20] sm:$0x1] %v281_v20  ;;  %v5494_v20 = vld [vmem:[#allocation7 + $0x188] sm:$0xff]  }
  0x6d   : > { %4995 = vmatpush3.bf16.msra.mxu0 %v5462_v23  ;;  %v415_v63 = vld [vmem:[#allocation2 + $0x8] sm:$0x1f]  ;;  %v4542_v9 = vcombine.low %v658_v2, %v658_v2  ;;  %v4543_v10 = vcombine.high %v658_v2, %v658_v2  ;;  %v313_v21 = vld [vmem:[#allocation2 + $0x20] sm:$0xf0] }
  0x6e   : > { %5035 = vmatpush3.bf16.msra.mxu1 %v5463_v25  ;;  %4996 = vmatprep.subr.bf16.mxu0 %v5464_v27  ;;  %v416_v3 = vsel %vm6152_vm8, %v353_v59, %v415_v63  ;;  %v418_v4 = vld [vmem:[#allocation2 + $0x10] sm:$0x1f]  ;;  %v527_v5 = vshrl.u32 %v4522_v0, 16  ;;  %v530_v6 = vshll.u32 %v4522_v0, 16  ;;  %v6163_v16 = vshll.u32 %v4523_v1, 16 }
  0x6f   : > { %5036 = vmatprep.subr.bf16.mxu1 %v5465_v28  ;;  %417 = vst [vmem:[#allocation2 + $0x8] sm:$0x1f] %v416_v3  ;;  %v419_v7 = vsel %vm6152_vm8, %v360_v62, %v418_v4  ;;  %v314_v25 = vsel %vm6133_vm5, 0, %v313_v21  ;;  %v342_v27 = vpack.c.bf16 %v334_v22, %v334_v22  ;;  %v4558_v28 = vrot.slane %v4542_v9, 9  ;;  %v5485_v4 = vld [vmem:[#allocation7 + $0x180] sm:$0xff]   ;;  %v5486_v22 = vld [vmem:[#allocation7 + $0x148] sm:$0xff]  }
  0x70   : > { %420 = vst [vmem:[#allocation2 + $0x10] sm:$0x1f] %v419_v7  ;;  %v529_v14 = vrot.slane %v527_v5, 4  ;;  %v532_v15 = vrot.slane %v530_v6, 5  ;;  %315 = vst [vmem:[#allocation2 + $0x20] sm:$0xf0] %v314_v25 }
  0x71   : > { %4997 = vmatpush3.bf16.msra.mxu0 %v5466_v29  ;;  %v711_v29 = vrot.slane %v4543_v10, 5  ;;  %v372_v40 = vshll.u32 %v342_v27, 16  ;;  %v421_v50 = vld [vmem:[#allocation2 + $0x18] sm:$0x1f] }
  0x72   : > { %5037 = vmatpush3.bf16.msra.mxu1 %v5467_v30  ;;  %4998 = vmatprep.subr.bf16.mxu0 %v5468_v31  ;;  %v533_v23 = vor.u32 %v532_v15, %v529_v14  ;;  %v362_v30 = vshrl.u32 %v341_v19, 16  ;;  %v538_v31 = vrot.slane %v6163_v16, 5  ;;  %v5488_v15 = vld [vmem:[#allocation7 + $0x1c8] sm:$0xff]  }
  0x73   : > { %5038 = vmatprep.subr.bf16.mxu1 %v5469_v32  ;;  %v712_v42 = vsel %vm6175_vm13, %v4558_v28, %v711_v29  ;;  %v283_v28 = vld [vmem:[#allocation2 + $0x28] sm:$0x1] }
  0x74   : > { %v534_v38 = vrot.slane %v533_v23, 4  ;;  %v364_v43 = vrot.slane %v362_v30, 7 }
  0x75   : > { %4999 = vmatpush3.bf16.msra.mxu0 %v5470_v33  ;;  %v365_v33 = vshll.u32 %v341_v19, 16 }
  0x76   : > { %5039 = vmatpush3.bf16.msra.mxu1 %v5471_v34  ;;  %5064 = vmatprep.subr.bf16.mxu0 %v5482_v53  ;;  %v369_v34 = vshrl.u32 %v342_v27, 16  ;;  %v476_v35 = vld [vmem:[#allocation2 + $0x8] sm:$0x1f]  ;;  %v539_v12 = vsel %vm6183_vm14, %v534_v38, %v538_v31  ;;  %v5502_v27 = vld [vmem:[#allocation7 + $0x1d0] sm:$0xff]   ;;  %v284_v31 = vsel %vm6128_vm4, 0, %v283_v28  ;;  %v5520_v28 = vld [vmem:[#allocation7 + $0x1e0] sm:$0xff]  }
  0x77   : > { %5104 = vmatprep.subr.bf16.mxu1 %v5484_v57  ;;  %v4524_v36 = vcombine.low %v476_v35, %v476_v35  ;;  %v4525_v37 = vcombine.high %v476_v35, %v476_v35  ;;  %v5476_v39 = vld [vmem:[#allocation2 + $0x8] ss:$8 sps:$4 sm:$0xff]   ;;  %v367_v52 = vor.u32 %v365_v33, %v364_v43  ;;  %v424_v61 = vld [vmem:[#allocation2 + $0x20] sm:$0x1f]  ;;  %v316_v33 = vld [vmem:[#allocation2 + $0x28] sm:$0xf0] }
  0x78   : > { %v659_v41 = vld [vmem:[#allocation2 + $0x8] sm:$0x1e]  ;;  %v477_v44 = vld [vmem:[#allocation2 + $0x10] sm:$0x1f]  ;;  %v371_v45 = vrot.slane %v369_v34, 7  ;;  %2103 = vmatprep.mubr.bf16.mxu1 %v5476_v39  ;;  %v336_v35 = vld [vmem:[%s6117_s12 + $0x28] sm:$0xff] }
  0x79   : > { %v541_v46 = vshrl.u32 %v4524_v36, 16  ;;  %v544_v47 = vshll.u32 %v4524_v36, 16  ;;  %v550_v48 = vshll.u32 %v4525_v37, 16  ;;  %v4544_v49 = vcombine.low %v659_v41, %v659_v41  ;;  %v660_v55 = vld [vmem:[#allocation2 + $0x10] sm:$0x1e] }
  0x7a   : > { %v4545_v51 = vcombine.high %v659_v41, %v659_v41  ;;  %v4526_v53 = vcombine.low %v477_v44, %v477_v44  ;;  %v4527_v54 = vcombine.high %v477_v44, %v477_v44  ;;  %v422_v0 = vsel %vm6152_vm8, %v367_v52, %v421_v50  ;;  %v5477_v17 = vld [vmem:[#allocation2] ss:$8 sps:$4 sm:$0xff]   ;;  %v335_v34 = vld [vmem:[%s6117_s12 + $0x20] sm:$0xff]  ;;  %285 = vst [vmem:[#allocation2 + $0x28] sm:$0x1] %v284_v31  ;;  %v5487_v41 = vld [vmem:[#allocation7 + $0x108] sm:$0xff]  }
  0x7b   : > { %v543_v56 = vrot.slane %v541_v46, 4  ;;  %v546_v57 = vrot.slane %v544_v47, 5  ;;  %v552_v58 = vrot.slane %v550_v48, 5  ;;  %v4559_v59 = vrot.slane %v4544_v49, 9  ;;  %423 = vst [vmem:[#allocation2 + $0x18] sm:$0x1f] %v422_v0 }
  0x7c   : > { %v715_v63 = vrot.slane %v4545_v51, 5  ;;  %v555_v1 = vshrl.u32 %v4526_v53, 16  ;;  %v558_v2 = vshll.u32 %v4526_v53, 16  ;;  %v6189_v5 = vshll.u32 %v4527_v54, 16  ;;  %v286_v39 = vld [vmem:[#allocation2 + $0x30] sm:$0x1] }
  0x7d   : > { %v547_v3 = vor.u32 %v546_v57, %v543_v56  ;;  %v374_v6 = vor.u32 %v372_v40, %v371_v45  ;;  %v4546_v7 = vcombine.low %v660_v55, %v660_v55  ;;  %v4547_v11 = vcombine.high %v660_v55, %v660_v55  ;;  %v319_v40 = vld [vmem:[#allocation2 + $0x30] sm:$0xf0]  ;;  %v5500_v47 = vld [vmem:[#allocation7 + $0x150] sm:$0xff]   ;;  %v5506_v53 = vld [vmem:[#allocation7 + $0x1d8] sm:$0xff]  }
  0x7e   : > { %v716_v8 = vsel %vm6175_vm13, %v4559_v59, %v715_v63  ;;  %v557_v9 = vrot.slane %v555_v1, 4  ;;  %v560_v10 = vrot.slane %v558_v2, 5  ;;  %v566_v23 = vrot.slane %v6189_v5, 5  ;;  %v5503_v48 = vld [vmem:[#allocation7 + $0x190] sm:$0xff]   ;;  %v5521_v5 = vld [vmem:[#allocation7 + $0x1a0] sm:$0xff]  }
  0x7f   : > { %v548_v13 = vrot.slane %v547_v3, 4  ;;  %v4566_v14 = vcombine.low %v712_v42, %v716_v8  ;;  %v425_v16 = vsel %vm6152_vm8, %v374_v6, %v424_v61  ;;  %v6200_v25 = vrot.slane %v4546_v7, 9  ;;  %v5501_v7 = vld [vmem:[#allocation7 + $0x110] sm:$0xff]  }
  0x80   : > { %v561_v19 = vor.u32 %v560_v10, %v557_v9  ;;  %426 = vst [vmem:[#allocation2 + $0x20] sm:$0x1f] %v425_v16  ;;  %v719_v30 = vrot.slane %v4547_v11, 5  ;;  %v317_v37 = vsel %vm6133_vm5, 0, %v316_v33  ;;  %v343_v38 = vpack.c.bf16 %v335_v34, %v335_v34  ;;  %v5504_v10 = vld [vmem:[#allocation7 + $0x158] sm:$0xff]  }
  0x81   : > { %v553_v21 = vsel %vm6183_vm14, %v548_v13, %v552_v58  ;;  %2104 = vmatmul.mubr.bf16.vlgmr.msra.gmra.mrb[0].mxu1 %v4566_v14  ;;  %318 = vst [vmem:[#allocation2 + $0x28] sm:$0xf0] %v317_v37  ;;  %v6210_v43 = vpack.c.bf16 %v336_v35, %v336_v35  ;;  %v287_v54 = vsel %vm6128_vm4, 0, %v286_v39  ;;  %v320_v55 = vsel %vm6133_vm5, 0, %v319_v40  ;;  %v5505_v33 = vld [vmem:[#allocation7 + $0x118] sm:$0xff]   ;;  %v5518_v37 = vld [vmem:[#allocation7 + $0x160] sm:$0xff]  }
  0x82   : > { %v4538_v29 = vcombine.low %v539_v12, %v553_v21  ;;  %5105 = vmatpush3.bf16.msra.mxu1 %v5485_v4  ;;  %v6206_v36 = vrot.slane %v561_v19, 4  ;;  %v478_v42 = vld [vmem:[#allocation2 + $0x18] sm:$0x1f]  ;;  %v376_v49 = vshrl.u32 %v343_v38, 16  ;;  %v379_v50 = vshll.u32 %v343_v38, 16  ;;  %v5512_v19 = vld [vmem:[#allocation7 + $0x198] sm:$0xff]  }
  0x83   : > { %5106 = vmatprep.subr.bf16.mxu1 %v5488_v15  ;;  %v4528_v44 = vcombine.low %v478_v42, %v478_v42  ;;  %v4529_v45 = vcombine.high %v478_v42, %v478_v42  ;;  %v661_v46 = vld [vmem:[#allocation2 + $0x18] sm:$0x1e]  ;;  %288 = vst [vmem:[#allocation2 + $0x30] sm:$0x1] %v287_v54  ;;  %321 = vst [vmem:[#allocation2 + $0x30] sm:$0xf0] %v320_v55  ;;  %v720_v63 = vsel %vm6175_vm13, %v6200_v25, %v719_v30 }
  0x84   : > { %2038 = vmatprep.mubr.bf16.mxu0 %v4538_v29  ;;  %v4548_v51 = vcombine.low %v661_v46, %v661_v46  ;;  %v4549_v52 = vcombine.high %v661_v46, %v661_v46  ;;  %v378_v59 = vrot.slane %v376_v49, 7  ;;  %v383_v13 = vshrl.u32 %v6210_v43, 16  ;;  %v5495_v31 = vld [vmem:[#allocation2 + $0x10] ss:$8 sps:$4 sm:$0xff]   ;;  %v292_v55 = vld [vmem:[#allocation2 + $0x40] sm:$0x1] }
  0x85   : > { %2039 = vmatmul.mubr.bf16.vlgmr.msra.gmra.mrb[0].mxu0 %v5477_v17  ;;  %v569_v56 = vshrl.u32 %v4528_v44, 16  ;;  %v572_v57 = vshll.u32 %v4528_v44, 16  ;;  %v578_v58 = vshll.u32 %v4529_v45, 16  ;;  %v567_v29 = vsel %vm6183_vm14, %v6206_v36, %v566_v23  ;;  %v5524_v44 = vld [vmem:[#allocation7 + $0x1e8] sm:$0xff]  }
  0x86   : > { %5065 = vmatpush3.bf16.msra.mxu0 %v5483_v18  ;;  %5107 = vmatpush3.bf16.msra.mxu1 %v5494_v20  ;;  %v4561_v0 = vrot.slane %v4548_v51, 9  ;;  %v723_v1 = vrot.slane %v4549_v52, 5  ;;  %v381_v8 = vor.u32 %v379_v50, %v378_v59  ;;  %v386_v18 = vshll.u32 %v6210_v43, 16  ;;  %v5522_v49 = vld [vmem:[#allocation7 + $0x168] sm:$0xff]   ;;  %v337_v51 = vld [vmem:[%s6117_s12 + $0x30] sm:$0xff] }
  0x87   : > { %5066 = vmatprep.subr.bf16.mxu0 %v5486_v22  ;;  %5108 = vmatprep.subr.bf16.mxu1 %v5502_v27  ;;  %v5493_v61 = vld [vmem:[#allocation2 + $0x18] ss:$8 sps:$4 sm:$0xff]   ;;  %v571_v3 = vrot.slane %v569_v56, 4  ;;  %v574_v4 = vrot.slane %v572_v57, 5  ;;  %v580_v6 = vrot.slane %v578_v58, 5  ;;  %v385_v34 = vrot.slane %v383_v13, 7 }
  0x88   : > { %v479_v2 = vld [vmem:[#allocation2 + $0x20] sm:$0x1f]  ;;  %2111 = vmatprep.mubr.bf16.mxu1 %v5493_v61  ;;  %v724_v9 = vsel %vm6175_vm13, %v4561_v0, %v723_v1  ;;  %v427_v17 = vld [vmem:[#allocation2 + $0x28] sm:$0x1f]  ;;  %v289_v52 = vld [vmem:[#allocation2 + $0x38] sm:$0x1]  ;;  %v345_v54 = vpack.c.bf16 %v337_v51, %v337_v51 }
  0x89   : > { %v4530_v11 = vcombine.low %v479_v2, %v479_v2  ;;  %v4531_v12 = vcombine.high %v479_v2, %v479_v2  ;;  %v662_v14 = vld [vmem:[#allocation2 + $0x20] sm:$0x1e]  ;;  %v575_v15 = vor.u32 %v574_v4, %v571_v3  ;;  %v4567_v16 = vcombine.low %v720_v63, %v724_v9  ;;  %v5523_v63 = vld [vmem:[#allocation7 + $0x128] sm:$0xff]  }
  0x8a   : > { %5067 = vmatpush3.bf16.msra.mxu0 %v5487_v41  ;;  %5109 = vmatpush3.bf16.msra.mxu1 %v5503_v48  ;;  %v4550_v20 = vcombine.low %v662_v14, %v662_v14  ;;  %v428_v21 = vsel %vm6152_vm8, %v381_v8, %v427_v17  ;;  %v4551_v35 = vcombine.high %v662_v14, %v662_v14  ;;  %v430_v41 = vld [vmem:[#allocation2 + $0x30] sm:$0x1f]  ;;  %v290_v0 = vsel %vm6128_vm4, 0, %v289_v52  ;;  %v338_v8 = vld [vmem:[%s6117_s12 + $0x38] sm:$0xff]  ;;  %v5530_v9 = vld [vmem:[#allocation7 + $0x1a8] sm:$0xff]  }
  0x8b   : > { %5068 = vmatprep.subr.bf16.mxu0 %v5500_v47  ;;  %5110 = vmatprep.subr.bf16.mxu1 %v5506_v53  ;;  %v583_v22 = vshrl.u32 %v4530_v11, 16  ;;  %v586_v25 = vshll.u32 %v4530_v11, 16  ;;  %v6225_v27 = vshll.u32 %v4531_v12, 16  ;;  %v576_v30 = vrot.slane %v575_v15, 4  ;;  %429 = vst [vmem:[#allocation2 + $0x28] sm:$0x1f] %v428_v21 }
  0x8c   : > { %2112 = vmatmul.mubr.bf16.gmra.mrb[4].mxu1 %v4567_v16  ;;  %v6233_v42 = vrot.slane %v4550_v20, 9  ;;  %v388_v36 = vor.u32 %v386_v18, %v385_v34  ;;  %v6237_v43 = vrot.slane %v4551_v35, 5  ;;  %v5519_v47 = vld [vmem:[#allocation7 + $0x120] sm:$0xff]   ;;  %v322_v53 = vld [vmem:[#allocation2 + $0x38] sm:$0xf0]  ;;  %v390_v4 = vshrl.u32 %v345_v54, 16 }
  0x8d   : > { %v585_v38 = vrot.slane %v583_v22, 4  ;;  %v588_v39 = vrot.slane %v586_v25, 5  ;;  %v594_v40 = vrot.slane %v6225_v27, 5  ;;  %v581_v23 = vsel %vm6183_vm14, %v576_v30, %v580_v6  ;;  %291 = vst [vmem:[#allocation2 + $0x38] sm:$0x1] %v290_v0  ;;  %v5536_v22 = vld [vmem:[#allocation7 + $0x170] sm:$0xff]  }
  0x8e   : > { %5069 = vmatpush3.bf16.msra.mxu0 %v5501_v7  ;;  %5111 = vmatpush3.bf16.msra.mxu1 %v5512_v19  ;;  %v4539_v45 = vcombine.low %v567_v29, %v581_v23  ;;  %v431_v48 = vsel %vm6152_vm8, %v388_v36, %v430_v41  ;;  %v728_v57 = vsel %vm6175_vm13, %v6233_v42, %v6237_v43  ;;  %v323_v1 = vsel %vm6133_vm5, 0, %v322_v53  ;;  %v325_v7 = vld [vmem:[#allocation2 + $0x40] sm:$0xf0] }
  0x8f   : > { %5070 = vmatprep.subr.bf16.mxu0 %v5504_v10  ;;  %v589_v46 = vor.u32 %v588_v39, %v585_v38  ;;  %5112 = vmatprep.subr.bf16.mxu1 %v5520_v28  ;;  %432 = vst [vmem:[#allocation2 + $0x30] sm:$0x1f] %v431_v48  ;;  %324 = vst [vmem:[#allocation2 + $0x38] sm:$0xf0] %v323_v1  ;;  %v393_v6 = vshll.u32 %v345_v54, 16  ;;  %v293_v13 = vsel %vm6128_vm4, 0, %v292_v55 }
  0x90   : > { %2046 = vmatprep.mubr.bf16.mxu0 %v4539_v45  ;;  %v392_v16 = vrot.slane %v390_v4, 7  ;;  %294 = vst [vmem:[#allocation2 + $0x40] sm:$0x1] %v293_v13  ;;  %v326_v17 = vsel %vm6133_vm5, 0, %v325_v7  ;;  %v346_v21 = vpack.c.bf16 %v338_v8, %v338_v8  ;;  %v5537_v27 = vld [vmem:[#allocation7 + $0x130] sm:$0xff]   ;;  %v5541_v1 = vld [vmem:[#allocation7 + $0x138] sm:$0xff]  }
  0x91   : > { %v590_v50 = vrot.slane %v589_v46, 4  ;;  %2047 = vmatmul.mubr.bf16.gmra.mrb[4].mxu0 %v5495_v31  ;;  %327 = vst [vmem:[#allocation2 + $0x40] sm:$0xf0] %v326_v17  ;;  %v5538_v52 = vld [vmem:[#allocation7 + $0x1f0] sm:$0xff]   ;;  %v978_v4 = vld [vmem:[#allocation2 + $0x10] sm:$0x1e] }
  0x92   : > { %5071 = vmatpush3.bf16.msra.mxu0 %v5505_v33  ;;  %v480_v56 = vld [vmem:[#allocation2 + $0x28] sm:$0x1f]  ;;  %5113 = vmatpush3.bf16.msra.mxu1 %v5521_v5  ;;  %v395_v29 = vor.u32 %v393_v6, %v392_v16  ;;  %v397_v39 = vshrl.u32 %v346_v21, 16  ;;  %v400_v41 = vshll.u32 %v346_v21, 16  ;;  %v4596_v8 = vcombine.low %v978_v4, %v978_v4 }
  0x93   : > { %5072 = vmatprep.subr.bf16.mxu0 %v5518_v37  ;;  %v4532_v58 = vcombine.low %v480_v56, %v480_v56  ;;  %v4533_v59 = vcombine.high %v480_v56, %v480_v56  ;;  %v663_v61 = vld [vmem:[#allocation2 + $0x28] sm:$0x1e]  ;;  %5114 = vmatprep.subr.bf16.mxu1 %v5524_v44  ;;  %v595_v38 = vsel %vm6183_vm14, %v590_v50, %v594_v40 }
  0x94   : > { %v4552_v2 = vcombine.low %v663_v61, %v663_v61  ;;  %v4553_v3 = vcombine.high %v663_v61, %v663_v61  ;;  %v5513_v23 = vld [vmem:[#allocation2 + $0x20] ss:$8 sps:$4 sm:$0xff]   ;;  %v399_v48 = vrot.slane %v397_v39, 7  ;;  %v4597_v13 = vcombine.high %v978_v4, %v978_v4 }
  0x95   : > { %v597_v10 = vshrl.u32 %v4532_v58, 16  ;;  %v600_v11 = vshll.u32 %v4532_v58, 16  ;;  %v606_v12 = vshll.u32 %v4533_v59, 16  ;;  %v5539_v58 = vld [vmem:[#allocation7 + $0x1b0] sm:$0xff]   ;;  %v4611_v21 = vrot.slane %v4596_v8, 9 }
  0x96   : > { %5073 = vmatpush3.bf16.msra.mxu0 %v5519_v47  ;;  %v4563_v14 = vrot.slane %v4552_v2, 9  ;;  %v731_v15 = vrot.slane %v4553_v3, 5  ;;  %5115 = vmatpush3.bf16.msra.mxu1 %v5530_v9  ;;  %v5511_v25 = vld [vmem:[#allocation2 + $0x28] ss:$8 sps:$4 sm:$0xff]   ;;  %v433_v36 = vld [vmem:[#allocation2 + $0x38] sm:$0x1f]  ;;  %v402_v54 = vor.u32 %v400_v41, %v399_v48 }
  0x97   : > { %5074 = vmatprep.subr.bf16.mxu0 %v5522_v49  ;;  %v599_v18 = vrot.slane %v597_v10, 4  ;;  %v602_v19 = vrot.slane %v600_v11, 5  ;;  %v608_v20 = vrot.slane %v606_v12, 5  ;;  %v481_v30 = vld [vmem:[#allocation2 + $0x30] sm:$0x1f]  ;;  %2119 = vmatprep.mubr.bf16.mxu1 %v5511_v25  ;;  %v434_v46 = vsel %vm6152_vm8, %v395_v29, %v433_v36  ;;  %v5542_v2 = vld [vmem:[#allocation7 + $0x1f8] sm:$0xff]  }
  0x98   : > { %v732_v28 = vsel %vm6175_vm13, %v4563_v14, %v731_v15  ;;  %v4534_v34 = vcombine.low %v481_v30, %v481_v30  ;;  %v4535_v35 = vcombine.high %v481_v30, %v481_v30  ;;  %v664_v37 = vld [vmem:[#allocation2 + $0x30] sm:$0x1e]  ;;  %435 = vst [vmem:[#allocation2 + $0x38] sm:$0x1f] %v434_v46  ;;  %v436_v55 = vld [vmem:[#allocation2 + $0x40] sm:$0x1f]  ;;  %5116 = vmatprep.subr.bf16.mxu1 %v5538_v52 }
  0x99   : > { %v603_v31 = vor.u32 %v602_v19, %v599_v18  ;;  %v4568_v33 = vcombine.low %v728_v57, %v732_v28  ;;  %v4554_v42 = vcombine.low %v664_v37, %v664_v37  ;;  %v4555_v45 = vcombine.high %v664_v37, %v664_v37  ;;  %v977_v3 = vld [vmem:[#allocation2 + $0x8] sm:$0x1e]  ;;  %v798_v28 = vld [vmem:[#allocation2 + $0x10] sm:$0x1f] }
  0x9a   : > { %5075 = vmatpush3.bf16.msra.mxu0 %v5523_v63  ;;  %v611_v43 = vshrl.u32 %v4534_v34, 16  ;;  %v614_v44 = vshll.u32 %v4534_v34, 16  ;;  %v620_v47 = vshll.u32 %v4535_v35, 16  ;;  %v437_v61 = vsel %vm6152_vm8, %v402_v54, %v436_v55  ;;  %v5540_v63 = vld [vmem:[#allocation7 + $0x178] sm:$0xff]   ;;  %5117 = vmatpush3.bf16.msra.mxu1 %v5539_v58  ;;  %v6278_v34 = vld [vmem:[#allocation7 + $0x200] sm:$0xff]  }
  0x9b   : > { %5076 = vmatprep.subr.bf16.mxu0 %v5536_v22  ;;  %v604_v5 = vrot.slane %v603_v31, 4  ;;  %2120 = vmatmul.mubr.bf16.gmra.mrb[8].mxu1 %v4568_v33  ;;  %v6265_v51 = vrot.slane %v4554_v42, 9  ;;  %v735_v57 = vrot.slane %v4555_v45, 5  ;;  %438 = vst [vmem:[#allocation2 + $0x40] sm:$0x1f] %v437_v61  ;;  %v4594_v6 = vcombine.low %v977_v3, %v977_v3  ;;  %v5547_v9 = vld [vmem:[#allocation7 + $0x1b8] sm:$0xff]  }
  0x9c   : > { %v613_v49 = vrot.slane %v611_v43, 4  ;;  %v616_v50 = vrot.slane %v614_v44, 5  ;;  %v622_v59 = vrot.slane %v620_v47, 5  ;;  %v4595_v7 = vcombine.high %v977_v3, %v977_v3  ;;  %5118 = vmatprep.subr.bf16.mxu1 %v5542_v2  ;;  %v797_v25 = vld [vmem:[#allocation2 + $0x8] sm:$0x1f] }
  0x9d   : > { %v609_v40 = vsel %vm6183_vm14, %v604_v5, %v608_v20  ;;  %v736_v12 = vsel %vm6175_vm13, %v6265_v51, %v735_v57  ;;  %v4610_v17 = vrot.slane %v4594_v6, 9  ;;  %v1031_v22 = vrot.slane %v4597_v13, 5  ;;  %v1114_v47 = vld [vmem:[#allocation2 + $0x10] sm:$0x1f] }
  0x9e   : > { %v4540_v53 = vcombine.low %v595_v38, %v609_v40  ;;  %5077 = vmatpush3.bf16.msra.mxu0 %v5537_v27  ;;  %v617_v56 = vor.u32 %v616_v50, %v613_v49  ;;  %v1027_v18 = vrot.slane %v4595_v7, 5  ;;  %5119 = vmatpush3.bf16.msra.mxu1 %v5547_v9  ;;  %v4574_v41 = vcombine.low %v797_v25, %v797_v25  ;;  %v1115_v50 = vld [vmem:[#allocation2 + $0x18] sm:$0x1f] }
  0x9f   : > { %5078 = vmatprep.subr.bf16.mxu0 %v5540_v63  ;;  %v482_v10 = vld [vmem:[#allocation2 + $0x38] sm:$0x1f]  ;;  %v1032_v39 = vsel %vm6175_vm13, %v4611_v21, %v1031_v22  ;;  %v4575_v44 = vcombine.high %v797_v25, %v797_v25  ;;  %v4576_v45 = vcombine.low %v798_v28, %v798_v28  ;;  %v4577_v46 = vcombine.high %v798_v28, %v798_v28 }
  0xa0   : > { %2054 = vmatprep.mubr.bf16.mxu0 %v4540_v53  ;;  %v618_v0 = vrot.slane %v617_v56, 4  ;;  %v4536_v14 = vcombine.low %v482_v10, %v482_v10  ;;  %v4537_v15 = vcombine.high %v482_v10, %v482_v10  ;;  %v665_v16 = vld [vmem:[#allocation2 + $0x38] sm:$0x1e]  ;;  %v1028_v33 = vsel %vm6175_vm13, %v4610_v17, %v1027_v18  ;;  %v980_v17 = vld [vmem:[#allocation2 + $0x20] sm:$0x1e] }
  0xa1   : > { %2055 = vmatmul.mubr.bf16.gmra.mrb[8].mxu0 %v5513_v23  ;;  %v4556_v19 = vcombine.low %v665_v16, %v665_v16  ;;  %v4557_v20 = vcombine.high %v665_v16, %v665_v16  ;;  %v4618_v36 = vcombine.low %v1028_v33, %v1032_v39  ;;  %v846_v40 = vshrl.u32 %v4574_v41, 16  ;;  %v5531_v2 = vld [vmem:[#allocation2 + $0x30] ss:$8 sps:$4 sm:$0xff]  }
  0xa2   : > { %5079 = vmatpush3.bf16.msra.mxu0 %v5541_v1  ;;  %v6271_v11 = vsel %vm6183_vm14, %v618_v0, %v622_v59  ;;  %v625_v29 = vshrl.u32 %v4536_v14, 16  ;;  %v628_v30 = vshll.u32 %v4536_v14, 16  ;;  %v634_v31 = vshll.u32 %v4537_v15, 16  ;;  %v5529_v35 = vld [vmem:[#allocation2 + $0x38] ss:$8 sps:$4 sm:$0xff]  }
  0xa3   : > { %v4565_v37 = vrot.slane %v4556_v19, 9  ;;  %v739_v38 = vrot.slane %v4557_v20, 5  ;;  %5328 = vmatprep.subr.bf16.mxu0 %v6278_v34  ;;  %2127 = vmatprep.mubr.bf16.mxu1 %v5529_v35  ;;  %v849_v49 = vshll.u32 %v4574_v41, 16  ;;  %v855_v51 = vshll.u32 %v4575_v44, 16  ;;  %v979_v7 = vld [vmem:[#allocation2 + $0x18] sm:$0x1e] }
  0xa4   : > { %v627_v42 = vrot.slane %v625_v29, 4  ;;  %v630_v5 = vrot.slane %v628_v30, 5  ;;  %v636_v23 = vrot.slane %v634_v31, 5  ;;  %v860_v52 = vshrl.u32 %v4576_v45, 16  ;;  %v799_v22 = vld [vmem:[#allocation2 + $0x18] sm:$0x1f] }
  0xa5   : > { %v740_v43 = vsel %vm6175_vm13, %v4565_v37, %v739_v38  ;;  %v863_v53 = vshll.u32 %v4576_v45, 16  ;;  %v869_v54 = vshll.u32 %v4577_v46, 16  ;;  %v848_v56 = vrot.slane %v846_v40, 4  ;;  %v5558_v46 = vld [vmem:[#allocation7 + $0x208] sm:$0xff]  }
  0xa6   : > { %v631_v48 = vor.u32 %v630_v5, %v627_v42  ;;  %v4569_v27 = vcombine.low %v736_v12, %v740_v43  ;;  %v851_v57 = vrot.slane %v849_v49, 5  ;;  %v4626_v58 = vcombine.low %v1114_v47, %v1114_v47  ;;  %v800_v42 = vld [vmem:[#allocation2 + $0x20] sm:$0x1f] }
  0xa7   : > { %v857_v59 = vrot.slane %v855_v51, 5  ;;  %v862_v61 = vrot.slane %v860_v52, 4  ;;  %v865_v63 = vrot.slane %v863_v53, 5  ;;  %v871_v0 = vrot.slane %v869_v54, 5  ;;  %v5557_v52 = vld [vmem:[#allocation2 + $0x10] ss:$8 sps:$4 sm:$0xff]  }
  0xa8   : > { %v632_v55 = vrot.slane %v631_v48, 4  ;;  %2128 = vmatmul.mubr.bf16.gmra.mrb[12].mxu1 %v4569_v27  ;;  %v852_v3 = vor.u32 %v851_v57, %v848_v56  ;;  %v4627_v4 = vcombine.high %v1114_v47, %v1114_v47  ;;  %v4628_v6 = vcombine.low %v1115_v50, %v1115_v50  ;;  %v1116_v56 = vld [vmem:[#allocation2 + $0x20] sm:$0x1f] }
  0xa9   : > { %v866_v9 = vor.u32 %v865_v63, %v862_v61  ;;  %v4629_v10 = vcombine.high %v1115_v50, %v1115_v50  ;;  %v1163_v12 = vshrl.u32 %v4626_v58, 16  ;;  %v1166_v14 = vshll.u32 %v4626_v58, 16 }
  0xaa   : > { %v637_v1 = vsel %vm6183_vm14, %v632_v55, %v636_v23  ;;  %v853_v13 = vrot.slane %v852_v3, 4  ;;  %v1172_v15 = vshll.u32 %v4627_v4, 16  ;;  %v1177_v16 = vshrl.u32 %v4628_v6, 16  ;;  %v1117_v3 = vld [vmem:[#allocation2 + $0x28] sm:$0x1f] }
  0xab   : > { %v4541_v8 = vcombine.low %v6271_v11, %v637_v1  ;;  %v867_v18 = vrot.slane %v866_v9, 4  ;;  %v1165_v19 = vrot.slane %v1163_v12, 4  ;;  %v1180_v20 = vshll.u32 %v4628_v6, 16 }
  0xac   : > { %v1186_v21 = vshll.u32 %v4629_v10, 16  ;;  %v858_v25 = vsel %vm6183_vm14, %v853_v13, %v857_v59  ;;  %v1168_v28 = vrot.slane %v1166_v14, 5  ;;  %v1174_v11 = vrot.slane %v1172_v15, 5  ;;  %v5567_v10 = vld [vmem:[#allocation7 + $0x210] sm:$0xff]  }
  0xad   : > { %2062 = vmatprep.mubr.bf16.mxu0 %v4541_v8  ;;  %v1179_v29 = vrot.slane %v1177_v16, 4  ;;  %v872_v30 = vsel %vm6183_vm14, %v867_v18, %v871_v0  ;;  %v1182_v31 = vrot.slane %v1180_v20, 5  ;;  %v4598_v35 = vcombine.low %v979_v7, %v979_v7  ;;  %v981_v18 = vld [vmem:[#allocation2 + $0x28] sm:$0x1e] }
  0xae   : > { %2063 = vmatmul.mubr.bf16.gmra.mrb[12].mxu0 %v5531_v2  ;;  %v1188_v33 = vrot.slane %v1186_v21, 5  ;;  %v4590_v37 = vcombine.low %v858_v25, %v872_v30  ;;  %v1169_v38 = vor.u32 %v1168_v28, %v1165_v19  ;;  %v4599_v39 = vcombine.high %v979_v7, %v979_v7 }
  0xaf   : > { %2168 = vmatprep.mubr.bf16.mxu0 %v4618_v36  ;;  %v4600_v41 = vcombine.low %v980_v17, %v980_v17  ;;  %v1183_v5 = vor.u32 %v1182_v31, %v1179_v29  ;;  %v4601_v23 = vcombine.high %v980_v17, %v980_v17  ;;  %v4612_v43 = vrot.slane %v4598_v35, 9  ;;  %v982_v29 = vld [vmem:[#allocation2 + $0x30] sm:$0x1e] }
  0xb0   : > { %v4578_v44 = vcombine.low %v799_v22, %v799_v22  ;;  %v1170_v45 = vrot.slane %v1169_v38, 4  ;;  %v1035_v47 = vrot.slane %v4599_v39, 5  ;;  %v4579_v36 = vcombine.high %v799_v22, %v799_v22  ;;  %v801_v38 = vld [vmem:[#allocation2 + $0x28] sm:$0x1f] }
  0xb1   : > { %v4613_v48 = vrot.slane %v4600_v41, 9  ;;  %v1184_v27 = vrot.slane %v1183_v5, 4  ;;  %v1039_v40 = vrot.slane %v4601_v23, 5  ;;  %v4580_v49 = vcombine.low %v800_v42, %v800_v42 }
  0xb2   : > { %v4581_v50 = vcombine.high %v800_v42, %v800_v42  ;;  %v1175_v51 = vsel %vm6183_vm14, %v1170_v45, %v1174_v11  ;;  %v1036_v53 = vsel %vm6175_vm13, %v4612_v43, %v1035_v47  ;;  %v874_v54 = vshrl.u32 %v4578_v44, 16 }
  0xb3   : > { %v877_v55 = vshll.u32 %v4578_v44, 16  ;;  %v1189_v57 = vsel %vm6183_vm14, %v1184_v27, %v1188_v33  ;;  %v1040_v58 = vsel %vm6175_vm13, %v4613_v48, %v1039_v40  ;;  %v883_v59 = vshll.u32 %v4579_v36, 16  ;;  %v802_v36 = vld [vmem:[#allocation2 + $0x30] sm:$0x1f] }
  0xb4   : > { %v888_v61 = vshrl.u32 %v4580_v49, 16  ;;  %v4642_v63 = vcombine.low %v1175_v51, %v1189_v57  ;;  %v4619_v0 = vcombine.low %v1036_v53, %v1040_v58  ;;  %v876_v1 = vrot.slane %v874_v54, 4  ;;  %v5572_v54 = vld [vmem:[#allocation2 + $0x20] ss:$8 sps:$4 sm:$0xff]  }
  0xb5   : > { %v879_v2 = vrot.slane %v877_v55, 5  ;;  %v891_v6 = vshll.u32 %v4580_v49, 16  ;;  %v897_v7 = vshll.u32 %v4581_v50, 16  ;;  %v885_v9 = vrot.slane %v883_v59, 5 }
  0xb6   : > { %2169 = vmatmul.mubr.bf16.vlgmr.msra.gmra.mrb[16].mxu0 %v4590_v37  ;;  %v890_v4 = vrot.slane %v888_v61, 4  ;;  %2233 = vmatprep.mubr.bf16.mxu1 %v4642_v63  ;;  %v4630_v12 = vcombine.low %v1116_v56, %v1116_v56  ;;  %v4631_v13 = vcombine.high %v1116_v56, %v1116_v56  ;;  %v4632_v16 = vcombine.low %v1117_v3, %v1117_v3  ;;  %v5573_v37 = vld [vmem:[#allocation7 + $0x218] sm:$0xff]  }
  0xb7   : > { %5329 = vmatpush3.bf16.msra.mxu0 %v6278_v34  ;;  %v880_v8 = vor.u32 %v879_v2, %v876_v1  ;;  %2234 = vmatmul.mubr.bf16.vlgmr.msra.gmra.mrb[16].mxu1 %v5557_v52  ;;  %v893_v14 = vrot.slane %v891_v6, 5  ;;  %v899_v15 = vrot.slane %v897_v7, 5  ;;  %v4633_v17 = vcombine.high %v1117_v3, %v1117_v3  ;;  %v5582_v52 = vld [vmem:[#allocation7 + $0x220] sm:$0xff]   ;;  %v1119_v1 = vld [vmem:[#allocation2 + $0x38] sm:$0x1f] }
  0xb8   : > { %5330 = vmatprep.subr.bf16.mxu0 %v5558_v46  ;;  %2176 = vmatprep.mubr.bf16.mxu0 %v4619_v0  ;;  %v1191_v20 = vshrl.u32 %v4630_v12, 16  ;;  %v1194_v34 = vshll.u32 %v4630_v12, 16  ;;  %v1200_v21 = vshll.u32 %v4631_v13, 16  ;;  %v1205_v25 = vshrl.u32 %v4632_v16, 16  ;;  %v1118_v0 = vld [vmem:[#allocation2 + $0x30] sm:$0x1f] }
  0xb9   : > { %v881_v19 = vrot.slane %v880_v8, 4  ;;  %v894_v22 = vor.u32 %v893_v14, %v890_v4  ;;  %v1208_v28 = vshll.u32 %v4632_v16, 16  ;;  %v1214_v11 = vshll.u32 %v4633_v17, 16  ;;  %v5588_v2 = vld [vmem:[#allocation7 + $0x228] sm:$0xff]  }
  0xba   : > { %v1193_v31 = vrot.slane %v1191_v20, 4  ;;  %v1196_v33 = vrot.slane %v1194_v34, 5  ;;  %v1202_v35 = vrot.slane %v1200_v21, 5  ;;  %v1207_v41 = vrot.slane %v1205_v25, 4 }
  0xbb   : > { %5331 = vmatpush3.bf16.msra.mxu0 %v5558_v46  ;;  %v886_v30 = vsel %vm6183_vm14, %v881_v19, %v885_v9  ;;  %v895_v39 = vrot.slane %v894_v22, 4  ;;  %v1210_v42 = vrot.slane %v1208_v28, 5  ;;  %v1216_v5 = vrot.slane %v1214_v11, 5  ;;  %v983_v28 = vld [vmem:[#allocation2 + $0x38] sm:$0x1e] }
  0xbc   : > { %5332 = vmatprep.subr.bf16.mxu0 %v5567_v10  ;;  %v1197_v23 = vor.u32 %v1196_v33, %v1193_v31  ;;  %v4602_v43 = vcombine.low %v981_v18, %v981_v18  ;;  %v4603_v44 = vcombine.high %v981_v18, %v981_v18  ;;  %v4604_v45 = vcombine.low %v982_v29, %v982_v29  ;;  %v984_v33 = vld [vmem:[#allocation2 + $0x40] sm:$0x1e] }
  0xbd   : > { %v900_v46 = vsel %vm6183_vm14, %v895_v39, %v899_v15  ;;  %v1211_v47 = vor.u32 %v1210_v42, %v1207_v41  ;;  %v4605_v48 = vcombine.high %v982_v29, %v982_v29  ;;  %v4582_v27 = vcombine.low %v801_v38, %v801_v38 }
  0xbe   : > { %v4591_v40 = vcombine.low %v886_v30, %v900_v46  ;;  %v1198_v49 = vrot.slane %v1197_v23, 4  ;;  %v4614_v50 = vrot.slane %v4602_v43, 9  ;;  %v1043_v51 = vrot.slane %v4603_v44, 5  ;;  %v803_v44 = vld [vmem:[#allocation2 + $0x38] sm:$0x1f] }
  0xbf   : > { %5333 = vmatpush3.bf16.msra.mxu0 %v5567_v10  ;;  %v1212_v53 = vrot.slane %v1211_v47, 4  ;;  %v4615_v55 = vrot.slane %v4604_v45, 9  ;;  %v1047_v56 = vrot.slane %v4605_v48, 5  ;;  %v4583_v57 = vcombine.high %v801_v38, %v801_v38 }
  0xc0   : > { %5334 = vmatprep.subr.bf16.mxu0 %v5573_v37  ;;  %2177 = vmatmul.mubr.bf16.gmra.mrb[20].mxu0 %v4591_v40  ;;  %v1203_v58 = vsel %vm6183_vm14, %v1198_v49, %v1202_v35  ;;  %v1044_v59 = vsel %vm6175_vm13, %v4614_v50, %v1043_v51  ;;  %v4584_v61 = vcombine.low %v802_v36, %v802_v36  ;;  %v902_v6 = vshrl.u32 %v4582_v27, 16  ;;  %v5597_v35 = vld [vmem:[#allocation7 + $0x230] sm:$0xff]   ;;  %v5603_v51 = vld [vmem:[#allocation7 + $0x238] sm:$0xff]  }
  0xc1   : > { %v4585_v63 = vcombine.high %v802_v36, %v802_v36  ;;  %v1217_v3 = vsel %vm6183_vm14, %v1212_v53, %v1216_v5  ;;  %v1048_v4 = vsel %vm6175_vm13, %v4615_v55, %v1047_v56  ;;  %v905_v7 = vshll.u32 %v4582_v27, 16  ;;  %v804_v36 = vld [vmem:[#allocation2 + $0x40] sm:$0x1f] }
  0xc2   : > { %v4643_v8 = vcombine.low %v1203_v58, %v1217_v3  ;;  %v4620_v9 = vcombine.low %v1044_v59, %v1048_v4  ;;  %v911_v10 = vshll.u32 %v4583_v57, 16  ;;  %v916_v12 = vshrl.u32 %v4584_v61, 16  ;;  %v295_v3 = vld [vmem:[#allocation2 + $0x48] sm:$0x1]  ;;  %v328_v4 = vld [vmem:[#allocation2 + $0x48] sm:$0xf0] }
  0xc3   : > { %5335 = vmatpush3.bf16.msra.mxu0 %v5573_v37  ;;  %v904_v13 = vrot.slane %v902_v6, 4  ;;  %v907_v14 = vrot.slane %v905_v7, 5  ;;  %v919_v15 = vshll.u32 %v4584_v61, 16  ;;  %v925_v16 = vshll.u32 %v4585_v63, 16  ;;  %v5587_v63 = vld [vmem:[#allocation2 + $0x30] ss:$8 sps:$4 sm:$0xff]  }
  0xc4   : > { %5336 = vmatprep.subr.bf16.mxu0 %v5582_v52  ;;  %2241 = vmatprep.mubr.bf16.mxu1 %v4643_v8  ;;  %v913_v17 = vrot.slane %v911_v10, 5  ;;  %v918_v18 = vrot.slane %v916_v12, 4  ;;  %v4634_v19 = vcombine.low %v1118_v0, %v1118_v0  ;;  %v4635_v20 = vcombine.high %v1118_v0, %v1118_v0  ;;  %v1120_v10 = vld [vmem:[#allocation2 + $0x40] sm:$0x1f] }
  0xc5   : > { %2184 = vmatprep.mubr.bf16.mxu0 %v4620_v9  ;;  %2242 = vmatmul.mubr.bf16.gmra.mrb[20].mxu1 %v5572_v54  ;;  %v908_v34 = vor.u32 %v907_v14, %v904_v13  ;;  %v921_v21 = vrot.slane %v919_v15, 5  ;;  %v927_v22 = vrot.slane %v925_v16, 5  ;;  %v4636_v25 = vcombine.low %v1119_v1, %v1119_v1  ;;  %v1294_v16 = vld [vmem:[#allocation2 + $0x10] sm:$0x1e] }
  0xc6   : > { %v4637_v11 = vcombine.high %v1119_v1, %v1119_v1  ;;  %v1219_v29 = vshrl.u32 %v4634_v19, 16  ;;  %v1222_v30 = vshll.u32 %v4634_v19, 16  ;;  %v1228_v31 = vshll.u32 %v4635_v20, 16 }
  0xc7   : > { %5337 = vmatpush3.bf16.msra.mxu0 %v5582_v52  ;;  %v909_v37 = vrot.slane %v908_v34, 4  ;;  %v922_v38 = vor.u32 %v921_v21, %v918_v18  ;;  %v1233_v39 = vshrl.u32 %v4636_v25, 16  ;;  %v1236_v41 = vshll.u32 %v4636_v25, 16  ;;  %v1295_v34 = vld [vmem:[#allocation2 + $0x18] sm:$0x1e] }
  0xc8   : > { %5338 = vmatprep.subr.bf16.mxu0 %v5588_v2  ;;  %v1221_v42 = vrot.slane %v1219_v29, 4  ;;  %v1224_v5 = vrot.slane %v1222_v30, 5  ;;  %v1230_v23 = vrot.slane %v1228_v31, 5  ;;  %v1242_v43 = vshll.u32 %v4637_v11, 16 }
  0xc9   : > { %v914_v45 = vsel %vm6183_vm14, %v909_v37, %v913_v17  ;;  %v923_v46 = vrot.slane %v922_v38, 4  ;;  %v1235_v47 = vrot.slane %v1233_v39, 4  ;;  %v1238_v48 = vrot.slane %v1236_v41, 5 }
  0xca   : > { %v1225_v27 = vor.u32 %v1224_v5, %v1221_v42  ;;  %v1244_v40 = vrot.slane %v1242_v43, 5  ;;  %v4606_v49 = vcombine.low %v983_v28, %v983_v28  ;;  %v4607_v50 = vcombine.high %v983_v28, %v983_v28 }
  0xcb   : > { %5339 = vmatpush3.bf16.msra.mxu0 %v5588_v2  ;;  %v928_v52 = vsel %vm6183_vm14, %v923_v46, %v927_v22  ;;  %v1239_v53 = vor.u32 %v1238_v48, %v1235_v47  ;;  %v4608_v54 = vcombine.low %v984_v33, %v984_v33  ;;  %v4609_v55 = vcombine.high %v984_v33, %v984_v33  ;;  %v1297_v46 = vld [vmem:[#allocation2 + $0x28] sm:$0x1e] }
  0xcc   : > { %5340 = vmatprep.subr.bf16.mxu0 %v5597_v35  ;;  %v4592_v56 = vcombine.low %v914_v45, %v928_v52  ;;  %v1226_v57 = vrot.slane %v1225_v27, 4  ;;  %v4616_v58 = vrot.slane %v4606_v49, 9  ;;  %v1051_v59 = vrot.slane %v4607_v50, 5 }
  0xcd   : > { %v1240_v61 = vrot.slane %v1239_v53, 4  ;;  %v4617_v0 = vrot.slane %v4608_v54, 9  ;;  %v1055_v1 = vrot.slane %v4609_v55, 5  ;;  %v4586_v2 = vcombine.low %v803_v44, %v803_v44 }
  0xce   : > { %2185 = vmatmul.mubr.bf16.gmra.mrb[24].mxu0 %v4592_v56  ;;  %v1231_v6 = vsel %vm6183_vm14, %v1226_v57, %v1230_v23  ;;  %v1052_v7 = vsel %vm6175_vm13, %v4616_v58, %v1051_v59  ;;  %v4587_v8 = vcombine.high %v803_v44, %v803_v44  ;;  %v4588_v9 = vcombine.low %v804_v36, %v804_v36  ;;  %v1296_v23 = vld [vmem:[#allocation2 + $0x20] sm:$0x1e] }
  0xcf   : > { %5341 = vmatpush3.bf16.msra.mxu0 %v5597_v35  ;;  %v1245_v12 = vsel %vm6183_vm14, %v1240_v61, %v1244_v40  ;;  %v1056_v13 = vsel %vm6175_vm13, %v4617_v0, %v1055_v1  ;;  %v4589_v14 = vcombine.high %v804_v36, %v804_v36  ;;  %v930_v15 = vshrl.u32 %v4586_v2, 16  ;;  %v1298_v1 = vld [vmem:[#allocation2 + $0x30] sm:$0x1e] }
  0xd0   : > { %5342 = vmatprep.subr.bf16.mxu0 %v5603_v51  ;;  %v4644_v17 = vcombine.low %v1231_v6, %v1245_v12  ;;  %v4621_v18 = vcombine.low %v1052_v7, %v1056_v13  ;;  %v933_v19 = vshll.u32 %v4586_v2, 16  ;;  %v939_v20 = vshll.u32 %v4587_v8, 16  ;;  %v1299_v7 = vld [vmem:[#allocation2 + $0x38] sm:$0x1e]  ;;  %v1300_v13 = vld [vmem:[#allocation2 + $0x40] sm:$0x1e] }
  0xd1   : > { %v932_v21 = vrot.slane %v930_v15, 4  ;;  %v944_v22 = vshrl.u32 %v4588_v9, 16  ;;  %v947_v25 = vshll.u32 %v4588_v9, 16  ;;  %v953_v28 = vshll.u32 %v4589_v14, 16 }
  0xd2   : > { %2249 = vmatprep.mubr.bf16.mxu1 %v4644_v17  ;;  %2192 = vmatprep.mubr.bf16.mxu0 %v4621_v18  ;;  %v935_v11 = vrot.slane %v933_v19, 5  ;;  %v941_v29 = vrot.slane %v939_v20, 5  ;;  %v296_v30 = vsel %vm6128_vm4, 0, %v295_v3  ;;  %v329_v31 = vsel %vm6133_vm5, 0, %v328_v4 }
  0xd3   : > { %5343 = vmatpush3.bf16.msra.mxu0 %v5603_v51  ;;  %2250 = vmatmul.mubr.bf16.gmra.mrb[24].mxu1 %v5587_v63  ;;  %v946_v33 = vrot.slane %v944_v22, 4  ;;  %v949_v35 = vrot.slane %v947_v25, 5  ;;  %v955_v37 = vrot.slane %v953_v28, 5  ;;  %297 = vst [vmem:[#allocation2 + $0x48] sm:$0x1] %v296_v30  ;;  %v4638_v38 = vcombine.low %v1120_v10, %v1120_v10 }
  0xd4   : > { %330 = vst [vmem:[#allocation2 + $0x48] sm:$0xf0] %v329_v31  ;;  %v936_v39 = vor.u32 %v935_v11, %v932_v21  ;;  %v4639_v41 = vcombine.high %v1120_v10, %v1120_v10  ;;  %v4646_v42 = vcombine.low %v1294_v16, %v1294_v16  ;;  %v4647_v5 = vcombine.high %v1294_v16, %v1294_v16 }
  0xd5   : > { %v950_v43 = vor.u32 %v949_v35, %v946_v33  ;;  %v1247_v44 = vshrl.u32 %v4638_v38, 16  ;;  %v1250_v45 = vshll.u32 %v4638_v38, 16  ;;  %v4648_v24 = vcombine.low %v1295_v34, %v1295_v34 }
  0xd6   : > { %v937_v47 = vrot.slane %v936_v39, 4  ;;  %v1256_v26 = vshll.u32 %v4639_v41, 16  ;;  %v4649_v48 = vcombine.high %v1295_v34, %v1295_v34  ;;  %v4662_v36 = vrot.slane %v4646_v42, 9 }
  0xd7   : > { %v951_v27 = vrot.slane %v950_v43, 4  ;;  %v1249_v40 = vrot.slane %v1247_v44, 4  ;;  %v1252_v49 = vrot.slane %v1250_v45, 5  ;;  %v1344_v50 = vrot.slane %v4647_v5, 5 }
  0xd8   : > { %v942_v51 = vsel %vm6183_vm14, %v937_v47, %v941_v29  ;;  %v4663_v52 = vrot.slane %v4648_v24, 9  ;;  %v1348_v53 = vrot.slane %v4649_v48, 5  ;;  %v4650_v57 = vcombine.low %v1296_v23, %v1296_v23 }
  0xd9   : > { %v956_v54 = vsel %vm6183_vm14, %v951_v27, %v955_v37  ;;  %v1253_v55 = vor.u32 %v1252_v49, %v1249_v40  ;;  %v1345_v56 = vsel %vm6175_vm13, %v4662_v36, %v1344_v50  ;;  %v4651_v63 = vcombine.high %v1296_v23, %v1296_v23 }
  0xda   : > { %v4593_v58 = vcombine.low %v942_v51, %v956_v54  ;;  %v1349_v61 = vsel %vm6175_vm13, %v4663_v52, %v1348_v53  ;;  %v4652_v0 = vcombine.low %v1297_v46, %v1297_v46  ;;  %v1258_v4 = vrot.slane %v1256_v26, 5  ;;  %v5602_v45 = vld [vmem:[#allocation2 + $0x40] ss:$8 sps:$4 sm:$0xff]   ;;  %v5620_v53 = vld [vmem:[#allocation7 + $0xc0] sm:$0xff]  }
  0xdb   : > { %v1121_v59 = vld [vmem:[#allocation2 + $0x48] sm:$0x1f]  ;;  %v4670_v6 = vcombine.low %v1345_v56, %v1349_v61  ;;  %v4653_v8 = vcombine.high %v1297_v46, %v1297_v46  ;;  %v4664_v9 = vrot.slane %v4650_v57, 9  ;;  %v1352_v10 = vrot.slane %v4651_v63, 5  ;;  %v5621_v54 = vld [vmem:[#allocation7 + $0x80] sm:$0xff]   ;;  %5196 = vmatprep.subr.bf16.mxu0 %v5620_v53  ;;  %v5623_v56 = vld [vmem:[#allocation7 + $0x88] sm:$0xff]  }
  0xdc   : > { %v4640_v2 = vcombine.low %v1121_v59, %v1121_v59  ;;  %v4641_v3 = vcombine.high %v1121_v59, %v1121_v59  ;;  %2193 = vmatmul.mubr.bf16.gmra.mrb[28].mxu0 %v4593_v58  ;;  %v4665_v12 = vrot.slane %v4652_v0, 9  ;;  %v1254_v14 = vrot.slane %v1253_v55, 4  ;;  %v1301_v18 = vld [vmem:[#allocation2 + $0x48] sm:$0x1e]  ;;  %v5622_v55 = vld [vmem:[#allocation7 + $0xc8] sm:$0xff]  }
  0xdd   : > { %5344 = vmatprep.mubr.bf16.mxu0 %v4670_v6  ;;  %v1353_v19 = vsel %vm6175_vm13, %v4664_v9, %v1352_v10  ;;  %v1356_v20 = vrot.slane %v4653_v8, 5  ;;  %v4654_v34 = vcombine.low %v1298_v1, %v1298_v1  ;;  %v4655_v21 = vcombine.high %v1298_v1, %v1298_v1  ;;  %v5626_v6 = vld [vmem:[#allocation7 + $0xd0] sm:$0xff]  }
  0xde   : > { %v1261_v15 = vshrl.u32 %v4640_v2, 16  ;;  %v1264_v16 = vshll.u32 %v4640_v2, 16  ;;  %v1270_v17 = vshll.u32 %v4641_v3, 16  ;;  %v4656_v11 = vcombine.low %v1299_v7, %v1299_v7  ;;  %v5624_v2 = vld [vmem:[#allocation7 + $0x40] sm:$0xff]   ;;  %v5627_v9 = vld [vmem:[#allocation7 + $0x90] sm:$0xff]  }
  0xdf   : > { %v1357_v29 = vsel %vm6175_vm13, %v4665_v12, %v1356_v20  ;;  %v4657_v30 = vcombine.high %v1299_v7, %v1299_v7  ;;  %v4666_v31 = vrot.slane %v4654_v34, 9  ;;  %v1360_v33 = vrot.slane %v4655_v21, 5  ;;  %5156 = vmatprep.subr.bf16.mxu1 %v5624_v2  ;;  %v5632_v20 = vld [vmem:[#allocation7 + $0x50] sm:$0xff]  }
  0xe0   : > { %v1263_v22 = vrot.slane %v1261_v15, 4  ;;  %v1266_v25 = vrot.slane %v1264_v16, 5  ;;  %v1272_v28 = vrot.slane %v1270_v17, 5  ;;  %v4671_v37 = vcombine.low %v1353_v19, %v1357_v29  ;;  %v5629_v15 = vld [vmem:[#allocation7 + $0x8] sm:$0xff]   ;;  %v5630_v16 = vld [vmem:[#allocation7 + $0xd8] sm:$0xff]   ;;  %v5633_v21 = vld [vmem:[#allocation7 + $0x10] sm:$0xff]  }
  0xe1   : > { %v4667_v38 = vrot.slane %v4656_v11, 9  ;;  %v4658_v39 = vcombine.low %v1300_v13, %v1300_v13  ;;  %v1361_v41 = vsel %vm6175_vm13, %v4666_v31, %v1360_v33  ;;  %v1364_v42 = vrot.slane %v4657_v30, 5  ;;  %v5635_v11 = vld [vmem:[#allocation7 + $0xa0] sm:$0xff]   ;;  %v5636_v31 = vld [vmem:[#allocation7 + $0x58] sm:$0xff]  }
  0xe2   : > { %v1267_v35 = vor.u32 %v1266_v25, %v1263_v22  ;;  %v4659_v5 = vcombine.high %v1300_v13, %v1300_v13  ;;  %v4660_v23 = vcombine.low %v1301_v18, %v1301_v18  ;;  %v1259_v43 = vsel %vm6183_vm14, %v1254_v14, %v1258_v4  ;;  %v5625_v4 = vld [vmem:[#allocation7] sm:$0xff]   ;;  %v5628_v14 = vld [vmem:[#allocation7 + $0x48] sm:$0xff]   ;;  %v5637_v33 = vld [vmem:[#allocation7 + $0x18] sm:$0xff]  }
  0xe3   : > { %v4661_v24 = vcombine.high %v1301_v18, %v1301_v18  ;;  %v4668_v46 = vrot.slane %v4658_v39, 9  ;;  %v1365_v47 = vsel %vm6175_vm13, %v4667_v38, %v1364_v42  ;;  %5157 = vmatpush3.bf16.msra.mxu1 %v5625_v4  ;;  %v5631_v18 = vld [vmem:[#allocation7 + $0x98] sm:$0xff]   ;;  %v5634_v22 = vld [vmem:[#allocation7 + $0xe0] sm:$0xff]   ;;  %v5639_v38 = vld [vmem:[#allocation7 + $0xa8] sm:$0xff]  }
  0xe4   : > { %v1268_v44 = vrot.slane %v1267_v35, 4  ;;  %5345 = vmatmul.mubr.bf16.vlgmr.msra.gmra.mrb[32].mxu0 %v4671_v37  ;;  %v1368_v26 = vrot.slane %v4659_v5, 5  ;;  %v4669_v48 = vrot.slane %v4660_v23, 9  ;;  %v4672_v27 = vcombine.low %v1361_v41, %v1365_v47  ;;  %5158 = vmatprep.subr.bf16.mxu1 %v5628_v14  ;;  %v5638_v35 = vld [vmem:[#allocation7 + $0xe8] sm:$0xff]   ;;  %v5640_v39 = vld [vmem:[#allocation7 + $0x60] sm:$0xff]   ;;  %v5642_v5 = vld [vmem:[#allocation7 + $0xf0] sm:$0xff]  }
  0xe5   : > { %v1372_v40 = vrot.slane %v4661_v24, 5  ;;  %5197 = vmatpush3.bf16.msra.mxu0 %v5621_v54  ;;  %v5641_v42 = vld [vmem:[#allocation7 + $0x20] sm:$0xff]  }
  0xe6   : > { %v1273_v36 = vsel %vm6183_vm14, %v1268_v44, %v1272_v28  ;;  %v1369_v50 = vsel %vm6175_vm13, %v4668_v46, %v1368_v26  ;;  %5348 = vmatprep.mubr.bf16.mxu0 %v4672_v27  ;;  %5198 = vmatprep.subr.bf16.mxu0 %v5622_v55  ;;  %v5643_v44 = vld [vmem:[#allocation7 + $0xb0] sm:$0xff]   ;;  %v5646_v46 = vld [vmem:[#allocation7 + $0xf8] sm:$0xff]  }
  0xe7   : > { %v4645_v49 = vcombine.low %v1259_v43, %v1273_v36  ;;  %v1373_v51 = vsel %vm6175_vm13, %v4669_v48, %v1372_v40  ;;  %5159 = vmatpush3.bf16.msra.mxu1 %v5629_v15  ;;  %v5645_v48 = vld [vmem:[#allocation7 + $0x28] sm:$0xff]   ;;  %v5647_v27 = vld [vmem:[#allocation7 + $0xb8] sm:$0xff]   ;;  %v5649_v40 = vld [vmem:[#allocation7 + $0x70] sm:$0xff]  }
  0xe8   : > { %v4673_v52 = vcombine.low %v1369_v50, %v1373_v51  ;;  %5160 = vmatprep.subr.bf16.mxu1 %v5632_v20  ;;  %v5650_v50 = vld [vmem:[#allocation7 + $0x30] sm:$0xff]  }
  0xe9   : > { %2257 = vmatprep.mubr.bf16.mxu1 %v4645_v49  ;;  %5199 = vmatpush3.bf16.msra.mxu0 %v5623_v56  ;;  %v5655_v49 = vld [vmem:[#allocation7 + $0x1c0] sm:$0xff]  }
  0xea   : > { %2258 = vmatmul.mubr.bf16.gmra.mrb[28].mxu1 %v5602_v45  ;;  %5200 = vmatprep.subr.bf16.mxu0 %v5626_v6  ;;  %v5644_v45 = vld [vmem:[#allocation7 + $0x68] sm:$0xff]  }
  0xeb   : > { %5161 = vmatpush3.bf16.msra.mxu1 %v5633_v21 }
  0xec   : > { %5349 = vmatmul.mubr.bf16.gmra.mrb[36].mxu0 %v4673_v52  ;;  %5162 = vmatprep.subr.bf16.mxu1 %v5636_v31  ;;  %v5658_v52 = vld [vmem:[#allocation7 + $0x78] sm:$0xff]  }
  0xed   : > { %5201 = vmatpush3.bf16.msra.mxu0 %v5627_v9 }
  0xee   : > { %5202 = vmatprep.subr.bf16.mxu0 %v5630_v16 }
  0xef   : > { %5163 = vmatpush3.bf16.msra.mxu1 %v5637_v33 }
  0xf0   : > { %5164 = vmatprep.subr.bf16.mxu1 %v5640_v39 }
  0xf1   : > { %5203 = vmatpush3.bf16.msra.mxu0 %v5631_v18 }
  0xf2   : > { %5204 = vmatprep.subr.bf16.mxu0 %v5634_v22 }
  0xf3   : > { %5165 = vmatpush3.bf16.msra.mxu1 %v5641_v42 }
  0xf4   : > { %5166 = vmatprep.subr.bf16.mxu1 %v5644_v45 }
  0xf5   : > { %5205 = vmatpush3.bf16.msra.mxu0 %v5635_v11 }
  0xf6   : > { %5206 = vmatprep.subr.bf16.mxu0 %v5638_v35 }
  0xf7   : > { %5167 = vmatpush3.bf16.msra.mxu1 %v5645_v48 }
  0xf8   : > { %5168 = vmatprep.subr.bf16.mxu1 %v5649_v40 }
  0xf9   : > { %5207 = vmatpush3.bf16.msra.mxu0 %v5639_v38 }
  0xfa   : > { %5208 = vmatprep.subr.bf16.mxu0 %v5642_v5 }
  0xfb   : > { %5169 = vmatpush3.bf16.msra.mxu1 %v5650_v50 }
  0xfc   : > { %5170 = vmatprep.subr.bf16.mxu1 %v5658_v52 }
  0xfd   : > { %5209 = vmatpush3.bf16.msra.mxu0 %v5643_v44 }
  0xfe   : > { %5210 = vmatprep.subr.bf16.mxu0 %v5646_v46 }
 0x101   : > { %5211 = vmatpush3.bf16.msra.mxu0 %v5647_v27 }
 0x102   : > { %5276 = vmatprep.subr.bf16.mxu0 %v5655_v49 }
 0x154   : > { %v5040_v57 = vpop.f32.mrb[0].mxu1 }
 0x155   : > { %v5041_v58 = vpop.f32.mrb[1].mxu1 }
 0x156   : > { %v5042_v59 = vadd.f32 %v5041_v58, %v5040_v57  ;;  %v5043_v61 = vpop.f32.mrb[2].mxu1  ;;  %v5659_v57 = vld [vmem:[#allocation7 + $0x38] sm:$0xff]  }
 0x157   : > { %v5044_v63 = vpop.f32.mrb[3].mxu1  ;;  %5171 = vmatpush3.bf16.msra.mxu1 %v5659_v57 }
 0x158   : > { %v5000_v0 = vpop.f32.mrb[0].mxu0  ;;  %v5045_v1 = vadd.f32 %v5044_v63, %v5043_v61 }
 0x159   : > { %v5001_v3 = vpop.f32.mrb[1].mxu0 }
 0x15a   : > { %v5002_v7 = vadd.f32 %v5001_v3, %v5000_v0  ;;  %v5003_v8 = vpop.f32.mrb[2].mxu0 }
 0x15b   : > { %v5004_v10 = vpop.f32.mrb[3].mxu0 }
 0x15c   : > { %v6353_v12 = vadd.f32 %v5042_v59, %v5002_v7  ;;  %v5005_v13 = vadd.f32 %v5004_v10, %v5003_v8  ;;  %v5667_v59 = vld [vmem:[#allocation7 + $0x140] sm:$0xff]  }
 0x15d   : > { %5236 = vmatprep.subr.bf16.mxu1 %v5667_v59 }
 0x15e   : > { %v6355_v17 = vadd.f32 %v5045_v1, %v5005_v13 }
 0x15f   : > { %v5046_v19 = vpop.f32.mrb[4].mxu1 }
 0x160   : > { %v5047_v34 = vpop.f32.mrb[5].mxu1 }
 0x161   : > { %v5048_v25 = vadd.f32 %v5047_v34, %v5046_v19  ;;  %v5049_v28 = vpop.f32.mrb[6].mxu1 }
 0x162   : > { %v5050_v29 = vpop.f32.mrb[7].mxu1 }
 0x163   : > { %v5051_v30 = vadd.f32 %v5050_v29, %v5049_v28 }
 0x164   : > { %v5006_v37 = vpop.f32.mrb[4].mxu0 }
 0x165   : > { %v5007_v41 = vpop.f32.mrb[5].mxu0 }
 0x166   : > { %v5008_v23 = vadd.f32 %v5007_v41, %v5006_v37  ;;  %v5009_v43 = vpop.f32.mrb[6].mxu0 }
 0x167   : > { %v5010_v24 = vpop.f32.mrb[7].mxu0 }
 0x168   : > { %v6357_v47 = vadd.f32 %v5048_v25, %v5008_v23  ;;  %v5011_v26 = vadd.f32 %v5010_v24, %v5009_v43 }
 0x16a   : > { %v6359_v36 = vadd.f32 %v5051_v30, %v5011_v26 }
 0x16e   : > { %v5052_v51 = vpop.f32.mrb[8].mxu1 }
 0x16f   : > { %v5053_v53 = vpop.f32.mrb[9].mxu1 }
 0x170   : > { %v5054_v54 = vadd.f32 %v5053_v53, %v5052_v51  ;;  %v5055_v55 = vpop.f32.mrb[10].mxu1 }
 0x171   : > { %v5056_v56 = vpop.f32.mrb[11].mxu1 }
 0x172   : > { %v5057_v58 = vadd.f32 %v5056_v56, %v5055_v55 }
 0x174   : > { %v5012_v61 = vpop.f32.mrb[8].mxu0 }
 0x175   : > { %v5013_v63 = vpop.f32.mrb[9].mxu0 }
 0x176   : > { %v5014_v0 = vadd.f32 %v5013_v63, %v5012_v61  ;;  %v5015_v1 = vpop.f32.mrb[10].mxu0 }
 0x177   : > { %v5016_v2 = vpop.f32.mrb[11].mxu0 }
 0x178   : > { %v2122_v3 = vadd.f32 %v5054_v54, %v5014_v0  ;;  %v5017_v4 = vadd.f32 %v5016_v2, %v5015_v1 }
 0x17a   : > { %v2125_v6 = vadd.f32 %v5057_v58, %v5017_v4 }
 0x17b   : > { %v5058_v7 = vpop.f32.mrb[12].mxu1 }
 0x17c   : > { %v5059_v8 = vpop.f32.mrb[13].mxu1 }
 0x17d   : > { %v5060_v9 = vadd.f32 %v5059_v8, %v5058_v7  ;;  %v5061_v10 = vpop.f32.mrb[14].mxu1 }
 0x17e   : > { %v5062_v13 = vpop.f32.mrb[15].mxu1 }
 0x17f   : > { %v5063_v14 = vadd.f32 %v5062_v13, %v5061_v10  ;;  %v2521_v10 = vld [vmem:[#allocation2] sm:$0x1f] }
 0x181   : > { %v5018_v15 = vpop.f32.mrb[12].mxu0 }
 0x182   : > { %v5019_v16 = vpop.f32.mrb[13].mxu0 }
 0x183   : > { %v5020_v18 = vadd.f32 %v5019_v16, %v5018_v15  ;;  %v5021_v19 = vpop.f32.mrb[14].mxu0  ;;  %v6371_v15 = vld [vmem:[#allocation2 + $0x48] sm:$0x1f] }
 0x184   : > { %v5022_v20 = vpop.f32.mrb[15].mxu0 }
 0x185   : > { %v2130_v34 = vadd.f32 %v5060_v9, %v5020_v18  ;;  %v5023_v21 = vadd.f32 %v5022_v20, %v5021_v19 }
 0x187   : > { %v2133_v22 = vadd.f32 %v5063_v14, %v5023_v21  ;;  %v2701_v21 = vld [vmem:[#allocation2] sm:$0x1e] }
 0x189   : > { %v5080_v25 = vpop.f32.mrb[16].mxu0 }
 0x18a   : > { %v5081_v28 = vpop.f32.mrb[17].mxu0  ;;  %v5120_v30 = vpop.f32.mrb[16].mxu1 }
 0x18b   : > { %v5082_v11 = vadd.f32 %v5081_v28, %v5080_v25  ;;  %v5083_v29 = vpop.f32.mrb[18].mxu0  ;;  %v5121_v37 = vpop.f32.mrb[17].mxu1  ;;  %v4871_v25 = vcombine.low %v6371_v15, %v6371_v15 }
 0x18c   : > { %v5084_v31 = vpop.f32.mrb[19].mxu0  ;;  %v5122_v38 = vadd.f32 %v5121_v37, %v5120_v30  ;;  %v5123_v39 = vpop.f32.mrb[18].mxu1  ;;  %v4773_v30 = vcombine.low %v2701_v21, %v2701_v21 }
 0x18d   : > { %v2171_v33 = vadd.f32 %v5082_v11, %v6353_v12  ;;  %v5085_v35 = vadd.f32 %v5084_v31, %v5083_v29  ;;  %v5124_v42 = vpop.f32.mrb[19].mxu1  ;;  %v6382_v31 = vld [vmem:[%s6680_s2] ss:$0 sm:$0xff]  ;;  %v3303_v37 = vshll.u32 %v4871_v25, 16 }
 0x18e   : > { %v5125_v5 = vadd.f32 %v5124_v42, %v5123_v39  ;;  %v4774_v39 = vcombine.high %v2701_v21, %v2701_v21 }
 0x18f   : > { %v2174_v41 = vadd.f32 %v5085_v35, %v6355_v17  ;;  %v2236_v23 = vadd.f32 %v5122_v38, %v2171_v33  ;;  %v3300_v35 = vshrl.u32 %v4871_v25, 16 }
 0x191   : > { %v6363_v43 = vadd.f32 %v5125_v5, %v2174_v41  ;;  %v4754_v41 = vcombine.high %v2521_v10, %v2521_v10 }
 0x193   : > { %v5086_v44 = vpop.f32.mrb[20].mxu0 }
 0x194   : > { %v5087_v45 = vpop.f32.mrb[21].mxu0 }
 0x195   : > { %v5088_v24 = vadd.f32 %v5087_v45, %v5086_v44  ;;  %v5089_v46 = vpop.f32.mrb[22].mxu0 }
 0x196   : > { %v5090_v26 = vpop.f32.mrb[23].mxu0 }
 0x197   : > { %v2179_v48 = vadd.f32 %v5088_v24, %v6357_v47  ;;  %v5091_v27 = vadd.f32 %v5090_v26, %v5089_v46 }
 0x198   : > { %v5126_v12 = vpop.f32.mrb[20].mxu1 }
 0x199   : > { %v2182_v40 = vadd.f32 %v5091_v27, %v6359_v36  ;;  %v5127_v49 = vpop.f32.mrb[21].mxu1  ;;  %v6399_v27 = vld [vmem:[%s6682_s4] ss:$0 sm:$0xff] }
 0x19a   : > { %v5128_v50 = vadd.f32 %v5127_v49, %v5126_v12  ;;  %v5129_v51 = vpop.f32.mrb[22].mxu1  ;;  %v6405_v49 = vrot.slane %v3303_v37, 5 }
 0x19b   : > { %v5130_v17 = vpop.f32.mrb[23].mxu1 }
 0x19c   : > { %v5131_v52 = vadd.f32 %v5130_v17, %v5129_v51  ;;  %v2244_v53 = vadd.f32 %v5128_v50, %v2179_v48  ;;  %v6394_v48 = vrot.slane %v4773_v30, 9 }
 0x19e   : > { %v2247_v54 = vadd.f32 %v5131_v52, %v2182_v40  ;;  %v6403_v40 = vrot.slane %v3300_v35, 4  ;;  %v6409_v52 = vrot.slane %v4774_v39, 5 }
 0x1a1   : > { %v5092_v55 = vpop.f32.mrb[24].mxu0 }
 0x1a2   : > { %v5093_v56 = vpop.f32.mrb[25].mxu0 }
 0x1a3   : > { %v5094_v57 = vadd.f32 %v5093_v56, %v5092_v55  ;;  %v5095_v58 = vpop.f32.mrb[26].mxu0 }
 0x1a4   : > { %v5096_v59 = vpop.f32.mrb[27].mxu0 }
 0x1a5   : > { %v2187_v61 = vadd.f32 %v5094_v57, %v2122_v3  ;;  %v5097_v63 = vadd.f32 %v5096_v59, %v5095_v58  ;;  %v4753_v3 = vcombine.low %v2521_v10, %v2521_v10  ;;  %v4872_v57 = vcombine.high %v6371_v15, %v6371_v15 }
 0x1a6   : > { %v5132_v0 = vpop.f32.mrb[24].mxu1 }
 0x1a7   : > { %v2190_v47 = vadd.f32 %v5097_v63, %v2125_v6  ;;  %v5133_v1 = vpop.f32.mrb[25].mxu1  ;;  %v2570_v11 = vshrl.u32 %v4753_v3, 16  ;;  %v2573_v29 = vshll.u32 %v4753_v3, 16 }
 0x1a8   : > { %v5134_v2 = vadd.f32 %v5133_v1, %v5132_v0  ;;  %v5135_v4 = vpop.f32.mrb[26].mxu1 }
 0x1a9   : > { %v5136_v36 = vpop.f32.mrb[27].mxu1  ;;  %v6389_v44 = vrot.slane %v2570_v11, 4  ;;  %v6391_v45 = vrot.slane %v2573_v29, 5 }
 0x1aa   : > { %v5137_v7 = vadd.f32 %v5136_v36, %v5135_v4  ;;  %v6367_v8 = vadd.f32 %v5134_v2, %v2187_v61  ;;  %v3306_v4 = vor.u32 %v6405_v49, %v6403_v40 }
 0x1ac   : > { %v6369_v9 = vadd.f32 %v5137_v7, %v2190_v47 }
 0x1af   : > { %v5098_v13 = vpop.f32.mrb[28].mxu0 }
 0x1b0   : > { %v5099_v14 = vpop.f32.mrb[29].mxu0 }
 0x1b1   : > { %v5100_v16 = vadd.f32 %v5099_v14, %v5098_v13  ;;  %v5101_v18 = vpop.f32.mrb[30].mxu0 }
 0x1b2   : > { %v5102_v19 = vpop.f32.mrb[31].mxu0 }
 0x1b3   : > { %v6373_v20 = vadd.f32 %v5100_v16, %v2130_v34  ;;  %v5103_v6 = vadd.f32 %v5102_v19, %v5101_v18 }
 0x1b5   : > { %v6377_v28 = vadd.f32 %v5103_v6, %v2133_v22  ;;  %v6387_v22 = vld [vmem:[%s6681_s3] ss:$0 sm:$0xff] }
 0x1b7   : > { %v5346_v33 = vpop.f32.mrb[32].mxu0 }
 0x1b8   : > { %v2309_v34 = vadd.f32 %v5346_v33, %v2244_v53  ;;  %v2300_v38 = vpop.f32.mrb[33].mxu0  ;;  %v6411_v53 = vshll.u32 %v4754_v41, 16 }
 0x1b9   : > { %v2301_v42 = vadd.f32 %v2300_v38, %v2236_v23  ;;  %v5347_v5 = vpop.f32.mrb[34].mxu0 }
 0x1ba   : > { %v2339_v24 = vmul.f32 %v6382_v31, %v2309_v34  ;;  %v2312_v46 = vadd.f32 %v5347_v5, %v2247_v54  ;;  %v2303_v26 = vpop.f32.mrb[35].mxu0 }
 0x1bb   : > { %v2337_v12 = vmul.f32 %v6382_v31, %v2301_v42  ;;  %v2304_v23 = vadd.f32 %v2303_v26, %v6363_v43  ;;  %v2576_v43 = vor.u32 %v6391_v45, %v6389_v44  ;;  %v6465_v44 = vrot.slane %v3306_v4, 4 }
 0x1bc   : > { %v2353_v51 = vadd.f32 %v6387_v22, %v2339_v24  ;;  %v2340_v17 = vmul.f32 %v6382_v31, %v2312_v46  ;;  %v2467_v46 = vld [vmem:[#allocation2 + $0x18] sm:$0x1f] }
 0x1bd   : > { %v5138_v50 = vpop.f32.mrb[28].mxu1  ;;  %v2351_v55 = vadd.f32 %v6387_v22, %v2337_v12  ;;  %v2338_v56 = vmul.f32 %v6382_v31, %v2304_v23 }
 0x1be   : > { %v5139_v54 = vpop.f32.mrb[29].mxu1  ;;  %vm2361_vm15 = vcmp.gt.f32.partialorder %v2353_v51, 0.0  ;;  %v2375_v61 = vmul.f32 %v6399_v27, %v2353_v51  ;;  %v2354_v63 = vadd.f32 %v6387_v22, %v2340_v17 }
 0x1bf   : > { %v5140_v58 = vadd.f32 %v5139_v54, %v5138_v50  ;;  %v5141_v59 = vpop.f32.mrb[30].mxu1  ;;  %vm2359_vm0 = vcmp.gt.f32.partialorder %v2351_v55, 0.0  ;;  %v2373_v47 = vmul.f32 %v6399_v27, %v2351_v55  ;;  %v2352_v1 = vadd.f32 %v6387_v22, %v2338_v56  ;;  %v5350_v2 = vpop.f32.mrb[36].mxu0  ;;  %v2461_v50 = vld [vmem:[#allocation2 + $0x8] sm:$0x1f] }
 0x1c0   : > { %v5142_v0 = vpop.f32.mrb[31].mxu1  ;;  %v2383_v7 = vsel %vm2361_vm15, %v2353_v51, %v2375_v61  ;;  %vm2362_vm1 = vcmp.gt.f32.partialorder %v2354_v63, 0.0  ;;  %v2376_v10 = vmul.f32 %v6399_v27, %v2354_v63  ;;  %v2316_v13 = vpop.f32.mrb[37].mxu0  ;;  %v2470_v56 = vld [vmem:[#allocation2 + $0x20] sm:$0x1f] }
 0x1c1   : > { %v5143_v36 = vadd.f32 %v5142_v0, %v5141_v59  ;;  %v2391_v14 = vpack.c.bf16 %v2383_v7, %v2383_v7  ;;  %v2381_v16 = vsel %vm2359_vm0, %v2351_v55, %v2373_v47  ;;  %vm2360_vm2 = vcmp.gt.f32.partialorder %v2352_v1, 0.0  ;;  %v5351_v3 = vpop.f32.mrb[38].mxu0  ;;  %v2464_v47 = vld [vmem:[#allocation2 + $0x10] sm:$0x1f] }
 0x1c2   : > { %v2374_v18 = vmul.f32 %v6399_v27, %v2352_v1  ;;  %v2389_v19 = vpack.c.bf16 %v2381_v16, %v2381_v16  ;;  %v2384_v6 = vsel %vm2362_vm1, %v2354_v63, %v2376_v10  ;;  %v2260_v21 = vadd.f32 %v5140_v58, %v6373_v20  ;;  %v2319_v11 = vpop.f32.mrb[39].mxu0 }
 0x1c3   : > { %v2317_v25 = vadd.f32 %v2316_v13, %v6367_v8  ;;  %v2412_v29 = vshrl.u32 %v2391_v14, 16  ;;  %v2415_v30 = vshll.u32 %v2391_v14, 16  ;;  %v2392_v33 = vpack.c.bf16 %v2384_v6, %v2384_v6 }
 0x1c4   : > { %v2382_v35 = vsel %vm2360_vm2, %v2352_v1, %v2374_v18  ;;  %v2398_v37 = vshrl.u32 %v2389_v19, 16  ;;  %v2401_v34 = vshll.u32 %v2389_v19, 16  ;;  %v2325_v39 = vadd.f32 %v5350_v2, %v2260_v21 }
 0x1c5   : > { %v2390_v38 = vpack.c.bf16 %v2382_v35, %v2382_v35  ;;  %v2414_v41 = vrot.slane %v2412_v29, 7  ;;  %v2419_v42 = vshrl.u32 %v2392_v33, 16  ;;  %v2422_v5 = vshll.u32 %v2392_v33, 16 }
 0x1c6   : > { %v2341_v24 = vmul.f32 %v6382_v31, %v2317_v25  ;;  %v2400_v26 = vrot.slane %v2398_v37, 7  ;;  %v2343_v8 = vmul.f32 %v6382_v31, %v2325_v39  ;;  %v2263_v54 = vadd.f32 %v5143_v36, %v6377_v28  ;;  %v2473_v37 = vld [vmem:[#allocation2 + $0x28] sm:$0x1f] }
 0x1c7   : > { %v2405_v12 = vshrl.u32 %v2390_v38, 16  ;;  %v2408_v20 = vshll.u32 %v2390_v38, 16  ;;  %v2417_v23 = vor.u32 %v2415_v30, %v2414_v41  ;;  %v2421_v51 = vrot.slane %v2419_v42, 7 }
 0x1c8   : > { %v2355_v17 = vadd.f32 %v6387_v22, %v2341_v24  ;;  %v2403_v55 = vor.u32 %v2401_v34, %v2400_v26  ;;  %v2357_v59 = vadd.f32 %v6387_v22, %v2343_v8  ;;  %v2320_v61 = vadd.f32 %v2319_v11, %v6369_v9 }
 0x1c9   : > { %v2407_v58 = vrot.slane %v2405_v12, 7  ;;  %v2468_v63 = vsel %vm6152_vm8, %v2417_v23, %v2467_v46  ;;  %v2424_v0 = vor.u32 %v2422_v5, %v2421_v51  ;;  %v2328_v10 = vadd.f32 %v5351_v3, %v2263_v54 }
 0x1ca   : > { %vm2363_vm3 = vcmp.gt.f32.partialorder %v2355_v17, 0.0  ;;  %v2377_v1 = vmul.f32 %v6399_v27, %v2355_v17  ;;  %2469 = vst [vmem:[#allocation2 + $0x18] sm:$0x1f] %v2468_v63  ;;  %v2462_v2 = vsel %vm6152_vm8, %v2403_v55, %v2461_v50  ;;  %vm2365_vm4 = vcmp.gt.f32.partialorder %v2357_v59, 0.0  ;;  %v2476_v63 = vld [vmem:[#allocation2 + $0x30] sm:$0x1f] }
 0x1cb   : > { %v2410_v28 = vor.u32 %v2408_v20, %v2407_v58  ;;  %v2379_v36 = vmul.f32 %v6399_v27, %v2357_v59  ;;  %2463 = vst [vmem:[#allocation2 + $0x8] sm:$0x1f] %v2462_v2  ;;  %v2471_v9 = vsel %vm6152_vm8, %v2424_v0, %v2470_v56  ;;  %v2342_v13 = vmul.f32 %v6382_v31, %v2320_v61  ;;  %v5657_v0 = vld [vmem:[#allocation7 + $0x180] sm:$0xff]  }
 0x1cc   : > { %v2385_v7 = vsel %vm2363_vm3, %v2355_v17, %v2377_v1  ;;  %2472 = vst [vmem:[#allocation2 + $0x20] sm:$0x1f] %v2471_v9  ;;  %v2581_v19 = vrot.slane %v6411_v53, 5  ;;  %v2344_v21 = vmul.f32 %v6382_v31, %v2328_v10  ;;  %v2577_v3 = vrot.slane %v2576_v43, 4  ;;  %v2479_v43 = vld [vmem:[#allocation2 + $0x38] sm:$0x1f] }
 0x1cd   : > { %v2465_v14 = vsel %vm6152_vm8, %v2410_v28, %v2464_v47  ;;  %v2387_v16 = vsel %vm2365_vm4, %v2357_v59, %v2379_v36  ;;  %v2393_v18 = vpack.c.bf16 %v2385_v7, %v2385_v7  ;;  %v2356_v25 = vadd.f32 %v6387_v22, %v2342_v13  ;;  %v2482_v59 = vld [vmem:[#allocation2 + $0x40] sm:$0x1f] }
 0x1ce   : > { %2466 = vst [vmem:[#allocation2 + $0x10] sm:$0x1f] %v2465_v14  ;;  %v2395_v6 = vpack.c.bf16 %v2387_v16, %v2387_v16  ;;  %v2752_v29 = vsel %vm6175_vm13, %v6394_v48, %v6409_v52  ;;  %v6459_v53 = vshll.u32 %v4872_v57, 16  ;;  %v2358_v31 = vadd.f32 %v6387_v22, %v2344_v21  ;;  %v5660_v16 = vld [vmem:[#allocation7 + $0x1c8] sm:$0xff]  }
 0x1cf   : > { %v2426_v11 = vshrl.u32 %v2393_v18, 16  ;;  %vm2364_vm5 = vcmp.gt.f32.partialorder %v2356_v25, 0.0  ;;  %v2429_v35 = vshll.u32 %v2393_v18, 16  ;;  %v2378_v48 = vmul.f32 %v6399_v27, %v2356_v25 }
 0x1d0   : > { %v2440_v30 = vshrl.u32 %v2395_v6, 16  ;;  %v2443_v45 = vshll.u32 %v2395_v6, 16  ;;  %vm2366_vm6 = vcmp.gt.f32.partialorder %v2358_v31, 0.0  ;;  %v2380_v15 = vmul.f32 %v6399_v27, %v2358_v31 }
 0x1d1   : > { %v2428_v33 = vrot.slane %v2426_v11, 7  ;;  %v6471_v22 = vsel %vm6183_vm14, %v2577_v3, %v2581_v19  ;;  %v6473_v57 = vld [vmem:[#allocation2 + $0x18] sm:$0x1f]  ;;  %v2386_v49 = vsel %vm2364_vm5, %v2356_v25, %v2378_v48 }
 0x1d2   : > { %v2442_v52 = vrot.slane %v2440_v30, 7  ;;  %v2702_v4 = vld [vmem:[#allocation2 + $0x8] sm:$0x1e]  ;;  %v6477_v38 = vcombine.low %v6473_v57, %v6473_v57  ;;  %v4760_v39 = vcombine.high %v6473_v57, %v6473_v57  ;;  %v2388_v42 = vsel %vm2366_vm6, %v2358_v31, %v2380_v15 }
 0x1d3   : > { %v2431_v40 = vor.u32 %v2429_v35, %v2428_v33  ;;  %v2522_v34 = vld [vmem:[#allocation2 + $0x8] sm:$0x1f]  ;;  %v2394_v27 = vpack.c.bf16 %v2386_v49, %v2386_v49  ;;  %v4775_v5 = vcombine.low %v2702_v4, %v2702_v4  ;;  %v2396_v46 = vpack.c.bf16 %v2388_v42, %v2388_v42  ;;  %v5656_v14 = vld [vmem:[#allocation2 + $0x18] ss:$8 sps:$4 sm:$0xff]  }
 0x1d4   : > { %v2445_v41 = vor.u32 %v2443_v45, %v2442_v52  ;;  %v4776_v12 = vcombine.high %v2702_v4, %v2702_v4  ;;  %v4755_v20 = vcombine.low %v2522_v34, %v2522_v34  ;;  %v4756_v58 = vcombine.high %v2522_v34, %v2522_v34  ;;  %v2704_v33 = vld [vmem:[#allocation2 + $0x18] sm:$0x1e]  ;;  %v5677_v4 = vld [vmem:[#allocation7 + $0x1d0] sm:$0xff]  }
 0x1d5   : > { %v2474_v24 = vsel %vm6152_vm8, %v2431_v40, %v2473_v37  ;;  %v5648_v26 = vld [vmem:[#allocation2 + $0x8] ss:$8 sps:$4 sm:$0xff]   ;;  %v2433_v23 = vshrl.u32 %v2394_v27, 16  ;;  %v2436_v50 = vshll.u32 %v2394_v27, 16  ;;  %v4790_v51 = vrot.slane %v4775_v5, 9  ;;  %v5661_v35 = vld [vmem:[#allocation7 + $0x188] sm:$0xff]  }
 0x1d6   : > { %v2480_v8 = vsel %vm6152_vm8, %v2445_v41, %v2479_v43  ;;  %2475 = vst [vmem:[#allocation2 + $0x28] sm:$0x1f] %v2474_v24  ;;  %v2523_v17 = vld [vmem:[#allocation2 + $0x10] sm:$0x1f]  ;;  %v2447_v54 = vshrl.u32 %v2396_v46, 16  ;;  %v2450_v55 = vshll.u32 %v2396_v46, 16  ;;  %4142 = vmatprep.mubr.bf16.mxu0 %v5648_v26  ;;  %v4779_v46 = vcombine.low %v2704_v33, %v2704_v33 }
 0x1d7   : > { %2481 = vst [vmem:[#allocation2 + $0x38] sm:$0x1f] %v2480_v8  ;;  %v2755_v56 = vrot.slane %v4776_v12, 5  ;;  %v2435_v61 = vrot.slane %v2433_v23, 7  ;;  %v2584_v47 = vshrl.u32 %v4755_v20, 16  ;;  %v2587_v1 = vshll.u32 %v4755_v20, 16 }
 0x1d8   : > { %v4757_v2 = vcombine.low %v2523_v17, %v2523_v17  ;;  %v2449_v28 = vrot.slane %v2447_v54, 7  ;;  %v2593_v9 = vshll.u32 %v4756_v58, 16  ;;  %v4758_v7 = vcombine.high %v2523_v17, %v2523_v17  ;;  %v2703_v11 = vld [vmem:[#allocation2 + $0x10] sm:$0x1e]  ;;  %v2525_v27 = vld [vmem:[#allocation2 + $0x20] sm:$0x1f] }
 0x1d9   : > { %v2756_v36 = vsel %vm6175_vm13, %v4790_v51, %v2755_v56  ;;  %v2438_v10 = vor.u32 %v2436_v50, %v2435_v61  ;;  %v2586_v18 = vrot.slane %v2584_v47, 4  ;;  %v2589_v19 = vrot.slane %v2587_v1, 5  ;;  %v5679_v50 = vld [vmem:[#allocation7 + $0x190] sm:$0xff]   ;;  %v5680_v51 = vld [vmem:[#allocation7 + $0x148] sm:$0xff]   ;;  %v5682_v58 = vld [vmem:[#allocation7 + $0x1d8] sm:$0xff]  }
 0x1da   : > { %v4797_v13 = vcombine.low %v2752_v29, %v2756_v36  ;;  %v2452_v6 = vor.u32 %v2450_v55, %v2449_v28  ;;  %v2595_v21 = vrot.slane %v2593_v9, 5  ;;  %v2598_v25 = vshrl.u32 %v4757_v2, 16  ;;  %v5666_v17 = vld [vmem:[#allocation2] ss:$8 sps:$4 sm:$0xff]  }
 0x1db   : > { %v2601_v3 = vshll.u32 %v4757_v2, 16  ;;  %v2477_v30 = vsel %vm6152_vm8, %v2438_v10, %v2476_v63  ;;  %v2590_v31 = vor.u32 %v2589_v19, %v2586_v18  ;;  %v2607_v45 = vshll.u32 %v4758_v7, 16  ;;  %v5685_v36 = vld [vmem:[#allocation7 + $0x150] sm:$0xff]  }
 0x1dc   : > { %4143 = vmatmul.mubr.bf16.vlgmr.msra.gmra.mrb[40].mxu0 %v4797_v13  ;;  %v2612_v43 = vshrl.u32 %v6477_v38, 16  ;;  %v2483_v29 = vsel %vm6152_vm8, %v2452_v6, %v2482_v59  ;;  %2478 = vst [vmem:[#allocation2 + $0x30] sm:$0x1f] %v2477_v30  ;;  %v2600_v37 = vrot.slane %v2598_v25, 4  ;;  %v2615_v52 = vshll.u32 %v6477_v38, 16  ;;  %v5695_v30 = vld [vmem:[#allocation7 + $0x1e0] sm:$0xff]  }
 0x1dd   : > { %4150 = vmatprep.mubr.bf16.mxu0 %v5656_v14  ;;  %5277 = vmatpush3.bf16.msra.mxu0 %v5657_v0  ;;  %v2603_v48 = vrot.slane %v2601_v3, 5  ;;  %2484 = vst [vmem:[#allocation2 + $0x40] sm:$0x1f] %v2483_v29  ;;  %v2591_v15 = vrot.slane %v2590_v31, 4  ;;  %v2609_v57 = vrot.slane %v2607_v45, 5  ;;  %v2621_v49 = vshll.u32 %v4760_v39, 16 }
 0x1de   : > { %5278 = vmatprep.subr.bf16.mxu0 %v5660_v16  ;;  %v2614_v40 = vrot.slane %v2612_v43, 4  ;;  %v2617_v41 = vrot.slane %v2615_v52, 5  ;;  %v4777_v42 = vcombine.low %v2703_v11, %v2703_v11  ;;  %v4778_v60 = vcombine.high %v2703_v11, %v2703_v11  ;;  %v2526_v12 = vld [vmem:[#allocation2 + $0x28] sm:$0x1f]  ;;  %v5676_v39 = vld [vmem:[#allocation7 + $0x100] sm:$0xff]   ;;  %v5681_v0 = vld [vmem:[#allocation7 + $0x108] sm:$0xff]  }
 0x1df   : > { %v2604_v34 = vor.u32 %v2603_v48, %v2600_v37  ;;  %v2596_v5 = vsel %vm6183_vm14, %v2591_v15, %v2595_v21  ;;  %v2623_v24 = vrot.slane %v2621_v49, 5  ;;  %v4780_v26 = vcombine.high %v2704_v33, %v2704_v33  ;;  %v2705_v10 = vld [vmem:[#allocation2 + $0x20] sm:$0x1e]  ;;  %v2706_v19 = vld [vmem:[#allocation2 + $0x28] sm:$0x1e] }
 0x1e0   : > { %v4769_v38 = vcombine.low %v6471_v22, %v2596_v5  ;;  %v2618_v8 = vor.u32 %v2617_v41, %v2614_v40  ;;  %v4791_v23 = vrot.slane %v4777_v42, 9  ;;  %v2759_v54 = vrot.slane %v4778_v60, 5  ;;  %v5683_v22 = vld [vmem:[#allocation7 + $0x198] sm:$0xff]   ;;  %v5694_v29 = vld [vmem:[#allocation7 + $0x110] sm:$0xff]   ;;  %v2528_v40 = vld [vmem:[#allocation2 + $0x38] sm:$0x1f] }
 0x1e1   : > { %5279 = vmatpush3.bf16.msra.mxu0 %v5661_v35  ;;  %v2605_v20 = vrot.slane %v2604_v34, 4  ;;  %v4792_v55 = vrot.slane %v4779_v46, 9  ;;  %v2763_v56 = vrot.slane %v4780_v26, 5  ;;  %v4761_v59 = vcombine.low %v2525_v27, %v2525_v27  ;;  %v5697_v35 = vld [vmem:[#allocation7 + $0x1a0] sm:$0xff]   ;;  %v5698_v42 = vld [vmem:[#allocation7 + $0x158] sm:$0xff]   ;;  %v5700_v60 = vld [vmem:[#allocation7 + $0x1e8] sm:$0xff]  }
 0x1e2   : > { %5280 = vmatprep.subr.bf16.mxu0 %v5677_v4  ;;  %4077 = vmatprep.mubr.bf16.mxu1 %v4769_v38  ;;  %v2619_v63 = vrot.slane %v2618_v8, 4  ;;  %v4762_v47 = vcombine.high %v2525_v27, %v2525_v27  ;;  %v4763_v1 = vcombine.low %v2526_v12, %v2526_v12  ;;  %v2760_v2 = vsel %vm6175_vm13, %v4791_v23, %v2759_v54  ;;  %v5684_v27 = vld [vmem:[#allocation2 + $0x10] ss:$8 sps:$4 sm:$0xff]  }
 0x1e3   : > { %v2610_v61 = vsel %vm6183_vm14, %v2605_v20, %v2609_v57  ;;  %4078 = vmatmul.mubr.bf16.vlgmr.msra.gmra.mrb[32].mxu1 %v5666_v17  ;;  %v2764_v28 = vsel %vm6175_vm13, %v4792_v55, %v2763_v56  ;;  %v4764_v9 = vcombine.high %v2526_v12, %v2526_v12  ;;  %v2626_v7 = vshrl.u32 %v4761_v59, 16  ;;  %v5678_v21 = vld [vmem:[#allocation2 + $0x28] ss:$8 sps:$4 sm:$0xff]  }
 0x1e4   : > { %v2624_v13 = vsel %vm6183_vm14, %v2619_v63, %v2623_v24  ;;  %v4798_v14 = vcombine.low %v2760_v2, %v2764_v28  ;;  %5237 = vmatpush3.bf16.msra.mxu1 %v5676_v39  ;;  %v2629_v16 = vshll.u32 %v4761_v59, 16  ;;  %v2635_v18 = vshll.u32 %v4762_v47, 16  ;;  %v2527_v37 = vld [vmem:[#allocation2 + $0x30] sm:$0x1f] }
 0x1e5   : > { %5281 = vmatpush3.bf16.msra.mxu0 %v5679_v50  ;;  %v4770_v6 = vcombine.low %v2610_v61, %v2624_v13  ;;  %5238 = vmatprep.subr.bf16.mxu1 %v5680_v51  ;;  %v2628_v25 = vrot.slane %v2626_v7, 4  ;;  %v2640_v3 = vshrl.u32 %v4763_v1, 16  ;;  %v2643_v11 = vshll.u32 %v4763_v1, 16  ;;  %v5699_v50 = vld [vmem:[#allocation7 + $0x118] sm:$0xff]   ;;  %v5701_v51 = vld [vmem:[#allocation7 + $0x1a8] sm:$0xff]  }
 0x1e6   : > { %5282 = vmatprep.subr.bf16.mxu0 %v5682_v58  ;;  %4151 = vmatmul.mubr.bf16.gmra.mrb[44].mxu0 %v4798_v14  ;;  %v2631_v31 = vrot.slane %v2629_v16, 5  ;;  %v2637_v45 = vrot.slane %v2635_v18, 5  ;;  %v2649_v43 = vshll.u32 %v4764_v9, 16  ;;  %v4781_v33 = vcombine.low %v2705_v10, %v2705_v10  ;;  %v5703_v58 = vld [vmem:[#allocation7 + $0x160] sm:$0xff]   ;;  %v5696_v9 = vld [vmem:[#allocation2 + $0x38] ss:$8 sps:$4 sm:$0xff]  }
 0x1e7   : > { %4085 = vmatprep.mubr.bf16.mxu1 %v4770_v6  ;;  %4158 = vmatprep.mubr.bf16.mxu0 %v5678_v21  ;;  %v2642_v48 = vrot.slane %v2640_v3, 4  ;;  %v2645_v52 = vrot.slane %v2643_v11, 5  ;;  %v4782_v15 = vcombine.high %v2705_v10, %v2705_v10  ;;  %v4783_v57 = vcombine.low %v2706_v19, %v2706_v19  ;;  %v2707_v63 = vld [vmem:[#allocation2 + $0x30] sm:$0x1e]  ;;  %v5713_v14 = vld [vmem:[#allocation7 + $0x1f0] sm:$0xff]  }
 0x1e8   : > { %5239 = vmatpush3.bf16.msra.mxu1 %v5681_v0  ;;  %v2632_v49 = vor.u32 %v2631_v31, %v2628_v25  ;;  %v2651_v4 = vrot.slane %v2649_v43, 5  ;;  %v4784_v34 = vcombine.high %v2706_v19, %v2706_v19  ;;  %v4793_v41 = vrot.slane %v4781_v33, 9  ;;  %v2708_v0 = vld [vmem:[#allocation2 + $0x38] sm:$0x1e] }
 0x1e9   : > { %5283 = vmatpush3.bf16.msra.mxu0 %v5683_v22  ;;  %5240 = vmatprep.subr.bf16.mxu1 %v5685_v36  ;;  %v2646_v5 = vor.u32 %v2645_v52, %v2642_v48  ;;  %v2767_v24 = vrot.slane %v4782_v15, 5  ;;  %v4794_v46 = vrot.slane %v4783_v57, 9  ;;  %v4765_v26 = vcombine.low %v2527_v37, %v2527_v37  ;;  %v3153_v22 = vld [vmem:[#allocation2 + $0x10] sm:$0x1f]  ;;  %v3154_v31 = vld [vmem:[#allocation2 + $0x18] sm:$0x1f] }
 0x1ea   : > { %5284 = vmatprep.subr.bf16.mxu0 %v5695_v30  ;;  %v2633_v12 = vrot.slane %v2632_v49, 4  ;;  %v2771_v38 = vrot.slane %v4784_v34, 5  ;;  %v4766_v20 = vcombine.high %v2527_v37, %v2527_v37  ;;  %v4767_v8 = vcombine.low %v2528_v40, %v2528_v40  ;;  %v5712_v30 = vld [vmem:[#allocation7 + $0x120] sm:$0xff]   ;;  %v5721_v49 = vld [vmem:[#allocation7 + $0x1f8] sm:$0xff]  }
 0x1eb   : > { %4086 = vmatmul.mubr.bf16.gmra.mrb[36].mxu1 %v5684_v27  ;;  %v2647_v23 = vrot.slane %v2646_v5, 4  ;;  %v2768_v39 = vsel %vm6175_vm13, %v4793_v41, %v2767_v24  ;;  %v4768_v17 = vcombine.high %v2528_v40, %v2528_v40  ;;  %v2654_v54 = vshrl.u32 %v4765_v26, 16  ;;  %v5719_v40 = vld [vmem:[#allocation7 + $0x168] sm:$0xff]  }
 0x1ec   : > { %v2638_v55 = vsel %vm6183_vm14, %v2633_v12, %v2637_v45  ;;  %v2772_v56 = vsel %vm6175_vm13, %v4794_v46, %v2771_v38  ;;  %5241 = vmatpush3.bf16.msra.mxu1 %v5694_v29  ;;  %v2657_v59 = vshll.u32 %v4765_v26, 16  ;;  %v2663_v61 = vshll.u32 %v4766_v20, 16  ;;  %v5702_v45 = vld [vmem:[#allocation2 + $0x20] ss:$8 sps:$4 sm:$0xff]   ;;  %v5720_v46 = vld [vmem:[#allocation7 + $0x128] sm:$0xff]  }
 0x1ed   : > { %5285 = vmatpush3.bf16.msra.mxu0 %v5697_v35  ;;  %v2652_v47 = vsel %vm6183_vm14, %v2647_v23, %v2651_v4  ;;  %v4799_v1 = vcombine.low %v2768_v39, %v2772_v56  ;;  %5242 = vmatprep.subr.bf16.mxu1 %v5698_v42  ;;  %v2656_v2 = vrot.slane %v2654_v54, 4  ;;  %v2668_v28 = vshrl.u32 %v4767_v8, 16  ;;  %v5714_v35 = vld [vmem:[#allocation7 + $0x1b0] sm:$0xff]   ;;  %v3017_v23 = vld [vmem:[#allocation2 + $0x8] sm:$0x1e] }
 0x1ee   : > { %5286 = vmatprep.subr.bf16.mxu0 %v5700_v60  ;;  %v4771_v36 = vcombine.low %v2638_v55, %v2652_v47  ;;  %v2659_v7 = vrot.slane %v2657_v59, 5  ;;  %v2665_v10 = vrot.slane %v2663_v61, 5  ;;  %v2671_v13 = vshll.u32 %v4767_v8, 16  ;;  %v5722_v8 = vld [vmem:[#allocation7 + $0x1b8] sm:$0xff]   ;;  %v5724_v54 = vld [vmem:[#allocation7 + $0x170] sm:$0xff]  }
 0x1ef   : > { %4159 = vmatmul.mubr.bf16.gmra.mrb[48].mxu0 %v4799_v1  ;;  %v2670_v16 = vrot.slane %v2668_v28, 4  ;;  %v2677_v18 = vshll.u32 %v4768_v17, 16  ;;  %v4785_v19 = vcombine.low %v2707_v63, %v2707_v63  ;;  %v4786_v6 = vcombine.high %v2707_v63, %v2707_v63  ;;  %v3018_v55 = vld [vmem:[#allocation2 + $0x10] sm:$0x1e]  ;;  %v3155_v61 = vld [vmem:[#allocation2 + $0x20] sm:$0x1f] }
 0x1f0   : > { %4093 = vmatprep.mubr.bf16.mxu1 %v4771_v36  ;;  %4166 = vmatprep.mubr.bf16.mxu0 %v5696_v9  ;;  %v2660_v21 = vor.u32 %v2659_v7, %v2656_v2  ;;  %v2673_v25 = vrot.slane %v2671_v13, 5  ;;  %v4787_v3 = vcombine.low %v2708_v0, %v2708_v0  ;;  %v4788_v11 = vcombine.high %v2708_v0, %v2708_v0  ;;  %v5723_v36 = vld [vmem:[#allocation2 + $0x30] ss:$8 sps:$4 sm:$0xff]   ;;  %v5725_v9 = vld [vmem:[#allocation7 + $0x130] sm:$0xff]   ;;  %v3156_v13 = vld [vmem:[#allocation2 + $0x28] sm:$0x1f] }
 0x1f1   : > { %5243 = vmatpush3.bf16.msra.mxu1 %v5699_v50  ;;  %5287 = vmatpush3.bf16.msra.mxu0 %v5701_v51  ;;  %v2679_v43 = vrot.slane %v2677_v18, 5  ;;  %v4795_v33 = vrot.slane %v4785_v19, 9  ;;  %v2775_v29 = vrot.slane %v4786_v6, 5  ;;  %v4857_v37 = vcombine.low %v3153_v22, %v3153_v22  ;;  %v5735_v6 = vld [vmem:[#allocation7 + $0x178] sm:$0xff]  }
 0x1f2   : > { %5244 = vmatprep.subr.bf16.mxu1 %v5703_v58  ;;  %v2661_v48 = vrot.slane %v2660_v21, 4  ;;  %v2674_v52 = vor.u32 %v2673_v25, %v2670_v16  ;;  %v4796_v15 = vrot.slane %v4787_v3, 9  ;;  %v2779_v57 = vrot.slane %v4788_v11, 5  ;;  %5288 = vmatprep.subr.bf16.mxu0 %v5713_v14 }
 0x1f3   : > { %4094 = vmatmul.mubr.bf16.gmra.mrb[40].mxu1 %v5702_v45  ;;  %v2776_v4 = vsel %vm6175_vm13, %v4795_v33, %v2775_v29  ;;  %v4858_v34 = vcombine.high %v3153_v22, %v3153_v22  ;;  %v4859_v41 = vcombine.low %v3154_v31, %v3154_v31  ;;  %v4860_v42 = vcombine.high %v3154_v31, %v3154_v31 }
 0x1f4   : > { %v2666_v60 = vsel %vm6183_vm14, %v2661_v48, %v2665_v10  ;;  %v2675_v27 = vrot.slane %v2674_v52, 4  ;;  %v2780_v5 = vsel %vm6175_vm13, %v4796_v15, %v2779_v57  ;;  %v3202_v24 = vshrl.u32 %v4857_v37, 16  ;;  %v5736_v48 = vld [vmem:[#allocation7 + $0x138] sm:$0xff]  }
 0x1f5   : > { %v4800_v26 = vcombine.low %v2776_v4, %v2780_v5  ;;  %5245 = vmatpush3.bf16.msra.mxu1 %v5712_v30  ;;  %5289 = vmatpush3.bf16.msra.mxu0 %v5714_v35  ;;  %v3205_v12 = vshll.u32 %v4857_v37, 16  ;;  %v3211_v38 = vshll.u32 %v4858_v34, 16  ;;  %v3216_v20 = vshrl.u32 %v4859_v41, 16  ;;  %v2837_v52 = vld [vmem:[#allocation2 + $0x8] sm:$0x1f]  ;;  %v6529_v34 = vld [vmem:[#allocation7 + $0x200] sm:$0xff]  }
 0x1f6   : > { %v2680_v39 = vsel %vm6183_vm14, %v2675_v27, %v2679_v43  ;;  %v3204_v50 = vrot.slane %v3202_v24, 4  ;;  %v3219_v51 = vshll.u32 %v4859_v41, 16  ;;  %v3225_v17 = vshll.u32 %v4860_v42, 16  ;;  %5246 = vmatprep.subr.bf16.mxu1 %v5719_v40  ;;  %5290 = vmatprep.subr.bf16.mxu0 %v5721_v49  ;;  %v2838_v4 = vld [vmem:[#allocation2 + $0x10] sm:$0x1f] }
 0x1f7   : > { %v4772_v56 = vcombine.low %v2666_v60, %v2680_v39  ;;  %4167 = vmatmul.mubr.bf16.gmra.mrb[52].mxu0 %v4800_v26  ;;  %v3207_v58 = vrot.slane %v3205_v12, 5  ;;  %v3218_v59 = vrot.slane %v3216_v20, 4  ;;  %v3311_v63 = vrot.slane %v6459_v53, 5  ;;  %v5730_v5 = vld [vmem:[#allocation2 + $0x10] ss:$8 sps:$4 sm:$0xff]  }
 0x1f8   : > { %v3213_v0 = vrot.slane %v3211_v38, 5  ;;  %v3221_v22 = vrot.slane %v3219_v51, 5  ;;  %v4825_v47 = vcombine.low %v3017_v23, %v3017_v23  ;;  %v4826_v1 = vcombine.high %v3017_v23, %v3017_v23 }
 0x1f9   : > { %4101 = vmatprep.mubr.bf16.mxu1 %v4772_v56  ;;  %v3208_v2 = vor.u32 %v3207_v58, %v3204_v50  ;;  %v3227_v28 = vrot.slane %v3225_v17, 5  ;;  %5247 = vmatpush3.bf16.msra.mxu1 %v5720_v46  ;;  %v4827_v7 = vcombine.low %v3018_v55, %v3018_v55  ;;  %v4828_v10 = vcombine.high %v3018_v55, %v3018_v55 }
 0x1fa   : > { %v3222_v14 = vor.u32 %v3221_v22, %v3218_v59  ;;  %5291 = vmatpush3.bf16.msra.mxu0 %v5722_v8  ;;  %5248 = vmatprep.subr.bf16.mxu1 %v5724_v54  ;;  %v4841_v16 = vrot.slane %v4825_v47, 9  ;;  %v3067_v18 = vrot.slane %v4826_v1, 5  ;;  %v4861_v19 = vcombine.low %v3155_v61, %v3155_v61  ;;  %v3019_v59 = vld [vmem:[#allocation2 + $0x18] sm:$0x1e]  ;;  %v3020_v1 = vld [vmem:[#allocation2 + $0x20] sm:$0x1e] }
 0x1fb   : > { %v3209_v21 = vrot.slane %v3208_v2, 4  ;;  %4102 = vmatmul.mubr.bf16.gmra.mrb[44].mxu1 %v5723_v36  ;;  %v4842_v25 = vrot.slane %v4827_v7, 9  ;;  %v3071_v3 = vrot.slane %v4828_v10, 5  ;;  %v4862_v11 = vcombine.high %v3155_v61, %v3155_v61 }
 0x1fc   : > { %v3223_v30 = vrot.slane %v3222_v14, 4  ;;  %v3068_v31 = vsel %vm6175_vm13, %v4841_v16, %v3067_v18  ;;  %v4863_v45 = vcombine.low %v3156_v13, %v3156_v13  ;;  %v4864_v43 = vcombine.high %v3156_v13, %v3156_v13  ;;  %v3157_v16 = vld [vmem:[#allocation2 + $0x30] sm:$0x1f] }
 0x1fd   : > { %v3214_v33 = vsel %vm6183_vm14, %v3209_v21, %v3213_v0  ;;  %5249 = vmatpush3.bf16.msra.mxu1 %v5725_v9  ;;  %v3072_v29 = vsel %vm6175_vm13, %v4842_v25, %v3071_v3  ;;  %v3230_v35 = vshrl.u32 %v4861_v19, 16  ;;  %v3233_v37 = vshll.u32 %v4861_v19, 16  ;;  %v3158_v25 = vld [vmem:[#allocation2 + $0x38] sm:$0x1f] }
 0x1fe   : > { %v3228_v15 = vsel %vm6183_vm14, %v3223_v30, %v3227_v28  ;;  %v4849_v57 = vcombine.low %v3068_v31, %v3072_v29  ;;  %v3239_v40 = vshll.u32 %v4862_v11, 16  ;;  %v3244_v49 = vshrl.u32 %v4863_v45, 16  ;;  %5250 = vmatprep.subr.bf16.mxu1 %v5735_v6  ;;  %v5746_v29 = vld [vmem:[#allocation2 + $0x20] ss:$8 sps:$4 sm:$0xff]  }
 0x1ff   : > { %v4873_v41 = vcombine.low %v3214_v33, %v3228_v15  ;;  %v3232_v42 = vrot.slane %v3230_v35, 4  ;;  %v3235_v60 = vrot.slane %v3233_v37, 5  ;;  %v3247_v27 = vshll.u32 %v4863_v45, 16 }
 0x200   : > { %4207 = vmatprep.mubr.bf16.mxu1 %v4849_v57  ;;  %v3241_v24 = vrot.slane %v3239_v40, 5  ;;  %v3246_v46 = vrot.slane %v3244_v49, 4  ;;  %v3253_v26 = vshll.u32 %v4864_v43, 16  ;;  %v4805_v12 = vcombine.low %v2837_v52, %v2837_v52 }
 0x201   : > { %4272 = vmatprep.mubr.bf16.mxu0 %v4873_v41  ;;  %v3236_v38 = vor.u32 %v3235_v60, %v3232_v42  ;;  %v3249_v20 = vrot.slane %v3247_v27, 5  ;;  %5251 = vmatpush3.bf16.msra.mxu1 %v5736_v48  ;;  %v4806_v8 = vcombine.high %v2837_v52, %v2837_v52  ;;  %v4807_v23 = vcombine.low %v2838_v4, %v2838_v4  ;;  %v2839_v41 = vld [vmem:[#allocation2 + $0x18] sm:$0x1f] }
 0x202   : > { %4273 = vmatmul.mubr.bf16.vlgmr.msra.gmra.mrb[56].mxu0 %v5730_v5  ;;  %v3255_v39 = vrot.slane %v3253_v26, 5  ;;  %v4808_v50 = vcombine.high %v2838_v4, %v2838_v4  ;;  %v2886_v51 = vshrl.u32 %v4805_v12, 16  ;;  %v2889_v17 = vshll.u32 %v4805_v12, 16  ;;  %5352 = vmatprep.subr.bf16.mxu1 %v6529_v34 }
 0x203   : > { %v3237_v54 = vrot.slane %v3236_v38, 4  ;;  %v3250_v55 = vor.u32 %v3249_v20, %v3246_v46  ;;  %v2895_v56 = vshll.u32 %v4806_v8, 16  ;;  %v2900_v58 = vshrl.u32 %v4807_v23, 16  ;;  %v5751_v20 = vld [vmem:[#allocation7 + $0x208] sm:$0xff]  }
 0x204   : > { %v2888_v61 = vrot.slane %v2886_v51, 4  ;;  %v2891_v0 = vrot.slane %v2889_v17, 5  ;;  %v2903_v22 = vshll.u32 %v4807_v23, 16  ;;  %v2909_v47 = vshll.u32 %v4808_v50, 16 }
 0x205   : > { %v3242_v2 = vsel %vm6183_vm14, %v3237_v54, %v3241_v24  ;;  %v3251_v28 = vrot.slane %v3250_v55, 4  ;;  %v2897_v36 = vrot.slane %v2895_v56, 5  ;;  %v2902_v9 = vrot.slane %v2900_v58, 4  ;;  %v2840_v24 = vld [vmem:[#allocation2 + $0x20] sm:$0x1f] }
 0x206   : > { %v2892_v7 = vor.u32 %v2891_v0, %v2888_v61  ;;  %v2905_v10 = vrot.slane %v2903_v22, 5  ;;  %v2911_v13 = vrot.slane %v2909_v47, 5  ;;  %v4829_v14 = vcombine.low %v3019_v59, %v3019_v59 }
 0x207   : > { %v3256_v18 = vsel %vm6183_vm14, %v3251_v28, %v3255_v39  ;;  %v4830_v19 = vcombine.high %v3019_v59, %v3019_v59  ;;  %v4831_v6 = vcombine.low %v3020_v1, %v3020_v1  ;;  %v4832_v21 = vcombine.high %v3020_v1, %v3020_v1  ;;  %v3021_v28 = vld [vmem:[#allocation2 + $0x28] sm:$0x1e] }
 0x208   : > { %v4874_v3 = vcombine.low %v3242_v2, %v3256_v18  ;;  %v2893_v11 = vrot.slane %v2892_v7, 4  ;;  %v2906_v30 = vor.u32 %v2905_v10, %v2902_v9  ;;  %v4843_v31 = vrot.slane %v4829_v14, 9  ;;  %v5756_v2 = vld [vmem:[#allocation7 + $0x210] sm:$0xff]  }
 0x209   : > { %v3075_v45 = vrot.slane %v4830_v19, 5  ;;  %v4844_v43 = vrot.slane %v4831_v6, 9  ;;  %v3079_v33 = vrot.slane %v4832_v21, 5  ;;  %v4865_v35 = vcombine.low %v3157_v16, %v3157_v16 }
 0x20a   : > { %4280 = vmatprep.mubr.bf16.mxu0 %v4874_v3  ;;  %v2898_v37 = vsel %vm6183_vm14, %v2893_v11, %v2897_v36  ;;  %v2907_v48 = vrot.slane %v2906_v30, 4  ;;  %v4866_v52 = vcombine.high %v3157_v16, %v3157_v16  ;;  %v4867_v15 = vcombine.low %v3158_v25, %v3158_v25  ;;  %v3159_v3 = vld [vmem:[#allocation2 + $0x40] sm:$0x1f] }
 0x20b   : > { %v3076_v57 = vsel %vm6175_vm13, %v4843_v31, %v3075_v45  ;;  %v3080_v40 = vsel %vm6175_vm13, %v4844_v43, %v3079_v33  ;;  %4281 = vmatmul.mubr.bf16.gmra.mrb[60].mxu0 %v5746_v29  ;;  %v4868_v49 = vcombine.high %v3158_v25, %v3158_v25  ;;  %v3258_v4 = vshrl.u32 %v4865_v35, 16  ;;  %v5766_v43 = vld [vmem:[#allocation7 + $0x218] sm:$0xff]  }
 0x20c   : > { %v2912_v42 = vsel %vm6183_vm14, %v2907_v48, %v2911_v13  ;;  %v4850_v60 = vcombine.low %v3076_v57, %v3080_v40  ;;  %v3261_v27 = vshll.u32 %v4865_v35, 16  ;;  %v3267_v5 = vshll.u32 %v4866_v52, 16  ;;  %v3022_v13 = vld [vmem:[#allocation2 + $0x30] sm:$0x1e]  ;;  %v2841_v33 = vld [vmem:[#allocation2 + $0x28] sm:$0x1f] }
 0x20d   : > { %v4821_v46 = vcombine.low %v2898_v37, %v2912_v42  ;;  %v3260_v26 = vrot.slane %v3258_v4, 4  ;;  %v3272_v12 = vshrl.u32 %v4867_v15, 16  ;;  %v3275_v38 = vshll.u32 %v4867_v15, 16  ;;  %v5761_v40 = vld [vmem:[#allocation2 + $0x30] ss:$8 sps:$4 sm:$0xff]  }
 0x20e   : > { %v3263_v8 = vrot.slane %v3261_v27, 5  ;;  %v3269_v23 = vrot.slane %v3267_v5, 5  ;;  %v3281_v39 = vshll.u32 %v4868_v49, 16  ;;  %v4809_v50 = vcombine.low %v2839_v41, %v2839_v41 }
 0x20f   : > { %4208 = vmatmul.mubr.bf16.vlgmr.msra.gmra.mrb[48].mxu1 %v4821_v46  ;;  %v3274_v51 = vrot.slane %v3272_v12, 4  ;;  %v3277_v17 = vrot.slane %v3275_v38, 5  ;;  %v4810_v54 = vcombine.high %v2839_v41, %v2839_v41  ;;  %v4811_v55 = vcombine.low %v2840_v24, %v2840_v24  ;;  %v5771_v12 = vld [vmem:[#allocation7 + $0x220] sm:$0xff]  }
 0x210   : > { %4215 = vmatprep.mubr.bf16.mxu1 %v4850_v60  ;;  %5353 = vmatpush3.bf16.msra.mxu1 %v6529_v34  ;;  %v3264_v56 = vor.u32 %v3263_v8, %v3260_v26  ;;  %v3283_v58 = vrot.slane %v3281_v39, 5  ;;  %v4812_v59 = vcombine.high %v2840_v24, %v2840_v24  ;;  %v2914_v61 = vshrl.u32 %v4809_v50, 16  ;;  %v2842_v26 = vld [vmem:[#allocation2 + $0x30] sm:$0x1f]  ;;  %v3023_v39 = vld [vmem:[#allocation2 + $0x38] sm:$0x1e] }
 0x211   : > { %v3278_v0 = vor.u32 %v3277_v17, %v3274_v51  ;;  %5354 = vmatprep.subr.bf16.mxu1 %v5751_v20  ;;  %v2917_v22 = vshll.u32 %v4809_v50, 16  ;;  %v2923_v47 = vshll.u32 %v4810_v54, 16  ;;  %v2928_v1 = vshrl.u32 %v4811_v55, 16 }
 0x212   : > { %v3265_v36 = vrot.slane %v3264_v56, 4  ;;  %v2916_v9 = vrot.slane %v2914_v61, 4  ;;  %v2931_v7 = vshll.u32 %v4811_v55, 16  ;;  %v2937_v10 = vshll.u32 %v4812_v59, 16  ;;  %v3024_v61 = vld [vmem:[#allocation2 + $0x40] sm:$0x1e] }
 0x213   : > { %v3279_v14 = vrot.slane %v3278_v0, 4  ;;  %v2919_v16 = vrot.slane %v2917_v22, 5  ;;  %v2925_v18 = vrot.slane %v2923_v47, 5  ;;  %v2930_v34 = vrot.slane %v2928_v1, 4  ;;  %v5777_v22 = vld [vmem:[#allocation7 + $0x228] sm:$0xff]  }
 0x214   : > { %v3270_v19 = vsel %vm6183_vm14, %v3265_v36, %v3269_v23  ;;  %5355 = vmatpush3.bf16.msra.mxu1 %v5751_v20  ;;  %v2933_v6 = vrot.slane %v2931_v7, 5  ;;  %v2939_v21 = vrot.slane %v2937_v10, 5  ;;  %v4833_v25 = vcombine.low %v3021_v28, %v3021_v28 }
 0x215   : > { %v3284_v11 = vsel %vm6183_vm14, %v3279_v14, %v3283_v58  ;;  %v2920_v30 = vor.u32 %v2919_v16, %v2916_v9  ;;  %5356 = vmatprep.subr.bf16.mxu1 %v5756_v2  ;;  %v4834_v31 = vcombine.high %v3021_v28, %v3021_v28  ;;  %v4835_v45 = vcombine.low %v3022_v13, %v3022_v13 }
 0x216   : > { %v4875_v29 = vcombine.low %v3270_v19, %v3284_v11  ;;  %v2934_v35 = vor.u32 %v2933_v6, %v2930_v34  ;;  %v4836_v37 = vcombine.high %v3022_v13, %v3022_v13  ;;  %v4845_v48 = vrot.slane %v4833_v25, 9  ;;  %v2843_v34 = vld [vmem:[#allocation2 + $0x38] sm:$0x1f]  ;;  %v5782_v11 = vld [vmem:[#allocation7 + $0x230] sm:$0xff]  }
 0x217   : > { %v2921_v52 = vrot.slane %v2920_v30, 4  ;;  %v3083_v15 = vrot.slane %v4834_v31, 5  ;;  %v4846_v57 = vrot.slane %v4835_v45, 9  ;;  %v4869_v49 = vcombine.low %v3159_v3, %v3159_v3 }
 0x218   : > { %4288 = vmatprep.mubr.bf16.mxu0 %v4875_v29  ;;  %v2935_v4 = vrot.slane %v2934_v35, 4  ;;  %v3087_v41 = vrot.slane %v4836_v37, 5  ;;  %5357 = vmatpush3.bf16.msra.mxu1 %v5756_v2  ;;  %v4870_v42 = vcombine.high %v3159_v3, %v3159_v3  ;;  %v4813_v60 = vcombine.low %v2841_v33, %v2841_v33  ;;  %v2844_v3 = vld [vmem:[#allocation2 + $0x40] sm:$0x1f] }
 0x219   : > { %v2926_v27 = vsel %vm6183_vm14, %v2921_v52, %v2925_v18  ;;  %4289 = vmatmul.mubr.bf16.gmra.mrb[64].mxu0 %v5761_v40  ;;  %v3286_v5 = vshrl.u32 %v4869_v49, 16  ;;  %v3289_v24 = vshll.u32 %v4869_v49, 16  ;;  %v3312_v46 = vsel %vm6183_vm14, %v6465_v44, %v3311_v63  ;;  %5358 = vmatprep.subr.bf16.mxu1 %v5766_v43  ;;  %v5776_v37 = vld [vmem:[#allocation2 + $0x40] ss:$8 sps:$4 sm:$0xff]  }
 0x21a   : > { %v2940_v38 = vsel %vm6183_vm14, %v2935_v4, %v2939_v21  ;;  %v3088_v20 = vsel %vm6175_vm13, %v4846_v57, %v3087_v41  ;;  %v3295_v8 = vshll.u32 %v4870_v42, 16  ;;  %v4814_v23 = vcombine.high %v2841_v33, %v2841_v33 }
 0x21b   : > { %v4822_v50 = vcombine.low %v2926_v27, %v2940_v38  ;;  %v3084_v53 = vsel %vm6175_vm13, %v4845_v48, %v3083_v15  ;;  %v3288_v51 = vrot.slane %v3286_v5, 4  ;;  %v3291_v17 = vrot.slane %v3289_v24, 5  ;;  %v5787_v27 = vld [vmem:[#allocation7 + $0x238] sm:$0xff]  }
 0x21c   : > { %v4851_v54 = vcombine.low %v3084_v53, %v3088_v20  ;;  %5359 = vmatpush3.bf16.msra.mxu1 %v5766_v43  ;;  %v4815_v44 = vcombine.low %v2842_v26, %v2842_v26  ;;  %v4816_v63 = vcombine.high %v2842_v26, %v2842_v26  ;;  %v2942_v55 = vshrl.u32 %v4813_v60, 16 }
 0x21d   : > { %4216 = vmatmul.mubr.bf16.gmra.mrb[52].mxu1 %v4822_v50  ;;  %v3292_v56 = vor.u32 %v3291_v17, %v3288_v51  ;;  %v2945_v58 = vshll.u32 %v4813_v60, 16  ;;  %v2951_v59 = vshll.u32 %v4814_v23, 16  ;;  %5360 = vmatprep.subr.bf16.mxu1 %v5771_v12  ;;  %v4837_v0 = vcombine.low %v3023_v39, %v3023_v39  ;;  %v3333_v60 = vld [vmem:[#allocation2 + $0x10] sm:$0x1e] }
 0x21e   : > { %4223 = vmatprep.mubr.bf16.mxu1 %v4851_v54  ;;  %v3297_v47 = vrot.slane %v3295_v8, 5  ;;  %v2944_v1 = vrot.slane %v2942_v55, 4  ;;  %v2956_v2 = vshrl.u32 %v4815_v44, 16  ;;  %v2959_v28 = vshll.u32 %v4815_v44, 16 }
 0x21f   : > { %v3293_v36 = vrot.slane %v3292_v56, 4  ;;  %v2947_v9 = vrot.slane %v2945_v58, 5  ;;  %v2965_v7 = vshll.u32 %v4816_v63, 16  ;;  %v4838_v10 = vcombine.high %v3023_v39, %v3023_v39  ;;  %v3336_v58 = vld [vmem:[#allocation2 + $0x28] sm:$0x1e] }
 0x220   : > { %v2953_v13 = vrot.slane %v2951_v59, 5  ;;  %v2958_v14 = vrot.slane %v2956_v2, 4  ;;  %v2961_v16 = vrot.slane %v2959_v28, 5  ;;  %v4839_v18 = vcombine.low %v3024_v61, %v3024_v61  ;;  %5361 = vmatpush3.bf16.msra.mxu1 %v5771_v12  ;;  %v3334_v12 = vld [vmem:[#allocation2 + $0x18] sm:$0x1e] }
 0x221   : > { %v3298_v19 = vsel %vm6183_vm14, %v3293_v36, %v3297_v47  ;;  %v2948_v6 = vor.u32 %v2947_v9, %v2944_v1  ;;  %v4840_v21 = vcombine.high %v3024_v61, %v3024_v61  ;;  %v4847_v25 = vrot.slane %v4837_v0, 9  ;;  %5362 = vmatprep.subr.bf16.mxu1 %v5777_v22  ;;  %v3337_v28 = vld [vmem:[#allocation2 + $0x30] sm:$0x1e] }
 0x222   : > { %v4876_v30 = vcombine.low %v3298_v19, %v3312_v46  ;;  %v2962_v31 = vor.u32 %v2961_v16, %v2958_v14  ;;  %v3091_v45 = vrot.slane %v4838_v10, 5  ;;  %v4848_v43 = vrot.slane %v4839_v18, 9 }
 0x223   : > { %v2949_v33 = vrot.slane %v2948_v6, 4  ;;  %v2967_v29 = vrot.slane %v2965_v7, 5  ;;  %v3095_v35 = vrot.slane %v4840_v21, 5  ;;  %v4817_v48 = vcombine.low %v2843_v34, %v2843_v34 }
 0x224   : > { %4296 = vmatprep.mubr.bf16.mxu0 %v4876_v30  ;;  %v2963_v52 = vrot.slane %v2962_v31, 4  ;;  %5363 = vmatpush3.bf16.msra.mxu1 %v5777_v22  ;;  %v4818_v15 = vcombine.high %v2843_v34, %v2843_v34  ;;  %v4819_v57 = vcombine.low %v2844_v3, %v2844_v3  ;;  %v4820_v40 = vcombine.high %v2844_v3, %v2844_v3  ;;  %v3335_v22 = vld [vmem:[#allocation2 + $0x20] sm:$0x1e] }
 0x225   : > { %v3092_v49 = vsel %vm6175_vm13, %v4847_v25, %v3091_v45  ;;  %v3096_v4 = vsel %vm6175_vm13, %v4848_v43, %v3095_v35  ;;  %4297 = vmatmul.mubr.bf16.gmra.mrb[68].mxu0 %v5776_v37  ;;  %v2970_v41 = vshrl.u32 %v4817_v48, 16  ;;  %v2973_v42 = vshll.u32 %v4817_v48, 16  ;;  %5364 = vmatprep.subr.bf16.mxu1 %v5782_v11  ;;  %v3339_v37 = vld [vmem:[#allocation2 + $0x40] sm:$0x1e] }
 0x226   : > { %v2954_v5 = vsel %vm6183_vm14, %v2949_v33, %v2953_v13  ;;  %v2968_v24 = vsel %vm6183_vm14, %v2963_v52, %v2967_v29  ;;  %v4852_v46 = vcombine.low %v3092_v49, %v3096_v4  ;;  %v2984_v26 = vshrl.u32 %v4819_v57, 16  ;;  %v3338_v13 = vld [vmem:[#allocation2 + $0x38] sm:$0x1e]  ;;  %v3340_v33 = vld [vmem:[#allocation2 + $0x48] sm:$0x1e] }
 0x227   : > { %v4823_v38 = vcombine.low %v2954_v5, %v2968_v24  ;;  %v2972_v20 = vrot.slane %v2970_v41, 4  ;;  %v2975_v8 = vrot.slane %v2973_v42, 5  ;;  %v2987_v23 = vshll.u32 %v4819_v57, 16 }
 0x228   : > { %v2979_v39 = vshll.u32 %v4818_v15, 16  ;;  %v2986_v50 = vrot.slane %v2984_v26, 4  ;;  %v2993_v53 = vshll.u32 %v4820_v40, 16  ;;  %5365 = vmatpush3.bf16.msra.mxu1 %v5782_v11  ;;  %v4877_v51 = vcombine.low %v3333_v60, %v3333_v60 }
 0x229   : > { %4224 = vmatmul.mubr.bf16.gmra.mrb[56].mxu1 %v4823_v38  ;;  %v2976_v17 = vor.u32 %v2975_v8, %v2972_v20  ;;  %v2989_v54 = vrot.slane %v2987_v23, 5  ;;  %v4878_v44 = vcombine.high %v3333_v60, %v3333_v60  ;;  %v4879_v63 = vcombine.low %v3334_v12, %v3334_v12  ;;  %5366 = vmatprep.subr.bf16.mxu1 %v5787_v27 }
 0x22a   : > { %4231 = vmatprep.mubr.bf16.mxu1 %v4852_v46  ;;  %v4880_v55 = vcombine.high %v3334_v12, %v3334_v12  ;;  %v4893_v56 = vrot.slane %v4877_v51, 9  ;;  %v2981_v47 = vrot.slane %v2979_v39, 5  ;;  %v2995_v9 = vrot.slane %v2993_v53, 5 }
 0x22b   : > { %v2977_v59 = vrot.slane %v2976_v17, 4  ;;  %v2990_v61 = vor.u32 %v2989_v54, %v2986_v50  ;;  %v3383_v0 = vrot.slane %v4878_v44, 5  ;;  %v4894_v1 = vrot.slane %v4879_v63, 9 }
 0x22c   : > { %v3387_v2 = vrot.slane %v4880_v55, 5  ;;  %5367 = vmatpush3.bf16.msra.mxu1 %v5787_v27  ;;  %v4883_v7 = vcombine.low %v3336_v58, %v3336_v58  ;;  %v4884_v10 = vcombine.high %v3336_v58, %v3336_v58  ;;  %v4881_v16 = vcombine.low %v3335_v22, %v3335_v22 }
 0x22d   : > { %v2991_v36 = vrot.slane %v2990_v61, 4  ;;  %v3384_v14 = vsel %vm6175_vm13, %v4893_v56, %v3383_v0  ;;  %v4882_v18 = vcombine.high %v3335_v22, %v3335_v22  ;;  %v2982_v34 = vsel %vm6183_vm14, %v2977_v59, %v2981_v47 }
 0x22e   : > { %v4885_v6 = vcombine.low %v3337_v28, %v3337_v28  ;;  %v4886_v21 = vcombine.high %v3337_v28, %v3337_v28  ;;  %v3388_v3 = vsel %vm6175_vm13, %v4894_v1, %v3387_v2  ;;  %v4887_v11 = vcombine.low %v3338_v13, %v3338_v13 }
 0x22f   : > { %v2996_v19 = vsel %vm6183_vm14, %v2991_v36, %v2995_v9  ;;  %v4901_v30 = vcombine.low %v3384_v14, %v3388_v3  ;;  %v4896_v31 = vrot.slane %v4883_v7, 9  ;;  %v3395_v45 = vrot.slane %v4884_v10, 5 }
 0x230   : > { %v4824_v25 = vcombine.low %v2982_v34, %v2996_v19  ;;  %v4888_v43 = vcombine.high %v3338_v13, %v3338_v13  ;;  %v4897_v29 = vrot.slane %v4885_v6, 9  ;;  %v3399_v35 = vrot.slane %v4886_v21, 5 }
 0x231   : > { %v4895_v48 = vrot.slane %v4881_v16, 9  ;;  %v3391_v62 = vrot.slane %v4882_v18, 5  ;;  %v4898_v52 = vrot.slane %v4887_v11, 9  ;;  %v4891_v57 = vcombine.low %v3340_v33, %v3340_v33 }
 0x232   : > { %4232 = vmatmul.mubr.bf16.gmra.mrb[60].mxu1 %v4824_v25  ;;  %v3403_v15 = vrot.slane %v4888_v43, 5  ;;  %v3396_v40 = vsel %vm6175_vm13, %v4896_v31, %v3395_v45  ;;  %v4889_v49 = vcombine.low %v3339_v37, %v3339_v37  ;;  %v4890_v4 = vcombine.high %v3339_v37, %v3339_v37 }
 0x233   : > { %5368 = vmatprep.mubr.bf16.mxu1 %v4901_v30  ;;  %v4892_v41 = vcombine.high %v3340_v33, %v3340_v33  ;;  %v3400_v42 = vsel %vm6175_vm13, %v4897_v29, %v3399_v35  ;;  %v3392_v60 = vsel %vm6175_vm13, %v4895_v48, %v3391_v62  ;;  %v4900_v24 = vrot.slane %v4891_v57, 9 }
 0x234   : > { %v4902_v27 = vcombine.low %v3392_v60, %v3396_v40  ;;  %v3404_v5 = vsel %vm6175_vm13, %v4898_v52, %v3403_v15  ;;  %v4899_v26 = vrot.slane %v4889_v49, 9  ;;  %v3407_v12 = vrot.slane %v4890_v4, 5 }
 0x235   : > { %v4903_v46 = vcombine.low %v3400_v42, %v3404_v5  ;;  %v3411_v38 = vrot.slane %v4892_v41, 5 }
 0x236   : > { %v3408_v20 = vsel %vm6175_vm13, %v4899_v26, %v3407_v12 }
 0x237   : > { %v3412_v8 = vsel %vm6175_vm13, %v4900_v24, %v3411_v38 }
 0x238   : > { %v4904_v23 = vcombine.low %v3408_v20, %v3412_v8 }
 0x23a   : > { %5369 = vmatmul.mubr.bf16.vlgmr.msra.gmra.mrb[64].mxu1 %v4902_v27 }
 0x23b   : > { %5372 = vmatprep.mubr.bf16.mxu1 %v4903_v46 }
 0x242   : > { %5373 = vmatmul.mubr.bf16.gmra.mrb[68].mxu1 %v4904_v23 }
 0x2af   : > { %v5212_v39 = vpop.f32.mrb[40].mxu0 }
 0x2b0   : > { %v5213_v50 = vpop.f32.mrb[41].mxu0 }
 0x2b1   : > { %v5214_v53 = vadd.f32 %v5213_v50, %v5212_v39  ;;  %v5215_v51 = vpop.f32.mrb[42].mxu0 }
 0x2b2   : > { %v5216_v17 = vpop.f32.mrb[43].mxu0 }
 0x2b3   : > { %v5217_v54 = vadd.f32 %v5216_v17, %v5215_v51 }
 0x2b6   : > { %v5172_v44 = vpop.f32.mrb[32].mxu1 }
 0x2b7   : > { %v5173_v63 = vpop.f32.mrb[33].mxu1 }
 0x2b8   : > { %v5174_v55 = vadd.f32 %v5173_v63, %v5172_v44  ;;  %v5175_v56 = vpop.f32.mrb[34].mxu1 }
 0x2b9   : > { %v5218_v58 = vpop.f32.mrb[44].mxu0  ;;  %v5176_v59 = vpop.f32.mrb[35].mxu1 }
 0x2ba   : > { %v4145_v61 = vadd.f32 %v5214_v53, %v5174_v55  ;;  %v5219_v0 = vpop.f32.mrb[45].mxu0  ;;  %v5177_v22 = vadd.f32 %v5176_v59, %v5175_v56 }
 0x2bb   : > { %v5220_v47 = vadd.f32 %v5219_v0, %v5218_v58  ;;  %v5221_v32 = vpop.f32.mrb[46].mxu0 }
 0x2bc   : > { %v4148_v1 = vadd.f32 %v5217_v54, %v5177_v22  ;;  %v5222_v2 = vpop.f32.mrb[47].mxu0 }
 0x2bd   : > { %v5223_v28 = vadd.f32 %v5222_v2, %v5221_v32 }
 0x2be   : > { %v5178_v36 = vpop.f32.mrb[36].mxu1 }
 0x2bf   : > { %v5179_v9 = vpop.f32.mrb[37].mxu1 }
 0x2c0   : > { %v5180_v7 = vadd.f32 %v5179_v9, %v5178_v36  ;;  %v5181_v10 = vpop.f32.mrb[38].mxu1 }
 0x2c1   : > { %v5182_v13 = vpop.f32.mrb[39].mxu1 }
 0x2c2   : > { %v6592_v14 = vadd.f32 %v5220_v47, %v5180_v7  ;;  %v5224_v16 = vpop.f32.mrb[48].mxu0  ;;  %v5183_v18 = vadd.f32 %v5182_v13, %v5181_v10 }
 0x2c3   : > { %v5225_v34 = vpop.f32.mrb[49].mxu0 }
 0x2c4   : > { %v5226_v19 = vadd.f32 %v5225_v34, %v5224_v16  ;;  %v4156_v6 = vadd.f32 %v5223_v28, %v5183_v18  ;;  %v5227_v21 = vpop.f32.mrb[50].mxu0 }
 0x2c5   : > { %v5228_v25 = vpop.f32.mrb[51].mxu0 }
 0x2c6   : > { %v5229_v3 = vadd.f32 %v5228_v25, %v5227_v21  ;;  %v5184_v11 = vpop.f32.mrb[40].mxu1 }
 0x2c7   : > { %v5185_v30 = vpop.f32.mrb[41].mxu1 }
 0x2c8   : > { %v5186_v31 = vadd.f32 %v5185_v30, %v5184_v11  ;;  %v5187_v45 = vpop.f32.mrb[42].mxu1 }
 0x2c9   : > { %v5188_v43 = vpop.f32.mrb[43].mxu1 }
 0x2ca   : > { %v6594_v33 = vadd.f32 %v5226_v19, %v5186_v31  ;;  %v5230_v29 = vpop.f32.mrb[52].mxu0  ;;  %v5189_v35 = vadd.f32 %v5188_v43, %v5187_v45 }
 0x2cb   : > { %v5231_v37 = vpop.f32.mrb[53].mxu0 }
 0x2cc   : > { %v5232_v48 = vadd.f32 %v5231_v37, %v5230_v29  ;;  %v6596_v62 = vadd.f32 %v5229_v3, %v5189_v35  ;;  %v5233_v52 = vpop.f32.mrb[54].mxu0 }
 0x2cd   : > { %v5234_v15 = vpop.f32.mrb[55].mxu0 }
 0x2ce   : > { %v5235_v57 = vadd.f32 %v5234_v15, %v5233_v52  ;;  %v5190_v40 = vpop.f32.mrb[44].mxu1 }
 0x2cf   : > { %v5191_v49 = vpop.f32.mrb[45].mxu1 }
 0x2d0   : > { %v5192_v4 = vadd.f32 %v5191_v49, %v5190_v40  ;;  %v5193_v41 = vpop.f32.mrb[46].mxu1 }
 0x2d1   : > { %v5194_v42 = vpop.f32.mrb[47].mxu1 }
 0x2d2   : > { %v4169_v60 = vadd.f32 %v5232_v48, %v5192_v4  ;;  %v5195_v27 = vadd.f32 %v5194_v42, %v5193_v41 }
 0x2d4   : > { %v4172_v5 = vadd.f32 %v5235_v57, %v5195_v27 }
 0x2d5   : > { %v5292_v24 = vpop.f32.mrb[56].mxu0 }
 0x2d6   : > { %v5293_v46 = vpop.f32.mrb[57].mxu0 }
 0x2d7   : > { %v5294_v26 = vadd.f32 %v5293_v46, %v5292_v24  ;;  %v5295_v12 = vpop.f32.mrb[58].mxu0 }
 0x2d8   : > { %v5296_v38 = vpop.f32.mrb[59].mxu0 }
 0x2d9   : > { %v5297_v20 = vadd.f32 %v5296_v38, %v5295_v12 }
 0x2de   : > { %v5298_v8 = vpop.f32.mrb[60].mxu0 }
 0x2df   : > { %v5299_v23 = vpop.f32.mrb[61].mxu0 }
 0x2e0   : > { %v5300_v39 = vadd.f32 %v5299_v23, %v5298_v8  ;;  %v5301_v50 = vpop.f32.mrb[62].mxu0  ;;  %v5800_v23 = vld [vmem:[%s6680_s2] ss:$0 sm:$0xff] }
 0x2e1   : > { %v5302_v53 = vpop.f32.mrb[63].mxu0 }
 0x2e2   : > { %v5252_v51 = vpop.f32.mrb[48].mxu1  ;;  %v5303_v17 = vadd.f32 %v5302_v53, %v5301_v50 }
 0x2e3   : > { %v5253_v54 = vpop.f32.mrb[49].mxu1 }
 0x2e4   : > { %v5254_v44 = vadd.f32 %v5253_v54, %v5252_v51  ;;  %v5255_v63 = vpop.f32.mrb[50].mxu1 }
 0x2e5   : > { %v5256_v55 = vpop.f32.mrb[51].mxu1 }
 0x2e6   : > { %v4210_v56 = vadd.f32 %v5254_v44, %v4145_v61  ;;  %v5257_v58 = vadd.f32 %v5256_v55, %v5255_v63  ;;  %v4386_v44 = vld [vmem:[%s6117_s12] sm:$0xff] }
 0x2e8   : > { %v4213_v59 = vadd.f32 %v5257_v58, %v4148_v1  ;;  %v4275_v0 = vadd.f32 %v5294_v26, %v4210_v56  ;;  %v4389_v56 = vld [vmem:[%s6117_s12 + $0x18] sm:$0xff] }
 0x2ea   : > { %v4278_v22 = vadd.f32 %v5297_v20, %v4213_v59 }
 0x2ec   : > { %v5304_v47 = vpop.f32.mrb[64].mxu0 }
 0x2ed   : > { %v5305_v32 = vpop.f32.mrb[65].mxu0 }
 0x2ee   : > { %v5306_v2 = vadd.f32 %v5305_v32, %v5304_v47  ;;  %v5307_v28 = vpop.f32.mrb[66].mxu0  ;;  %v4387_v47 = vld [vmem:[%s6117_s12 + $0x8] sm:$0xff] }
 0x2ef   : > { %v5308_v36 = vpop.f32.mrb[67].mxu0 }
 0x2f0   : > { %v5258_v9 = vpop.f32.mrb[52].mxu1  ;;  %v5309_v7 = vadd.f32 %v5308_v36, %v5307_v28 }
 0x2f1   : > { %v5259_v10 = vpop.f32.mrb[53].mxu1 }
 0x2f2   : > { %v5260_v13 = vadd.f32 %v5259_v10, %v5258_v9  ;;  %v5261_v16 = vpop.f32.mrb[54].mxu1 }
 0x2f3   : > { %v5262_v18 = vpop.f32.mrb[55].mxu1 }
 0x2f4   : > { %v4218_v34 = vadd.f32 %v5260_v13, %v6592_v14  ;;  %v5263_v19 = vadd.f32 %v5262_v18, %v5261_v16 }
 0x2f6   : > { %v4221_v21 = vadd.f32 %v5263_v19, %v4156_v6  ;;  %v4283_v61 = vadd.f32 %v5300_v39, %v4218_v34  ;;  %v4392_v19 = vld [vmem:[%s6117_s12 + $0x30] sm:$0xff] }
 0x2f8   : > { %v5310_v25 = vpop.f32.mrb[68].mxu0  ;;  %v4286_v1 = vadd.f32 %v5303_v17, %v4221_v21  ;;  %v5801_v17 = vld [vmem:[%s6681_s3] ss:$0 sm:$0xff] }
 0x2f9   : > { %v5311_v3 = vpop.f32.mrb[69].mxu0 }
 0x2fa   : > { %v5312_v11 = vadd.f32 %v5311_v3, %v5310_v25  ;;  %v5313_v30 = vpop.f32.mrb[70].mxu0 }
 0x2fb   : > { %v5314_v31 = vpop.f32.mrb[71].mxu0 }
 0x2fc   : > { %v5264_v45 = vpop.f32.mrb[56].mxu1  ;;  %v5315_v43 = vadd.f32 %v5314_v31, %v5313_v30  ;;  %v4393_v30 = vld [vmem:[%s6117_s12 + $0x38] sm:$0xff] }
 0x2fd   : > { %v5265_v29 = vpop.f32.mrb[57].mxu1 }
 0x2fe   : > { %v5266_v35 = vadd.f32 %v5265_v29, %v5264_v45  ;;  %v5267_v37 = vpop.f32.mrb[58].mxu1  ;;  %v4391_v29 = vld [vmem:[%s6117_s12 + $0x28] sm:$0xff] }
 0x2ff   : > { %v5268_v48 = vpop.f32.mrb[59].mxu1 }
 0x300   : > { %v4226_v52 = vadd.f32 %v5266_v35, %v6594_v33  ;;  %v5269_v15 = vadd.f32 %v5268_v48, %v5267_v37 }
 0x302   : > { %v4229_v14 = vadd.f32 %v5269_v15, %v6596_v62  ;;  %v4291_v57 = vadd.f32 %v5306_v2, %v4226_v52 }
 0x304   : > { %v4294_v6 = vadd.f32 %v5309_v7, %v4229_v14 }
 0x305   : > { %v5270_v40 = vpop.f32.mrb[60].mxu1 }
 0x306   : > { %v5271_v49 = vpop.f32.mrb[61].mxu1 }
 0x307   : > { %v5272_v4 = vadd.f32 %v5271_v49, %v5270_v40  ;;  %v5273_v41 = vpop.f32.mrb[62].mxu1 }
 0x308   : > { %v5274_v42 = vpop.f32.mrb[63].mxu1 }
 0x309   : > { %v4234_v27 = vadd.f32 %v5272_v4, %v4169_v60  ;;  %v5275_v24 = vadd.f32 %v5274_v42, %v5273_v41  ;;  %v4388_v60 = vld [vmem:[%s6117_s12 + $0x10] sm:$0xff] }
 0x30b   : > { %v4237_v46 = vadd.f32 %v5275_v24, %v4172_v5  ;;  %v4299_v26 = vadd.f32 %v5312_v11, %v4234_v27 }
 0x30d   : > { %v5370_v12 = vpop.f32.mrb[64].mxu1  ;;  %v4302_v38 = vadd.f32 %v5315_v43, %v4237_v46 }
 0x30e   : > { %v4348_v20 = vadd.f32 %v5370_v12, %v4283_v61  ;;  %v4339_v33 = vpop.f32.mrb[65].mxu1 }
 0x30f   : > { %v4340_v8 = vadd.f32 %v4339_v33, %v4275_v0  ;;  %v5371_v62 = vpop.f32.mrb[66].mxu1 }
 0x310   : > { %v4372_v39 = vmul.f32 %v5800_v23, %v4348_v20  ;;  %v4351_v50 = vadd.f32 %v5371_v62, %v4286_v1  ;;  %v4342_v53 = vpop.f32.mrb[67].mxu1  ;;  %v4390_v1 = vld [vmem:[%s6117_s12 + $0x20] sm:$0xff]  ;;  %s5860_s12 = scalar_lea.vmem %s6631_s27, 1024 }
 0x311   : > { %v4370_v5 = vmul.f32 %v5800_v23, %v4340_v8  ;;  %v4343_v51 = vadd.f32 %v4342_v53, %v4278_v22  ;;  %p5861_p4 = scmp.ne.s32.totalorder %s6631_s27, %s5860_s12  ;;  %p5868_p13 = scmp.lt.s32.totalorder %s5866_s7, %s5860_s12 }
 0x312   : > { %v4380_v54 = vadd.f32 %v5801_v17, %v4372_v39  ;;  %v4373_v63 = vmul.f32 %v5800_v23, %v4351_v50 }
 0x313   : > { %v4378_v55 = vadd.f32 %v5801_v17, %v4370_v5  ;;  %v4371_v58 = vmul.f32 %v5800_v23, %v4343_v51  ;;  %p5862_p6 = pnand %p5861_p4, %p6063_p12  ;;  %p5869_p3 = por %p5868_p13, %p5867_p10 }
 0x314   : > { %v4396_v59 = vadd.f32 %v4388_v60, %v4380_v54  ;;  %v4381_v0 = vadd.f32 %v5801_v17, %v4373_v63 }
 0x315   : > { %v4394_v32 = vadd.f32 %v4386_v44, %v4378_v55  ;;  %v4379_v2 = vadd.f32 %v5801_v17, %v4371_v58  ;;  %v5374_v28 = vpop.f32.mrb[68].mxu1  ;;  %p5863_p8 = pneg %p5862_p6 }
 0x316   : > { %4404 = vst [vmem:[%s6613_s16 + $0x10] sm:$0xff] %v4396_v59  ;;  %v4397_v22 = vadd.f32 %v4389_v56, %v4381_v0  ;;  %v4364_v36 = vadd.f32 %v5374_v28, %v4299_v26  ;;  %v4355_v9 = vpop.f32.mrb[69].mxu1 }
 0x317   : > { %4402 = vst [vmem:[%s6613_s16] sm:$0xff] %v4394_v32  ;;  %v4395_v7 = vadd.f32 %v4387_v47, %v4379_v2  ;;  %v4356_v10 = vadd.f32 %v4355_v9, %v4291_v57  ;;  %v5375_v13 = vpop.f32.mrb[70].mxu1  ;;  %p5870_p7 = pnand %p5869_p3, %p5863_p8 }
 0x318   : > { %4405 = vst [vmem:[%s6613_s16 + $0x18] sm:$0xff] %v4397_v22  ;;  %v4376_v16 = vmul.f32 %v5800_v23, %v4364_v36  ;;  %v4367_v18 = vadd.f32 %v5375_v13, %v4302_v38  ;;  %v4358_v34 = vpop.f32.mrb[71].mxu1 }
 0x319   : > { %4403 = vst [vmem:[%s6613_s16 + $0x8] sm:$0xff] %v4395_v7  ;;  %v4374_v21 = vmul.f32 %v5800_v23, %v4356_v10  ;;  %v4359_v61 = vadd.f32 %v4358_v34, %v4294_v6 }
 0x31a   : > { %v4384_v25 = vadd.f32 %v5801_v17, %v4376_v16  ;;  %v4377_v3 = vmul.f32 %v5800_v23, %v4367_v18 }
 0x31b   : > { %v4382_v11 = vadd.f32 %v5801_v17, %v4374_v21  ;;  %v4375_v31 = vmul.f32 %v5800_v23, %v4359_v61 }
 0x31c   : > { %v4400_v45 = vadd.f32 %v4392_v19, %v4384_v25  ;;  %v4385_v43 = vadd.f32 %v5801_v17, %v4377_v3 }
 0x31d   : > { %v4398_v35 = vadd.f32 %v4390_v1, %v4382_v11  ;;  %v4383_v37 = vadd.f32 %v5801_v17, %v4375_v31 }
 0x31e   : > { %4408 = vst [vmem:[%s6613_s16 + $0x30] sm:$0xff] %v4400_v45  ;;  %v4401_v48 = vadd.f32 %v4393_v30, %v4385_v43 }
 0x31f   : > { %4406 = vst [vmem:[%s6613_s16 + $0x20] sm:$0xff] %v4398_v35  ;;  %v4399_v52 = vadd.f32 %v4391_v29, %v4383_v37 }
 0x320   : > { %4409 = vst [vmem:[%s6613_s16 + $0x38] sm:$0xff] %v4401_v48 }
 0x321   : > { %4407 = vst [vmem:[%s6613_s16 + $0x28] sm:$0xff] %v4399_v52 }
 0x322   : > { %5873 = shalt.err (!%p5870_p7)
}
 0x323   : > { %s5874_s15 = scalar_lea.hbm %s6629_s26, 1024  ;;  %s5878_s13 = scalar_lea.hbm %s6683_s5, 2048 }
 0x324   : > { %p5875_p9 = scmp.ne.s32.totalorder %s6629_s26, %s5874_s15  ;;  %p5879_p5 = scmp.lt.u32.totalorder %s6629_s26, %s6683_s5 }
 0x325   : > { %p5880_p11 = scmp.lt.u32.totalorder %s5878_s13, %s5874_s15  ;;  %p5882_p4 = scmp.lt.u32.totalorder %s5874_s15, %s6629_s26 }
 0x326   : > { %p5876_p2 = pnand %p5875_p9, %p6063_p12 }
 0x327   : > { %p5881_p1 = por %p5880_p11, %p5879_p5 }
 0x328   : > { %p5877_p0 = pneg %p5876_p2 }
 0x329   : > { %p5883_p6 = por %p5882_p4, %p5881_p1 }
 0x32b   : > { %p5884_p8 = pnand %p5883_p6, %p5877_p0 }
 0x32d   : > { %5887 = shalt.err (!%p5884_p8)
}
 0x32e   : > { %s5940_s17 = smov 128   ;;  %s5941_s11 = smov 8  }
 0x32f   : > { %5382 = dma.vmem_to_hbm [thread:$0]  (%p6063_p12), %s6631_s27, 1024, %s6629_s26, %s4411_s22, %s5940_s17, %s5940_s17, %s5941_s11  }
 0x330 PF: > { %s4439_s24 = sand.u32 1, %s5918_s18   ;;  %p6708_p10 = scmp.ne.s32.totalorder %s6688_s25, 0 }
 0x331   : > { %p6709_p13 = scmp.ge.s32.totalorder %s5930_s21, 2  ;;  %s4440_s12 = scalar_lea.sflag [#allocation6], %s4439_s24 }
 0x333   : > { %p5393_p3 = pnand %p6709_p13, %p6708_p10 }
 0x335   : > { %5913 = dma.done.wait (!%p5393_p3), %s4440_s12, 1024  }
 0x336   : > { %5915 = vsyncadd (!%p5393_p3), %s4440_s12, 4294966272  ;;  %p19_p7 = scmp.ge.s32.totalorder %s6028_s30, 4   ;;  %s6710_s18 = smov %s5922_s19 }
 0x337   : > { %s6711_s19 = smov %s5926_s20  ;;  %s6712_s20 = smov %s6059_s8 }
 0x338   : > { %s6713_s21 = smov %s6028_s30  ;;  %21 = sbr.rel (!%p19_p7) target bundleno = 6 (0x6), region = 92 }
 0x33f   :  { %4445 = vsyncpa [#allocation5], 1 }
 0x340   :  { %4447 = vsyncpa [#allocation5 + $0x1], 1 }
 0x341   :  { %4448 = vsyncpa [#allocation8], 1 }
 0x342   :  { %4449 = vsyncpa [#allocation6], 1 }
 0x343   :  { %4451 = vsyncpa [#allocation6 + $0x1], 1 }

</bundles_post_ra>
